<compile_context>
chip_gen: v7x
topology: tpu7x:2x2x1
jax: 0.10.0
libtpu: 0.0.40
codegen_flags: <defaults>
</compile_context>

<pallas_src>
import math
from functools import partial

import jax
import jax.numpy as jnp
from jax.experimental import pallas as pl
from jax.experimental.pallas import tpu as pltpu

NEG_SLOPE = 0.2
BN_EPS = 1e-5
LN_EPS = 1e-6            # AddNorm: nn.LayerNorm(d_model, eps=1e-06)


# ----------------------------- Pallas kernels ------------------------------ #

def leaky_stats_kernel(x_ref, t_ref, sum_ref, sq_ref):
    """t = leaky_relu(x) (bf16 out); per-tile per-channel sum / sum-of-squares."""
    v = x_ref[...]
    t = jnp.where(v > 0, v, NEG_SLOPE * v)
    t_ref[...] = t.astype(t_ref.dtype)
    sum_ref[0] = jnp.sum(t, axis=0, keepdims=True)
    sq_ref[0] = jnp.sum(t * t, axis=0, keepdims=True)


def matmul_leaky_stats_kernel(x_ref, w_ref, b_ref, t_ref, sum_ref, sq_ref):
    """t = leaky_relu(x @ w + b) (bf16 out); per-tile per-channel stats."""
    y = jnp.dot(x_ref[...], w_ref[...],
                preferred_element_type=jnp.float32) + b_ref[...]
    t = jnp.where(y > 0, y, NEG_SLOPE * y)
    t_ref[...] = t.astype(t_ref.dtype)
    sum_ref[0] = jnp.sum(t, axis=0, keepdims=True)
    sq_ref[0] = jnp.sum(t * t, axis=0, keepdims=True)


def decoder_kernel(x_ref, pe_ref, enc_ref,
                   wqkv_s_ref, bqkv_s_ref, wo_s_ref, bo_s_ref,
                   wq_c_ref, bq_c_ref, wkv_e_ref, bkv_e_ref, wo_c_ref, bo_c_ref,
                   wf1_ref, bf1_ref, wf2_ref, bf2_ref, ln_ref,
                   o_ref, *, nhead, head_dim):
    """Whole DecodingModule (minus the encoder cnn branch) for one batch element."""
    C = nhead * head_dim
    bf16 = jnp.bfloat16
    f32 = jnp.float32

    def mm(a, b):
        # bf16 operands, f32 accumulation (native MXU path on v5e/v6e/v7x).
        return jnp.dot(a.astype(bf16), b.astype(bf16), preferred_element_type=f32)

    def split_heads(m, base):
        # (rows, >= base+C) -> (nhead, rows, head_dim)
        return jnp.stack(
            [m[:, base + h * head_dim: base + (h + 1) * head_dim]
             for h in range(nhead)],
            axis=0)

    def mha(q3, k3, v3, wo, bo):
        # Head-batched scores / softmax / PV, then heads merged along lanes and a
        # single full-contraction (Lq,C)@(C,C) out-projection (review item 1).
        # 1/sqrt(head_dim) is already folded into the Q projection weights.
        s = jax.lax.dot_general(
            q3.astype(bf16), k3.astype(bf16),
            dimension_numbers=(((2,), (2,)), ((0,), (0,))),
            preferred_element_type=f32)                         # (nh, Lq, Lk)
        m = jnp.max(s, axis=-1, keepdims=True)
        e = jnp.exp(s - m)                                      # f32 exp (EUP)
        p = e * pl.reciprocal(jnp.sum(e, axis=-1, keepdims=True), approx=True)
        o3 = jax.lax.dot_general(
            p.astype(bf16), v3.astype(bf16),
            dimension_numbers=(((2,), (1,)), ((0,), (0,))),
            preferred_element_type=f32)                         # (nh, Lq, hd)
        o = jnp.concatenate([o3[h] for h in range(nhead)], axis=-1)   # (Lq, C)
        return mm(o, wo) + bo

    def layer_norm(v, g, b):
        mu = jnp.mean(v, axis=-1, keepdims=True)
        c = v - mu
        var = jnp.mean(c * c, axis=-1, keepdims=True)
        return c * jax.lax.rsqrt(var + LN_EPS) * g + b

    ln = ln_ref[...]                                            # (6, C)

    # --- positional encoding (PE block shared across batch, not tiled B times) ---
    xpe = x_ref[...] + pe_ref[...]                              # (L, C)

    # --- self attention + AddNorm1 (residual = PE'd input) ---
    qkv = mm(xpe, wqkv_s_ref[...]) + bqkv_s_ref[...]            # one (L,C)@(C,3C)
    sa = mha(split_heads(qkv, 0), split_heads(qkv, C), split_heads(qkv, 2 * C),
             wo_s_ref[...], bo_s_ref[...])
    r1 = layer_norm(xpe + sa, ln[0:1, :], ln[1:2, :])

    # --- cross attention + AddNorm2 (K/V projection has cnn2 + BN folded in) ---
    kv = mm(enc_ref[...], wkv_e_ref[...]) + bkv_e_ref[...]      # (Le, 2C)
    q = mm(r1, wq_c_ref[...]) + bq_c_ref[...]                   # (L, C)
    ca = mha(split_heads(q, 0), split_heads(kv, 0), split_heads(kv, C),
             wo_c_ref[...], bo_c_ref[...])
    r2 = layer_norm(r1 + ca, ln[2:3, :], ln[3:4, :])

    # --- feed forward (1x1 convs C->4C->C) + AddNorm3 ---
    h = jnp.maximum(mm(r2, wf1_ref[...]) + bf1_ref[...], 0.0)   # (L, 4C)
    y = mm(h, wf2_ref[...]) + bf2_ref[...]                      # (L, C)
    o_ref[...] = layer_norm(r2 + y, ln[4:5, :], ln[5:6, :])


# ------------------------------ Pallas wrappers ----------------------------- #

def _leaky_stats(x_tok, T):
    N, C = x_tok.shape
    nt = N // T
    return pl.pallas_call(
        leaky_stats_kernel,
        out_shape=(jax.ShapeDtypeStruct((N, C), jnp.bfloat16),
                   jax.ShapeDtypeStruct((nt, 1, C), jnp.float32),
                   jax.ShapeDtypeStruct((nt, 1, C), jnp.float32)),
        grid=(nt,),
        in_specs=[pl.BlockSpec((T, C), lambda i: (i, 0))],
        out_specs=(pl.BlockSpec((T, C), lambda i: (i, 0)),
                   pl.BlockSpec((1, 1, C), lambda i: (i, 0, 0)),
                   pl.BlockSpec((1, 1, C), lambda i: (i, 0, 0))),
        compiler_params=pltpu.CompilerParams(dimension_semantics=("parallel",)),
    )(x_tok)


def _matmul_leaky_stats(x_tok, w_bf16, b_row, T):
    N, Cin = x_tok.shape
    Cout = w_bf16.shape[1]
    nt = N // T
    return pl.pallas_call(
        matmul_leaky_stats_kernel,
        out_shape=(jax.ShapeDtypeStruct((N, Cout), jnp.bfloat16),
                   jax.ShapeDtypeStruct((nt, 1, Cout), jnp.float32),
                   jax.ShapeDtypeStruct((nt, 1, Cout), jnp.float32)),
        grid=(nt,),
        in_specs=[pl.BlockSpec((T, Cin), lambda i: (i, 0)),
                  pl.BlockSpec((Cin, Cout), lambda i: (0, 0)),
                  pl.BlockSpec((1, Cout), lambda i: (0, 0))],
        out_specs=(pl.BlockSpec((T, Cout), lambda i: (i, 0)),
                   pl.BlockSpec((1, 1, Cout), lambda i: (i, 0, 0)),
                   pl.BlockSpec((1, 1, Cout), lambda i: (i, 0, 0))),
        compiler_params=pltpu.CompilerParams(dimension_semantics=("parallel",)),
    )(x_tok, w_bf16, b_row)


# ------------------------------- model glue -------------------------------- #

def make_pe(C, H, W):
    """PositionalEncoding2D buffer, shape (C, H, W) — matches the torch code."""
    div = jnp.exp(jnp.arange(0, C // 2, 2, dtype=jnp.float32)
                  * (-(math.log(10000.0) / (C // 2))))          # (C//4,)
    y = jnp.broadcast_to(jnp.arange(H, dtype=jnp.float32)[:, None], (H, W))
    x = jnp.broadcast_to(jnp.arange(W, dtype=jnp.float32)[None, :], (H, W))
    ang_y = y[None] * div[:, None, None]
    ang_x = x[None] * div[:, None, None]
    pe = jnp.zeros((C, H, W), jnp.float32)
    pe = pe.at[0::4].set(jnp.sin(ang_y))
    pe = pe.at[1::4].set(jnp.cos(ang_y))
    pe = pe.at[2::4].set(jnp.sin(ang_x))
    pe = pe.at[3::4].set(jnp.cos(ang_x))
    return pe


def _bn_fold(ssum, ssq, n_rows, gamma, beta, conv_w, conv_b):
    """Fold training-mode BatchNorm (batch stats, biased var) into a 1x1 conv."""
    mean = ssum / n_rows
    var = jnp.maximum(ssq / n_rows - mean * mean, 0.0)
    scale = gamma * jax.lax.rsqrt(var + BN_EPS)
    shift = beta - mean * scale
    wT = conv_w.T                                   # (Cin, Cout)
    return scale[:, None] * wT, shift @ wT + conv_b  # W_eff (Cin,Cout), b_eff (Cout,)


def _vmem_limit_bytes():
    """Explicit scoped-VMEM limit for the fused decoder call (review item 4)."""
    try:
        cap = int(pltpu.get_tpu_info().vmem_capacity_bytes)
    except Exception:
        cap = 64 * 1024 * 1024
    return int(min(100 * 1024 * 1024, int(cap * 0.75)))


def decoding_module_forward(x_nchw, enc_nchw, p, nhead, enc_tile_rows=1024):
    B, C, H, W = x_nchw.shape
    Be, Ce, He, We = enc_nchw.shape
    assert B == Be and C == Ce and C % nhead == 0 and C % 4 == 0
    L, Le = H * W, He * We
    hd = C // nhead
    bf = lambda a: a.astype(jnp.bfloat16)

    # TODO(synk): these 3 NCHW<->token-major transposes are pure HBM overhead; drop
    # them if adjacent modules keep a token-major layout.
    x_tok = jnp.transpose(x_nchw, (0, 2, 3, 1)).reshape(B * L, C)
    enc_tok = jnp.transpose(enc_nchw, (0, 2, 3, 1)).reshape(B * Le, C)
    pe_tok = jnp.transpose(make_pe(C, H, W), (1, 2, 0)).reshape(L, C)

    # ---------------- encoder branch: cross_cnn1 -> cross_cnn2 ---------------- #
    # CNNBlock = LeakyReLU -> BatchNorm -> Conv1x1; BN folded into the conv, conv2
    # (+BN2) further folded straight into the cross-attention K/V in-projection.
    Ne = B * Le
    Te = math.gcd(Ne, min(enc_tile_rows, Ne))
    if Te < Ne and Te % 8 != 0:          # keep blocks sublane-aligned
        Te = Ne
    t1, s1p, q1p = _leaky_stats(enc_tok, Te)
    s1, q1 = jnp.sum(s1p, axis=(0, 1)), jnp.sum(q1p, axis=(0, 1))
    w1_eff, b1_eff = _bn_fold(s1, q1, Ne, p["bn1_g"], p["bn1_b"],
                              p["conv1_w"], p["conv1_b"])
    t2, s2p, q2p = _matmul_leaky_stats(t1, bf(w1_eff), b1_eff[None, :], Te)
    s2, q2 = jnp.sum(s2p, axis=(0, 1)), jnp.sum(q2p, axis=(0, 1))
    w2_eff, b2_eff = _bn_fold(s2, q2, Ne, p["bn2_g"], p["bn2_b"],
                              p["conv2_w"], p["conv2_b"])

    # Fold conv2 (BN-folded) straight into the cross-attention K/V in-projection.
    wkvT = p["cross_in_w"][C:].T                     # (C, 2C)  = [Wk^T | Wv^T]
    wkv_eff = w2_eff @ wkvT                          # (C, 2C)
    bkv_eff = b2_eff @ wkvT + p["cross_in_b"][C:]    # (2C,)

    # ---------------------- decoder weights (host-side prep) ------------------ #
    scale = 1.0 / math.sqrt(hd)                      # softmax scale folded into Q
    wqkv_s = p["self_in_w"].T                        # (C, 3C)
    wqkv_s = jnp.concatenate([wqkv_s[:, :C] * scale, wqkv_s[:, C:]], axis=1)
    bqkv_s = jnp.concatenate([p["self_in_b"][:C] * scale,
                              p["self_in_b"][C:]])[None, :]
    wo_s = p["self_out_w"].T                         # (C, C)
    bo_s = p["self_out_b"][None, :]
    wq_c = p["cross_in_w"][:C].T * scale             # (C, C), scale folded
    bq_c = (p["cross_in_b"][:C] * scale)[None, :]
    wo_c = p["cross_out_w"].T                        # (C, C)
    bo_c = p["cross_out_b"][None, :]
    wf1 = p["ff1_w"].T                               # (C, 4C)
    bf1 = p["ff1_b"][None, :]
    wf2 = p["ff2_w"].T                               # (4C, C)
    bf2 = p["ff2_b"][None, :]
    ln = jnp.stack([p["ln1_g"], p["ln1_b"], p["ln2_g"], p["ln2_b"],
                    p["ln3_g"], p["ln3_b"]])         # (6, C)

    full2 = lambda blk: pl.BlockSpec(blk, lambda b: (0, 0))
    # TODO(synk): single-buffer these constant-index weight blocks
    # (pipeline_mode=pl.Buffered(1)) to halve weight VMEM at production sizes.
    # TODO(synk): for v7x at d_model=512/L=256/large B, tile L inside the fused
    # kernel (flash-style) and re-derive the VMEM budget for 64 MiB.

    out_tok = pl.pallas_call(
        partial(decoder_kernel, nhead=nhead, head_dim=hd),
        out_shape=jax.ShapeDtypeStruct((B * L, C), jnp.float32),
        grid=(B,),
        in_specs=[
            pl.BlockSpec((L, C), lambda b: (b, 0)),     # decoder tokens (per batch)
            full2((L, C)),                              # PE (shared)
            pl.BlockSpec((Le, C), lambda b: (b, 0)),    # encoder tokens (bf16, post cnn1)
            full2((C, 3 * C)), full2((1, 3 * C)),       # self QKV (scale folded)
            full2((C, C)), full2((1, C)),               # self out-proj (merged)
            full2((C, C)), full2((1, C)),               # cross Q (scale folded)
            full2((C, 2 * C)), full2((1, 2 * C)),       # cross K/V (cnn2 folded)
            full2((C, C)), full2((1, C)),               # cross out-proj (merged)
            full2((C, 4 * C)), full2((1, 4 * C)),       # FFN up
            full2((4 * C, C)), full2((1, C)),           # FFN down
            full2((6, C)),                              # LayerNorm params
        ],
        out_specs=pl.BlockSpec((L, C), lambda b: (b, 0)),
        compiler_params=pltpu.CompilerParams(
            dimension_semantics=("parallel",),
            vmem_limit_bytes=_vmem_limit_bytes()),
    )(x_tok, pe_tok, t2,
      bf(wqkv_s), bqkv_s, bf(wo_s), bo_s,
      bf(wq_c), bq_c, bf(wkv_eff), bkv_eff[None, :], bf(wo_c), bo_c,
      bf(wf1), bf1, bf(wf2), bf2, ln)

    return jnp.transpose(out_tok.reshape(B, H, W, C), (0, 3, 1, 2))


def init_params(key, C):
    ks = jax.random.split(key, 20)

    def n(k, shape, s):
        return s * jax.random.normal(k, shape, jnp.float32)

    return dict(
        # cross_cnn1 / cross_cnn2 (1x1 convs on encoder_out)
        bn1_g=1.0 + n(ks[0], (C,), 0.1), bn1_b=n(ks[1], (C,), 0.05),
        conv1_w=n(ks[2], (C, C), 0.15), conv1_b=n(ks[3], (C,), 0.05),
        bn2_g=1.0 + n(ks[4], (C,), 0.1), bn2_b=n(ks[5], (C,), 0.05),
        conv2_w=n(ks[6], (C, C), 0.15), conv2_b=n(ks[7], (C,), 0.05),
        # self attention
        self_in_w=n(ks[8], (3 * C, C), 0.1), self_in_b=n(ks[9], (3 * C,), 0.02),
        self_out_w=n(ks[10], (C, C), 0.1), self_out_b=n(ks[11], (C,), 0.02),
        # cross attention
        cross_in_w=n(ks[12], (3 * C, C), 0.1), cross_in_b=n(ks[13], (3 * C,), 0.02),
        cross_out_w=n(ks[14], (C, C), 0.1), cross_out_b=n(ks[15], (C,), 0.02),
        # feed forward 1x1 convs
        ff1_w=n(ks[16], (4 * C, C), 0.1), ff1_b=n(ks[17], (4 * C,), 0.02),
        ff2_w=n(ks[18], (C, 4 * C), 0.1), ff2_b=n(ks[19], (C,), 0.02),
        # AddNorm LayerNorms
        ln1_g=jnp.ones((C,), jnp.float32), ln1_b=jnp.zeros((C,), jnp.float32),
        ln2_g=jnp.ones((C,), jnp.float32), ln2_b=jnp.zeros((C,), jnp.float32),
        ln3_g=jnp.ones((C,), jnp.float32), ln3_b=jnp.zeros((C,), jnp.float32),
    )


if __name__ == "__main__":
    # Small smoke-test shapes consistent with the module (d_model % 4 == 0,
    # d_model % nhead == 0).  NOTE: do not draw performance conclusions here —
    # benchmark at d_model=512, nhead=8, H=W=16 (L=256) per the perf review.
    B, C, H, W = 2, 32, 8, 8
    nhead = 4

    key = jax.random.PRNGKey(0)
    kx, ke, kp = jax.random.split(key, 3)
    x = jax.random.normal(kx, (B, C, H, W), jnp.float32)
    encoder_out = jax.random.normal(ke, (B, C, H, W), jnp.float32)
    params = init_params(kp, C)

    fwd = jax.jit(partial(decoding_module_forward, nhead=nhead))
    out = fwd(x, encoder_out, params)
    out = jax.block_until_ready(out)
    assert out.shape == (B, C, H, W) and out.dtype == jnp.float32
    assert bool(jnp.all(jnp.isfinite(out)))
    print("KERNEL_OK")
</pallas_src>

<mosaic_0001>
module attributes {stable_mosaic.version = 11 : i64} {
  func.func @leaky_stats_kernel(%arg0: i32, %arg1: memref<128x32xf32, #tpu.memory_space<vmem>>, %arg2: memref<128x32xbf16, #tpu.memory_space<vmem>>, %arg3: memref<1x1x32xf32, #tpu.memory_space<vmem>>, %arg4: memref<1x1x32xf32, #tpu.memory_space<vmem>>) attributes {dimension_semantics = [#tpu.dimension_semantics<parallel>], iteration_bounds = array<i64: 1>, scalar_prefetch = 0 : i64, scratch_operands = 0 : i64, tpu.core_type = #tpu.core_type<tc>, window_params = [{transform_indices = @transform_0, window_bounds = array<i64: 128, 32>}, {transform_indices = @transform_1, window_bounds = array<i64: 128, 32>}, {transform_indices = @transform_2, window_bounds = array<i64: 1, 1, 32>}, {transform_indices = @transform_3, window_bounds = array<i64: 1, 1, 32>}]} {
    %c0 = arith.constant 0 : index
    %c0_0 = arith.constant 0 : index
    %0 = vector.load %arg1[%c0, %c0_0] : memref<128x32xf32, #tpu.memory_space<vmem>>, vector<128x32xf32>
    %cst = arith.constant 0.000000e+00 : f32
    %1 = vector.broadcast %cst : f32 to vector<128x32xf32>
    %2 = arith.cmpf ogt, %0, %1 : vector<128x32xf32>
    %cst_1 = arith.constant 2.000000e-01 : f32
    %3 = vector.broadcast %cst_1 : f32 to vector<128x32xf32>
    %4 = arith.mulf %3, %0 : vector<128x32xf32>
    %5 = arith.select %2, %0, %4 : vector<128x32xi1>, vector<128x32xf32>
    %6 = arith.truncf %5 : vector<128x32xf32> to vector<128x32xbf16>
    %c0_2 = arith.constant 0 : index
    %c0_3 = arith.constant 0 : index
    %7 = vector.load %arg2[%c0_2, %c0_3] : memref<128x32xbf16, #tpu.memory_space<vmem>>, vector<128x32xbf16>
    tpu.vector_store %arg2[%c0_2, %c0_3], %6 {strides = array<i32>} : memref<128x32xbf16, #tpu.memory_space<vmem>>, vector<128x32xbf16>,
    %cst_4 = arith.constant dense<0.000000e+00> : vector<32xf32>
    %8 = vector.multi_reduction <add>, %5, %cst_4 [0] : vector<128x32xf32> to vector<32xf32>
    %9 = vector.shape_cast %8 : vector<32xf32> to vector<1x32xf32>
    %c0_5 = arith.constant 0 : index
    %c0_6 = arith.constant 0 : index
    %c0_7 = arith.constant 0 : index
    %10 = vector.load %arg3[%c0_5, %c0_6, %c0_7] : memref<1x1x32xf32, #tpu.memory_space<vmem>>, vector<1x1x32xf32>
    %11 = vector.shape_cast %10 : vector<1x1x32xf32> to vector<1x32xf32>
    %12 = vector.shape_cast %9 : vector<1x32xf32> to vector<1x1x32xf32>
    tpu.vector_store %arg3[%c0_5, %c0_6, %c0_7], %12 {strides = array<i32>} : memref<1x1x32xf32, #tpu.memory_space<vmem>>, vector<1x1x32xf32>,
    %13 = arith.mulf %5, %5 : vector<128x32xf32>
    %cst_8 = arith.constant dense<0.000000e+00> : vector<32xf32>
    %14 = vector.multi_reduction <add>, %13, %cst_8 [0] : vector<128x32xf32> to vector<32xf32>
    %15 = vector.shape_cast %14 : vector<32xf32> to vector<1x32xf32>
    %c0_9 = arith.constant 0 : index
    %c0_10 = arith.constant 0 : index
    %c0_11 = arith.constant 0 : index
    %16 = vector.load %arg4[%c0_9, %c0_10, %c0_11] : memref<1x1x32xf32, #tpu.memory_space<vmem>>, vector<1x1x32xf32>
    %17 = vector.shape_cast %16 : vector<1x1x32xf32> to vector<1x32xf32>
    %18 = vector.shape_cast %15 : vector<1x32xf32> to vector<1x1x32xf32>
    tpu.vector_store %arg4[%c0_9, %c0_10, %c0_11], %18 {strides = array<i32>} : memref<1x1x32xf32, #tpu.memory_space<vmem>>, vector<1x1x32xf32>,
    return
  }
  func.func @transform_0(%arg0: i32) -> (i32, i32) {
    %c0_i32 = arith.constant 0 : i32
    %c0_i32_0 = arith.constant 0 : i32
    return %arg0, %c0_i32 : i32, i32
  }
  func.func @transform_1(%arg0: i32) -> (i32, i32) {
    %c0_i32 = arith.constant 0 : i32
    %c0_i32_0 = arith.constant 0 : i32
    return %arg0, %c0_i32 : i32, i32
  }
  func.func @transform_2(%arg0: i32) -> (i32, i32, i32) {
    %c0_i32 = arith.constant 0 : i32
    %c0_i32_0 = arith.constant 0 : i32
    %c0_i32_1 = arith.constant 0 : i32
    return %arg0, %c0_i32, %c0_i32_0 : i32, i32, i32
  }
  func.func @transform_3(%arg0: i32) -> (i32, i32, i32) {
    %c0_i32 = arith.constant 0 : i32
    %c0_i32_0 = arith.constant 0 : i32
    %c0_i32_1 = arith.constant 0 : i32
    return %arg0, %c0_i32, %c0_i32_0 : i32, i32, i32
  }
}

module attributes {stable_mosaic.version = 11 : i64} {
  func.func @matmul_leaky_stats_kernel(%arg0: i32, %arg1: memref<128x32xbf16, #tpu.memory_space<vmem>>, %arg2: memref<32x32xbf16, #tpu.memory_space<vmem>>, %arg3: memref<1x32xf32, #tpu.memory_space<vmem>>, %arg4: memref<128x32xbf16, #tpu.memory_space<vmem>>, %arg5: memref<1x1x32xf32, #tpu.memory_space<vmem>>, %arg6: memref<1x1x32xf32, #tpu.memory_space<vmem>>) attributes {dimension_semantics = [#tpu.dimension_semantics<parallel>], iteration_bounds = array<i64: 1>, scalar_prefetch = 0 : i64, scratch_operands = 0 : i64, tpu.core_type = #tpu.core_type<tc>, window_params = [{transform_indices = @transform_0, window_bounds = array<i64: 128, 32>}, {pipeline_mode = #tpu.pipeline_mode<synchronous>, transform_indices = @transform_1, window_bounds = array<i64: 32, 32>}, {pipeline_mode = #tpu.pipeline_mode<synchronous>, transform_indices = @transform_2, window_bounds = array<i64: 1, 32>}, {transform_indices = @transform_3, window_bounds = array<i64: 128, 32>}, {transform_indices = @transform_4, window_bounds = array<i64: 1, 1, 32>}, {transform_indices = @transform_5, window_bounds = array<i64: 1, 1, 32>}]} {
    %c0 = arith.constant 0 : index
    %c0_0 = arith.constant 0 : index
    %0 = vector.load %arg1[%c0, %c0_0] : memref<128x32xbf16, #tpu.memory_space<vmem>>, vector<128x32xbf16>
    %c0_1 = arith.constant 0 : index
    %c0_2 = arith.constant 0 : index
    %1 = vector.load %arg2[%c0_1, %c0_2] : memref<32x32xbf16, #tpu.memory_space<vmem>>, vector<32x32xbf16>
    %cst = arith.constant dense<0.000000e+00> : vector<128x32xf32>
    %2 = tpu.matmul %0, %1, %cst {dimension_numbers = #tpu.dot_dimension_numbers<[1], [0], [0], [1], [0, 0, 1, 1], [], []>} : vector<128x32xbf16>, vector<32x32xbf16>, vector<128x32xf32> -> vector<128x32xf32>
    %c0_3 = arith.constant 0 : index
    %c0_4 = arith.constant 0 : index
    %3 = vector.load %arg3[%c0_3, %c0_4] : memref<1x32xf32, #tpu.memory_space<vmem>>, vector<1x32xf32>
    %4 = vector.broadcast %3 : vector<1x32xf32> to vector<128x32xf32>
    %5 = arith.addf %2, %4 : vector<128x32xf32>
    %cst_5 = arith.constant 0.000000e+00 : f32
    %6 = vector.broadcast %cst_5 : f32 to vector<128x32xf32>
    %7 = arith.cmpf ogt, %5, %6 : vector<128x32xf32>
    %cst_6 = arith.constant 2.000000e-01 : f32
    %8 = vector.broadcast %cst_6 : f32 to vector<128x32xf32>
    %9 = arith.mulf %8, %5 : vector<128x32xf32>
    %10 = arith.select %7, %5, %9 : vector<128x32xi1>, vector<128x32xf32>
    %11 = arith.truncf %10 : vector<128x32xf32> to vector<128x32xbf16>
    %c0_7 = arith.constant 0 : index
    %c0_8 = arith.constant 0 : index
    %12 = vector.load %arg4[%c0_7, %c0_8] : memref<128x32xbf16, #tpu.memory_space<vmem>>, vector<128x32xbf16>
    tpu.vector_store %arg4[%c0_7, %c0_8], %11 {strides = array<i32>} : memref<128x32xbf16, #tpu.memory_space<vmem>>, vector<128x32xbf16>,
    %cst_9 = arith.constant dense<0.000000e+00> : vector<32xf32>
    %13 = vector.multi_reduction <add>, %10, %cst_9 [0] : vector<128x32xf32> to vector<32xf32>
    %14 = vector.shape_cast %13 : vector<32xf32> to vector<1x32xf32>
    %c0_10 = arith.constant 0 : index
    %c0_11 = arith.constant 0 : index
    %c0_12 = arith.constant 0 : index
    %15 = vector.load %arg5[%c0_10, %c0_11, %c0_12] : memref<1x1x32xf32, #tpu.memory_space<vmem>>, vector<1x1x32xf32>
    %16 = vector.shape_cast %15 : vector<1x1x32xf32> to vector<1x32xf32>
    %17 = vector.shape_cast %14 : vector<1x32xf32> to vector<1x1x32xf32>
    tpu.vector_store %arg5[%c0_10, %c0_11, %c0_12], %17 {strides = array<i32>} : memref<1x1x32xf32, #tpu.memory_space<vmem>>, vector<1x1x32xf32>,
    %18 = arith.mulf %10, %10 : vector<128x32xf32>
    %cst_13 = arith.constant dense<0.000000e+00> : vector<32xf32>
    %19 = vector.multi_reduction <add>, %18, %cst_13 [0] : vector<128x32xf32> to vector<32xf32>
    %20 = vector.shape_cast %19 : vector<32xf32> to vector<1x32xf32>
    %c0_14 = arith.constant 0 : index
    %c0_15 = arith.constant 0 : index
    %c0_16 = arith.constant 0 : index
    %21 = vector.load %arg6[%c0_14, %c0_15, %c0_16] : memref<1x1x32xf32, #tpu.memory_space<vmem>>, vector<1x1x32xf32>
    %22 = vector.shape_cast %21 : vector<1x1x32xf32> to vector<1x32xf32>
    %23 = vector.shape_cast %20 : vector<1x32xf32> to vector<1x1x32xf32>
    tpu.vector_store %arg6[%c0_14, %c0_15, %c0_16], %23 {strides = array<i32>} : memref<1x1x32xf32, #tpu.memory_space<vmem>>, vector<1x1x32xf32>,
    return
  }
  func.func @transform_0(%arg0: i32) -> (i32, i32) {
    %c0_i32 = arith.constant 0 : i32
    %c0_i32_0 = arith.constant 0 : i32
    return %arg0, %c0_i32 : i32, i32
  }
  func.func @transform_1(%arg0: i32) -> (i32, i32) {
    %c0_i32 = arith.constant 0 : i32
    %c0_i32_0 = arith.constant 0 : i32
    %c0_i32_1 = arith.constant 0 : i32
    return %c0_i32, %c0_i32_0 : i32, i32
  }
  func.func @transform_2(%arg0: i32) -> (i32, i32) {
    %c0_i32 = arith.constant 0 : i32
    %c0_i32_0 = arith.constant 0 : i32
    %c0_i32_1 = arith.constant 0 : i32
    return %c0_i32, %c0_i32_0 : i32, i32
  }
  func.func @transform_3(%arg0: i32) -> (i32, i32) {
    %c0_i32 = arith.constant 0 : i32
    %c0_i32_0 = arith.constant 0 : i32
    return %arg0, %c0_i32 : i32, i32
  }
  func.func @transform_4(%arg0: i32) -> (i32, i32, i32) {
    %c0_i32 = arith.constant 0 : i32
    %c0_i32_0 = arith.constant 0 : i32
    %c0_i32_1 = arith.constant 0 : i32
    return %arg0, %c0_i32, %c0_i32_0 : i32, i32, i32
  }
  func.func @transform_5(%arg0: i32) -> (i32, i32, i32) {
    %c0_i32 = arith.constant 0 : i32
    %c0_i32_0 = arith.constant 0 : i32
    %c0_i32_1 = arith.constant 0 : i32
    return %arg0, %c0_i32, %c0_i32_0 : i32, i32, i32
  }
}

module attributes {stable_mosaic.version = 11 : i64} {
  func.func @decoder_kernel(%arg0: i32, %arg1: memref<64x32xf32, #tpu.memory_space<vmem>>, %arg2: memref<64x32xf32, #tpu.memory_space<vmem>>, %arg3: memref<64x32xbf16, #tpu.memory_space<vmem>>, %arg4: memref<32x96xbf16, #tpu.memory_space<vmem>>, %arg5: memref<1x96xf32, #tpu.memory_space<vmem>>, %arg6: memref<32x32xbf16, #tpu.memory_space<vmem>>, %arg7: memref<1x32xf32, #tpu.memory_space<vmem>>, %arg8: memref<32x32xbf16, #tpu.memory_space<vmem>>, %arg9: memref<1x32xf32, #tpu.memory_space<vmem>>, %arg10: memref<32x64xbf16, #tpu.memory_space<vmem>>, %arg11: memref<1x64xf32, #tpu.memory_space<vmem>>, %arg12: memref<32x32xbf16, #tpu.memory_space<vmem>>, %arg13: memref<1x32xf32, #tpu.memory_space<vmem>>, %arg14: memref<32x128xbf16, #tpu.memory_space<vmem>>, %arg15: memref<1x128xf32, #tpu.memory_space<vmem>>, %arg16: memref<128x32xbf16, #tpu.memory_space<vmem>>, %arg17: memref<1x32xf32, #tpu.memory_space<vmem>>, %arg18: memref<6x32xf32, #tpu.memory_space<vmem>>, %arg19: memref<64x32xf32, #tpu.memory_space<vmem>>) attributes {dimension_semantics = [#tpu.dimension_semantics<parallel>], iteration_bounds = array<i64: 2>, scalar_prefetch = 0 : i64, scratch_operands = 0 : i64, tpu.core_type = #tpu.core_type<tc>, window_params = [{transform_indices = @transform_0, window_bounds = array<i64: 64, 32>}, {pipeline_mode = #tpu.pipeline_mode<synchronous>, transform_indices = @transform_1, window_bounds = array<i64: 64, 32>}, {transform_indices = @transform_2, window_bounds = array<i64: 64, 32>}, {pipeline_mode = #tpu.pipeline_mode<synchronous>, transform_indices = @transform_3, window_bounds = array<i64: 32, 96>}, {pipeline_mode = #tpu.pipeline_mode<synchronous>, transform_indices = @transform_4, window_bounds = array<i64: 1, 96>}, {pipeline_mode = #tpu.pipeline_mode<synchronous>, transform_indices = @transform_5, window_bounds = array<i64: 32, 32>}, {pipeline_mode = #tpu.pipeline_mode<synchronous>, transform_indices = @transform_6, window_bounds = array<i64: 1, 32>}, {pipeline_mode = #tpu.pipeline_mode<synchronous>, transform_indices = @transform_7, window_bounds = array<i64: 32, 32>}, {pipeline_mode = #tpu.pipeline_mode<synchronous>, transform_indices = @transform_8, window_bounds = array<i64: 1, 32>}, {pipeline_mode = #tpu.pipeline_mode<synchronous>, transform_indices = @transform_9, window_bounds = array<i64: 32, 64>}, {pipeline_mode = #tpu.pipeline_mode<synchronous>, transform_indices = @transform_10, window_bounds = array<i64: 1, 64>}, {pipeline_mode = #tpu.pipeline_mode<synchronous>, transform_indices = @transform_11, window_bounds = array<i64: 32, 32>}, {pipeline_mode = #tpu.pipeline_mode<synchronous>, transform_indices = @transform_12, window_bounds = array<i64: 1, 32>}, {pipeline_mode = #tpu.pipeline_mode<synchronous>, transform_indices = @transform_13, window_bounds = array<i64: 32, 128>}, {pipeline_mode = #tpu.pipeline_mode<synchronous>, transform_indices = @transform_14, window_bounds = array<i64: 1, 128>}, {pipeline_mode = #tpu.pipeline_mode<synchronous>, transform_indices = @transform_15, window_bounds = array<i64: 128, 32>}, {pipeline_mode = #tpu.pipeline_mode<synchronous>, transform_indices = @transform_16, window_bounds = array<i64: 1, 32>}, {pipeline_mode = #tpu.pipeline_mode<synchronous>, transform_indices = @transform_17, window_bounds = array<i64: 6, 32>}, {transform_indices = @transform_18, window_bounds = array<i64: 64, 32>}]} {
    %c0 = arith.constant 0 : index
    %c0_0 = arith.constant 0 : index
    %0 = vector.load %arg18[%c0, %c0_0] : memref<6x32xf32, #tpu.memory_space<vmem>>, vector<6x32xf32>
    %c0_1 = arith.constant 0 : index
    %c0_2 = arith.constant 0 : index
    %1 = vector.load %arg1[%c0_1, %c0_2] : memref<64x32xf32, #tpu.memory_space<vmem>>, vector<64x32xf32>
    %c0_3 = arith.constant 0 : index
    %c0_4 = arith.constant 0 : index
    %2 = vector.load %arg2[%c0_3, %c0_4] : memref<64x32xf32, #tpu.memory_space<vmem>>, vector<64x32xf32>
    %3 = arith.addf %1, %2 : vector<64x32xf32>
    %c0_5 = arith.constant 0 : index
    %c0_6 = arith.constant 0 : index
    %4 = vector.load %arg4[%c0_5, %c0_6] : memref<32x96xbf16, #tpu.memory_space<vmem>>, vector<32x96xbf16>
    %5 = arith.truncf %3 : vector<64x32xf32> to vector<64x32xbf16>
    %cst = arith.constant dense<0.000000e+00> : vector<64x96xf32>
    %6 = tpu.matmul %5, %4, %cst {dimension_numbers = #tpu.dot_dimension_numbers<[1], [0], [0], [1], [0, 0, 1, 1], [], []>} : vector<64x32xbf16>, vector<32x96xbf16>, vector<64x96xf32> -> vector<64x96xf32>
    %c0_7 = arith.constant 0 : index
    %c0_8 = arith.constant 0 : index
    %7 = vector.load %arg5[%c0_7, %c0_8] : memref<1x96xf32, #tpu.memory_space<vmem>>, vector<1x96xf32>
    %8 = vector.broadcast %7 : vector<1x96xf32> to vector<64x96xf32>
    %9 = arith.addf %6, %8 : vector<64x96xf32>
    %10 = vector.extract_strided_slice %9 {offsets = [0, 0], sizes = [64, 8], strides = [1, 1]} : vector<64x96xf32> to vector<64x8xf32>
    %11 = vector.extract_strided_slice %9 {offsets = [0, 8], sizes = [64, 8], strides = [1, 1]} : vector<64x96xf32> to vector<64x8xf32>
    %12 = vector.extract_strided_slice %9 {offsets = [0, 16], sizes = [64, 8], strides = [1, 1]} : vector<64x96xf32> to vector<64x8xf32>
    %13 = vector.extract_strided_slice %9 {offsets = [0, 24], sizes = [64, 8], strides = [1, 1]} : vector<64x96xf32> to vector<64x8xf32>
    %14 = vector.shape_cast %10 : vector<64x8xf32> to vector<1x64x8xf32>
    %15 = vector.shape_cast %11 : vector<64x8xf32> to vector<1x64x8xf32>
    %16 = vector.shape_cast %12 : vector<64x8xf32> to vector<1x64x8xf32>
    %17 = vector.shape_cast %13 : vector<64x8xf32> to vector<1x64x8xf32>
    %18 = tpu.concatenate %14, %15, %16, %17 in 0 : vector<1x64x8xf32>, vector<1x64x8xf32>, vector<1x64x8xf32>, vector<1x64x8xf32> -> vector<4x64x8xf32>
    %19 = vector.extract_strided_slice %9 {offsets = [0, 32], sizes = [64, 8], strides = [1, 1]} : vector<64x96xf32> to vector<64x8xf32>
    %20 = vector.extract_strided_slice %9 {offsets = [0, 40], sizes = [64, 8], strides = [1, 1]} : vector<64x96xf32> to vector<64x8xf32>
    %21 = vector.extract_strided_slice %9 {offsets = [0, 48], sizes = [64, 8], strides = [1, 1]} : vector<64x96xf32> to vector<64x8xf32>
    %22 = vector.extract_strided_slice %9 {offsets = [0, 56], sizes = [64, 8], strides = [1, 1]} : vector<64x96xf32> to vector<64x8xf32>
    %23 = vector.shape_cast %19 : vector<64x8xf32> to vector<1x64x8xf32>
    %24 = vector.shape_cast %20 : vector<64x8xf32> to vector<1x64x8xf32>
    %25 = vector.shape_cast %21 : vector<64x8xf32> to vector<1x64x8xf32>
    %26 = vector.shape_cast %22 : vector<64x8xf32> to vector<1x64x8xf32>
    %27 = tpu.concatenate %23, %24, %25, %26 in 0 : vector<1x64x8xf32>, vector<1x64x8xf32>, vector<1x64x8xf32>, vector<1x64x8xf32> -> vector<4x64x8xf32>
    %28 = vector.extract_strided_slice %9 {offsets = [0, 64], sizes = [64, 8], strides = [1, 1]} : vector<64x96xf32> to vector<64x8xf32>
    %29 = vector.extract_strided_slice %9 {offsets = [0, 72], sizes = [64, 8], strides = [1, 1]} : vector<64x96xf32> to vector<64x8xf32>
    %30 = vector.extract_strided_slice %9 {offsets = [0, 80], sizes = [64, 8], strides = [1, 1]} : vector<64x96xf32> to vector<64x8xf32>
    %31 = vector.extract_strided_slice %9 {offsets = [0, 88], sizes = [64, 8], strides = [1, 1]} : vector<64x96xf32> to vector<64x8xf32>
    %32 = vector.shape_cast %28 : vector<64x8xf32> to vector<1x64x8xf32>
    %33 = vector.shape_cast %29 : vector<64x8xf32> to vector<1x64x8xf32>
    %34 = vector.shape_cast %30 : vector<64x8xf32> to vector<1x64x8xf32>
    %35 = vector.shape_cast %31 : vector<64x8xf32> to vector<1x64x8xf32>
    %36 = tpu.concatenate %32, %33, %34, %35 in 0 : vector<1x64x8xf32>, vector<1x64x8xf32>, vector<1x64x8xf32>, vector<1x64x8xf32> -> vector<4x64x8xf32>
    %c0_9 = arith.constant 0 : index
    %c0_10 = arith.constant 0 : index
    %37 = vector.load %arg6[%c0_9, %c0_10] : memref<32x32xbf16, #tpu.memory_space<vmem>>, vector<32x32xbf16>
    %c0_11 = arith.constant 0 : index
    %c0_12 = arith.constant 0 : index
    %38 = vector.load %arg7[%c0_11, %c0_12] : memref<1x32xf32, #tpu.memory_space<vmem>>, vector<1x32xf32>
    %39 = arith.truncf %18 : vector<4x64x8xf32> to vector<4x64x8xbf16>
    %40 = arith.truncf %27 : vector<4x64x8xf32> to vector<4x64x8xbf16>
    %cst_13 = arith.constant dense<0.000000e+00> : vector<4x64x64xf32>
    %41 = tpu.matmul %39, %40, %cst_13 {dimension_numbers = #tpu.dot_dimension_numbers<[2], [2], [1], [1], [0, 0, 0, 1, 1, 1], [0], [0]>} : vector<4x64x8xbf16>, vector<4x64x8xbf16>, vector<4x64x64xf32> -> vector<4x64x64xf32>
    %cst_14 = arith.constant dense<0xFF800000> : vector<4x64xf32>
    %42 = vector.multi_reduction <maximumf>, %41, %cst_14 [2] : vector<4x64x64xf32> to vector<4x64xf32>
    %43 = vector.shape_cast %42 : vector<4x64xf32> to vector<4x64x1xf32>
    %44 = vector.broadcast %43 : vector<4x64x1xf32> to vector<4x64x64xf32>
    %45 = arith.subf %41, %44 : vector<4x64x64xf32>
    %46 = math.exp %45 : vector<4x64x64xf32>
    %cst_15 = arith.constant dense<0.000000e+00> : vector<4x64xf32>
    %47 = vector.multi_reduction <add>, %46, %cst_15 [2] : vector<4x64x64xf32> to vector<4x64xf32>
    %48 = vector.shape_cast %47 : vector<4x64xf32> to vector<4x64x1xf32>
    %49 = tpu.reciprocal %48 {approx = true} : vector<4x64x1xf32> -> vector<4x64x1xf32>
    %50 = vector.broadcast %49 : vector<4x64x1xf32> to vector<4x64x64xf32>
    %51 = arith.mulf %46, %50 : vector<4x64x64xf32>
    %52 = arith.truncf %51 : vector<4x64x64xf32> to vector<4x64x64xbf16>
    %53 = arith.truncf %36 : vector<4x64x8xf32> to vector<4x64x8xbf16>
    %cst_16 = arith.constant dense<0.000000e+00> : vector<4x64x8xf32>
    %54 = tpu.matmul %52, %53, %cst_16 {dimension_numbers = #tpu.dot_dimension_numbers<[2], [1], [1], [2], [0, 0, 0, 1, 1, 2], [0], [0]>} : vector<4x64x64xbf16>, vector<4x64x8xbf16>, vector<4x64x8xf32> -> vector<4x64x8xf32>
    %55 = vector.extract_strided_slice %54 {offsets = [0, 0, 0], sizes = [1, 64, 8], strides = [1, 1, 1]} : vector<4x64x8xf32> to vector<1x64x8xf32>
    %56 = vector.shape_cast %55 : vector<1x64x8xf32> to vector<64x8xf32>
    %57 = vector.extract_strided_slice %54 {offsets = [1, 0, 0], sizes = [1, 64, 8], strides = [1, 1, 1]} : vector<4x64x8xf32> to vector<1x64x8xf32>
    %58 = vector.shape_cast %57 : vector<1x64x8xf32> to vector<64x8xf32>
    %59 = vector.extract_strided_slice %54 {offsets = [2, 0, 0], sizes = [1, 64, 8], strides = [1, 1, 1]} : vector<4x64x8xf32> to vector<1x64x8xf32>
    %60 = vector.shape_cast %59 : vector<1x64x8xf32> to vector<64x8xf32>
    %61 = vector.extract_strided_slice %54 {offsets = [3, 0, 0], sizes = [1, 64, 8], strides = [1, 1, 1]} : vector<4x64x8xf32> to vector<1x64x8xf32>
    %62 = vector.shape_cast %61 : vector<1x64x8xf32> to vector<64x8xf32>
    %63 = tpu.concatenate %56, %58, %60, %62 in 1 : vector<64x8xf32>, vector<64x8xf32>, vector<64x8xf32>, vector<64x8xf32> -> vector<64x32xf32>
    %64 = arith.truncf %63 : vector<64x32xf32> to vector<64x32xbf16>
    %cst_17 = arith.constant dense<0.000000e+00> : vector<64x32xf32>
    %65 = tpu.matmul %64, %37, %cst_17 {dimension_numbers = #tpu.dot_dimension_numbers<[1], [0], [0], [1], [0, 0, 1, 1], [], []>} : vector<64x32xbf16>, vector<32x32xbf16>, vector<64x32xf32> -> vector<64x32xf32>
    %66 = vector.broadcast %38 : vector<1x32xf32> to vector<64x32xf32>
    %67 = arith.addf %65, %66 : vector<64x32xf32>
    %68 = arith.addf %3, %67 : vector<64x32xf32>
    %69 = vector.extract_strided_slice %0 {offsets = [0, 0], sizes = [1, 32], strides = [1, 1]} : vector<6x32xf32> to vector<1x32xf32>
    %70 = vector.extract_strided_slice %0 {offsets = [1, 0], sizes = [1, 32], strides = [1, 1]} : vector<6x32xf32> to vector<1x32xf32>
    %cst_18 = arith.constant dense<0.000000e+00> : vector<64xf32>
    %71 = vector.multi_reduction <add>, %68, %cst_18 [1] : vector<64x32xf32> to vector<64xf32>
    %72 = vector.shape_cast %71 : vector<64xf32> to vector<64x1xf32>
    %cst_19 = arith.constant 3.200000e+01 : f32
    %73 = vector.broadcast %cst_19 : f32 to vector<64x1xf32>
    %74 = arith.divf %72, %73 : vector<64x1xf32>
    %75 = vector.broadcast %74 : vector<64x1xf32> to vector<64x32xf32>
    %76 = arith.subf %68, %75 : vector<64x32xf32>
    %77 = arith.mulf %76, %76 : vector<64x32xf32>
    %cst_20 = arith.constant dense<0.000000e+00> : vector<64xf32>
    %78 = vector.multi_reduction <add>, %77, %cst_20 [1] : vector<64x32xf32> to vector<64xf32>
    %79 = vector.shape_cast %78 : vector<64xf32> to vector<64x1xf32>
    %cst_21 = arith.constant 3.200000e+01 : f32
    %80 = vector.broadcast %cst_21 : f32 to vector<64x1xf32>
    %81 = arith.divf %79, %80 : vector<64x1xf32>
    %cst_22 = arith.constant 9.99999997E-7 : f32
    %82 = vector.broadcast %cst_22 : f32 to vector<64x1xf32>
    %83 = arith.addf %81, %82 : vector<64x1xf32>
    %84 = math.rsqrt %83 : vector<64x1xf32>
    %85 = vector.broadcast %84 : vector<64x1xf32> to vector<64x32xf32>
    %86 = arith.mulf %76, %85 : vector<64x32xf32>
    %87 = vector.broadcast %69 : vector<1x32xf32> to vector<64x32xf32>
    %88 = arith.mulf %86, %87 : vector<64x32xf32>
    %89 = vector.broadcast %70 : vector<1x32xf32> to vector<64x32xf32>
    %90 = arith.addf %88, %89 : vector<64x32xf32>
    %c0_23 = arith.constant 0 : index
    %c0_24 = arith.constant 0 : index
    %91 = vector.load %arg3[%c0_23, %c0_24] : memref<64x32xbf16, #tpu.memory_space<vmem>>, vector<64x32xbf16>
    %c0_25 = arith.constant 0 : index
    %c0_26 = arith.constant 0 : index
    %92 = vector.load %arg10[%c0_25, %c0_26] : memref<32x64xbf16, #tpu.memory_space<vmem>>, vector<32x64xbf16>
    %cst_27 = arith.constant dense<0.000000e+00> : vector<64x64xf32>
    %93 = tpu.matmul %91, %92, %cst_27 {dimension_numbers = #tpu.dot_dimension_numbers<[1], [0], [0], [1], [0, 0, 1, 1], [], []>} : vector<64x32xbf16>, vector<32x64xbf16>, vector<64x64xf32> -> vector<64x64xf32>
    %c0_28 = arith.constant 0 : index
    %c0_29 = arith.constant 0 : index
    %94 = vector.load %arg11[%c0_28, %c0_29] : memref<1x64xf32, #tpu.memory_space<vmem>>, vector<1x64xf32>
    %95 = vector.broadcast %94 : vector<1x64xf32> to vector<64x64xf32>
    %96 = arith.addf %93, %95 : vector<64x64xf32>
    %c0_30 = arith.constant 0 : index
    %c0_31 = arith.constant 0 : index
    %97 = vector.load %arg8[%c0_30, %c0_31] : memref<32x32xbf16, #tpu.memory_space<vmem>>, vector<32x32xbf16>
    %98 = arith.truncf %90 : vector<64x32xf32> to vector<64x32xbf16>
    %cst_32 = arith.constant dense<0.000000e+00> : vector<64x32xf32>
    %99 = tpu.matmul %98, %97, %cst_32 {dimension_numbers = #tpu.dot_dimension_numbers<[1], [0], [0], [1], [0, 0, 1, 1], [], []>} : vector<64x32xbf16>, vector<32x32xbf16>, vector<64x32xf32> -> vector<64x32xf32>
    %c0_33 = arith.constant 0 : index
    %c0_34 = arith.constant 0 : index
    %100 = vector.load %arg9[%c0_33, %c0_34] : memref<1x32xf32, #tpu.memory_space<vmem>>, vector<1x32xf32>
    %101 = vector.broadcast %100 : vector<1x32xf32> to vector<64x32xf32>
    %102 = arith.addf %99, %101 : vector<64x32xf32>
    %103 = vector.extract_strided_slice %102 {offsets = [0, 0], sizes = [64, 8], strides = [1, 1]} : vector<64x32xf32> to vector<64x8xf32>
    %104 = vector.extract_strided_slice %102 {offsets = [0, 8], sizes = [64, 8], strides = [1, 1]} : vector<64x32xf32> to vector<64x8xf32>
    %105 = vector.extract_strided_slice %102 {offsets = [0, 16], sizes = [64, 8], strides = [1, 1]} : vector<64x32xf32> to vector<64x8xf32>
    %106 = vector.extract_strided_slice %102 {offsets = [0, 24], sizes = [64, 8], strides = [1, 1]} : vector<64x32xf32> to vector<64x8xf32>
    %107 = vector.shape_cast %103 : vector<64x8xf32> to vector<1x64x8xf32>
    %108 = vector.shape_cast %104 : vector<64x8xf32> to vector<1x64x8xf32>
    %109 = vector.shape_cast %105 : vector<64x8xf32> to vector<1x64x8xf32>
    %110 = vector.shape_cast %106 : vector<64x8xf32> to vector<1x64x8xf32>
    %111 = tpu.concatenate %107, %108, %109, %110 in 0 : vector<1x64x8xf32>, vector<1x64x8xf32>, vector<1x64x8xf32>, vector<1x64x8xf32> -> vector<4x64x8xf32>
    %112 = vector.extract_strided_slice %96 {offsets = [0, 0], sizes = [64, 8], strides = [1, 1]} : vector<64x64xf32> to vector<64x8xf32>
    %113 = vector.extract_strided_slice %96 {offsets = [0, 8], sizes = [64, 8], strides = [1, 1]} : vector<64x64xf32> to vector<64x8xf32>
    %114 = vector.extract_strided_slice %96 {offsets = [0, 16], sizes = [64, 8], strides = [1, 1]} : vector<64x64xf32> to vector<64x8xf32>
    %115 = vector.extract_strided_slice %96 {offsets = [0, 24], sizes = [64, 8], strides = [1, 1]} : vector<64x64xf32> to vector<64x8xf32>
    %116 = vector.shape_cast %112 : vector<64x8xf32> to vector<1x64x8xf32>
    %117 = vector.shape_cast %113 : vector<64x8xf32> to vector<1x64x8xf32>
    %118 = vector.shape_cast %114 : vector<64x8xf32> to vector<1x64x8xf32>
    %119 = vector.shape_cast %115 : vector<64x8xf32> to vector<1x64x8xf32>
    %120 = tpu.concatenate %116, %117, %118, %119 in 0 : vector<1x64x8xf32>, vector<1x64x8xf32>, vector<1x64x8xf32>, vector<1x64x8xf32> -> vector<4x64x8xf32>
    %121 = vector.extract_strided_slice %96 {offsets = [0, 32], sizes = [64, 8], strides = [1, 1]} : vector<64x64xf32> to vector<64x8xf32>
    %122 = vector.extract_strided_slice %96 {offsets = [0, 40], sizes = [64, 8], strides = [1, 1]} : vector<64x64xf32> to vector<64x8xf32>
    %123 = vector.extract_strided_slice %96 {offsets = [0, 48], sizes = [64, 8], strides = [1, 1]} : vector<64x64xf32> to vector<64x8xf32>
    %124 = vector.extract_strided_slice %96 {offsets = [0, 56], sizes = [64, 8], strides = [1, 1]} : vector<64x64xf32> to vector<64x8xf32>
    %125 = vector.shape_cast %121 : vector<64x8xf32> to vector<1x64x8xf32>
    %126 = vector.shape_cast %122 : vector<64x8xf32> to vector<1x64x8xf32>
    %127 = vector.shape_cast %123 : vector<64x8xf32> to vector<1x64x8xf32>
    %128 = vector.shape_cast %124 : vector<64x8xf32> to vector<1x64x8xf32>
    %129 = tpu.concatenate %125, %126, %127, %128 in 0 : vector<1x64x8xf32>, vector<1x64x8xf32>, vector<1x64x8xf32>, vector<1x64x8xf32> -> vector<4x64x8xf32>
    %c0_35 = arith.constant 0 : index
    %c0_36 = arith.constant 0 : index
    %130 = vector.load %arg12[%c0_35, %c0_36] : memref<32x32xbf16, #tpu.memory_space<vmem>>, vector<32x32xbf16>
    %c0_37 = arith.constant 0 : index
    %c0_38 = arith.constant 0 : index
    %131 = vector.load %arg13[%c0_37, %c0_38] : memref<1x32xf32, #tpu.memory_space<vmem>>, vector<1x32xf32>
    %132 = arith.truncf %111 : vector<4x64x8xf32> to vector<4x64x8xbf16>
    %133 = arith.truncf %120 : vector<4x64x8xf32> to vector<4x64x8xbf16>
    %cst_39 = arith.constant dense<0.000000e+00> : vector<4x64x64xf32>
    %134 = tpu.matmul %132, %133, %cst_39 {dimension_numbers = #tpu.dot_dimension_numbers<[2], [2], [1], [1], [0, 0, 0, 1, 1, 1], [0], [0]>} : vector<4x64x8xbf16>, vector<4x64x8xbf16>, vector<4x64x64xf32> -> vector<4x64x64xf32>
    %cst_40 = arith.constant dense<0xFF800000> : vector<4x64xf32>
    %135 = vector.multi_reduction <maximumf>, %134, %cst_40 [2] : vector<4x64x64xf32> to vector<4x64xf32>
    %136 = vector.shape_cast %135 : vector<4x64xf32> to vector<4x64x1xf32>
    %137 = vector.broadcast %136 : vector<4x64x1xf32> to vector<4x64x64xf32>
    %138 = arith.subf %134, %137 : vector<4x64x64xf32>
    %139 = math.exp %138 : vector<4x64x64xf32>
    %cst_41 = arith.constant dense<0.000000e+00> : vector<4x64xf32>
    %140 = vector.multi_reduction <add>, %139, %cst_41 [2] : vector<4x64x64xf32> to vector<4x64xf32>
    %141 = vector.shape_cast %140 : vector<4x64xf32> to vector<4x64x1xf32>
    %142 = tpu.reciprocal %141 {approx = true} : vector<4x64x1xf32> -> vector<4x64x1xf32>
    %143 = vector.broadcast %142 : vector<4x64x1xf32> to vector<4x64x64xf32>
    %144 = arith.mulf %139, %143 : vector<4x64x64xf32>
    %145 = arith.truncf %144 : vector<4x64x64xf32> to vector<4x64x64xbf16>
    %146 = arith.truncf %129 : vector<4x64x8xf32> to vector<4x64x8xbf16>
    %cst_42 = arith.constant dense<0.000000e+00> : vector<4x64x8xf32>
    %147 = tpu.matmul %145, %146, %cst_42 {dimension_numbers = #tpu.dot_dimension_numbers<[2], [1], [1], [2], [0, 0, 0, 1, 1, 2], [0], [0]>} : vector<4x64x64xbf16>, vector<4x64x8xbf16>, vector<4x64x8xf32> -> vector<4x64x8xf32>
    %148 = vector.extract_strided_slice %147 {offsets = [0, 0, 0], sizes = [1, 64, 8], strides = [1, 1, 1]} : vector<4x64x8xf32> to vector<1x64x8xf32>
    %149 = vector.shape_cast %148 : vector<1x64x8xf32> to vector<64x8xf32>
    %150 = vector.extract_strided_slice %147 {offsets = [1, 0, 0], sizes = [1, 64, 8], strides = [1, 1, 1]} : vector<4x64x8xf32> to vector<1x64x8xf32>
    %151 = vector.shape_cast %150 : vector<1x64x8xf32> to vector<64x8xf32>
    %152 = vector.extract_strided_slice %147 {offsets = [2, 0, 0], sizes = [1, 64, 8], strides = [1, 1, 1]} : vector<4x64x8xf32> to vector<1x64x8xf32>
    %153 = vector.shape_cast %152 : vector<1x64x8xf32> to vector<64x8xf32>
    %154 = vector.extract_strided_slice %147 {offsets = [3, 0, 0], sizes = [1, 64, 8], strides = [1, 1, 1]} : vector<4x64x8xf32> to vector<1x64x8xf32>
    %155 = vector.shape_cast %154 : vector<1x64x8xf32> to vector<64x8xf32>
    %156 = tpu.concatenate %149, %151, %153, %155 in 1 : vector<64x8xf32>, vector<64x8xf32>, vector<64x8xf32>, vector<64x8xf32> -> vector<64x32xf32>
    %157 = arith.truncf %156 : vector<64x32xf32> to vector<64x32xbf16>
    %cst_43 = arith.constant dense<0.000000e+00> : vector<64x32xf32>
    %158 = tpu.matmul %157, %130, %cst_43 {dimension_numbers = #tpu.dot_dimension_numbers<[1], [0], [0], [1], [0, 0, 1, 1], [], []>} : vector<64x32xbf16>, vector<32x32xbf16>, vector<64x32xf32> -> vector<64x32xf32>
    %159 = vector.broadcast %131 : vector<1x32xf32> to vector<64x32xf32>
    %160 = arith.addf %158, %159 : vector<64x32xf32>
    %161 = arith.addf %90, %160 : vector<64x32xf32>
    %162 = vector.extract_strided_slice %0 {offsets = [2, 0], sizes = [1, 32], strides = [1, 1]} : vector<6x32xf32> to vector<1x32xf32>
    %163 = vector.extract_strided_slice %0 {offsets = [3, 0], sizes = [1, 32], strides = [1, 1]} : vector<6x32xf32> to vector<1x32xf32>
    %cst_44 = arith.constant dense<0.000000e+00> : vector<64xf32>
    %164 = vector.multi_reduction <add>, %161, %cst_44 [1] : vector<64x32xf32> to vector<64xf32>
    %165 = vector.shape_cast %164 : vector<64xf32> to vector<64x1xf32>
    %cst_45 = arith.constant 3.200000e+01 : f32
    %166 = vector.broadcast %cst_45 : f32 to vector<64x1xf32>
    %167 = arith.divf %165, %166 : vector<64x1xf32>
    %168 = vector.broadcast %167 : vector<64x1xf32> to vector<64x32xf32>
    %169 = arith.subf %161, %168 : vector<64x32xf32>
    %170 = arith.mulf %169, %169 : vector<64x32xf32>
    %cst_46 = arith.constant dense<0.000000e+00> : vector<64xf32>
    %171 = vector.multi_reduction <add>, %170, %cst_46 [1] : vector<64x32xf32> to vector<64xf32>
    %172 = vector.shape_cast %171 : vector<64xf32> to vector<64x1xf32>
    %cst_47 = arith.constant 3.200000e+01 : f32
    %173 = vector.broadcast %cst_47 : f32 to vector<64x1xf32>
    %174 = arith.divf %172, %173 : vector<64x1xf32>
    %cst_48 = arith.constant 9.99999997E-7 : f32
    %175 = vector.broadcast %cst_48 : f32 to vector<64x1xf32>
    %176 = arith.addf %174, %175 : vector<64x1xf32>
    %177 = math.rsqrt %176 : vector<64x1xf32>
    %178 = vector.broadcast %177 : vector<64x1xf32> to vector<64x32xf32>
    %179 = arith.mulf %169, %178 : vector<64x32xf32>
    %180 = vector.broadcast %162 : vector<1x32xf32> to vector<64x32xf32>
    %181 = arith.mulf %179, %180 : vector<64x32xf32>
    %182 = vector.broadcast %163 : vector<1x32xf32> to vector<64x32xf32>
    %183 = arith.addf %181, %182 : vector<64x32xf32>
    %c0_49 = arith.constant 0 : index
    %c0_50 = arith.constant 0 : index
    %184 = vector.load %arg14[%c0_49, %c0_50] : memref<32x128xbf16, #tpu.memory_space<vmem>>, vector<32x128xbf16>
    %185 = arith.truncf %183 : vector<64x32xf32> to vector<64x32xbf16>
    %cst_51 = arith.constant dense<0.000000e+00> : vector<64x128xf32>
    %186 = tpu.matmul %185, %184, %cst_51 {dimension_numbers = #tpu.dot_dimension_numbers<[1], [0], [0], [1], [0, 0, 1, 1], [], []>} : vector<64x32xbf16>, vector<32x128xbf16>, vector<64x128xf32> -> vector<64x128xf32>
    %c0_52 = arith.constant 0 : index
    %c0_53 = arith.constant 0 : index
    %187 = vector.load %arg15[%c0_52, %c0_53] : memref<1x128xf32, #tpu.memory_space<vmem>>, vector<1x128xf32>
    %188 = vector.broadcast %187 : vector<1x128xf32> to vector<64x128xf32>
    %189 = arith.addf %186, %188 : vector<64x128xf32>
    %cst_54 = arith.constant 0.000000e+00 : f32
    %190 = vector.broadcast %cst_54 : f32 to vector<64x128xf32>
    %191 = arith.maximumf %189, %190 : vector<64x128xf32>
    %c0_55 = arith.constant 0 : index
    %c0_56 = arith.constant 0 : index
    %192 = vector.load %arg16[%c0_55, %c0_56] : memref<128x32xbf16, #tpu.memory_space<vmem>>, vector<128x32xbf16>
    %193 = arith.truncf %191 : vector<64x128xf32> to vector<64x128xbf16>
    %cst_57 = arith.constant dense<0.000000e+00> : vector<64x32xf32>
    %194 = tpu.matmul %193, %192, %cst_57 {dimension_numbers = #tpu.dot_dimension_numbers<[1], [0], [0], [1], [0, 0, 1, 1], [], []>} : vector<64x128xbf16>, vector<128x32xbf16>, vector<64x32xf32> -> vector<64x32xf32>
    %c0_58 = arith.constant 0 : index
    %c0_59 = arith.constant 0 : index
    %195 = vector.load %arg17[%c0_58, %c0_59] : memref<1x32xf32, #tpu.memory_space<vmem>>, vector<1x32xf32>
    %196 = vector.broadcast %195 : vector<1x32xf32> to vector<64x32xf32>
    %197 = arith.addf %194, %196 : vector<64x32xf32>
    %198 = arith.addf %183, %197 : vector<64x32xf32>
    %199 = vector.extract_strided_slice %0 {offsets = [4, 0], sizes = [1, 32], strides = [1, 1]} : vector<6x32xf32> to vector<1x32xf32>
    %200 = vector.extract_strided_slice %0 {offsets = [5, 0], sizes = [1, 32], strides = [1, 1]} : vector<6x32xf32> to vector<1x32xf32>
    %cst_60 = arith.constant dense<0.000000e+00> : vector<64xf32>
    %201 = vector.multi_reduction <add>, %198, %cst_60 [1] : vector<64x32xf32> to vector<64xf32>
    %202 = vector.shape_cast %201 : vector<64xf32> to vector<64x1xf32>
    %cst_61 = arith.constant 3.200000e+01 : f32
    %203 = vector.broadcast %cst_61 : f32 to vector<64x1xf32>
    %204 = arith.divf %202, %203 : vector<64x1xf32>
    %205 = vector.broadcast %204 : vector<64x1xf32> to vector<64x32xf32>
    %206 = arith.subf %198, %205 : vector<64x32xf32>
    %207 = arith.mulf %206, %206 : vector<64x32xf32>
    %cst_62 = arith.constant dense<0.000000e+00> : vector<64xf32>
    %208 = vector.multi_reduction <add>, %207, %cst_62 [1] : vector<64x32xf32> to vector<64xf32>
    %209 = vector.shape_cast %208 : vector<64xf32> to vector<64x1xf32>
    %cst_63 = arith.constant 3.200000e+01 : f32
    %210 = vector.broadcast %cst_63 : f32 to vector<64x1xf32>
    %211 = arith.divf %209, %210 : vector<64x1xf32>
    %cst_64 = arith.constant 9.99999997E-7 : f32
    %212 = vector.broadcast %cst_64 : f32 to vector<64x1xf32>
    %213 = arith.addf %211, %212 : vector<64x1xf32>
    %214 = math.rsqrt %213 : vector<64x1xf32>
    %215 = vector.broadcast %214 : vector<64x1xf32> to vector<64x32xf32>
    %216 = arith.mulf %206, %215 : vector<64x32xf32>
    %217 = vector.broadcast %199 : vector<1x32xf32> to vector<64x32xf32>
    %218 = arith.mulf %216, %217 : vector<64x32xf32>
    %219 = vector.broadcast %200 : vector<1x32xf32> to vector<64x32xf32>
    %220 = arith.addf %218, %219 : vector<64x32xf32>
    %c0_65 = arith.constant 0 : index
    %c0_66 = arith.constant 0 : index
    %221 = vector.load %arg19[%c0_65, %c0_66] : memref<64x32xf32, #tpu.memory_space<vmem>>, vector<64x32xf32>
    tpu.vector_store %arg19[%c0_65, %c0_66], %220 {strides = array<i32>} : memref<64x32xf32, #tpu.memory_space<vmem>>, vector<64x32xf32>,
    return
  }
  func.func @transform_0(%arg0: i32) -> (i32, i32) {
    %c0_i32 = arith.constant 0 : i32
    %c0_i32_0 = arith.constant 0 : i32
    return %arg0, %c0_i32 : i32, i32
  }
  func.func @transform_1(%arg0: i32) -> (i32, i32) {
    %c0_i32 = arith.constant 0 : i32
    %c0_i32_0 = arith.constant 0 : i32
    %c0_i32_1 = arith.constant 0 : i32
    return %c0_i32, %c0_i32_0 : i32, i32
  }
  func.func @transform_2(%arg0: i32) -> (i32, i32) {
    %c0_i32 = arith.constant 0 : i32
    %c0_i32_0 = arith.constant 0 : i32
    return %arg0, %c0_i32 : i32, i32
  }
  func.func @transform_3(%arg0: i32) -> (i32, i32) {
    %c0_i32 = arith.constant 0 : i32
    %c0_i32_0 = arith.constant 0 : i32
    %c0_i32_1 = arith.constant 0 : i32
    return %c0_i32, %c0_i32_0 : i32, i32
  }
  func.func @transform_4(%arg0: i32) -> (i32, i32) {
    %c0_i32 = arith.constant 0 : i32
    %c0_i32_0 = arith.constant 0 : i32
    %c0_i32_1 = arith.constant 0 : i32
    return %c0_i32, %c0_i32_0 : i32, i32
  }
  func.func @transform_5(%arg0: i32) -> (i32, i32) {
    %c0_i32 = arith.constant 0 : i32
    %c0_i32_0 = arith.constant 0 : i32
    %c0_i32_1 = arith.constant 0 : i32
    return %c0_i32, %c0_i32_0 : i32, i32
  }
  func.func @transform_6(%arg0: i32) -> (i32, i32) {
    %c0_i32 = arith.constant 0 : i32
    %c0_i32_0 = arith.constant 0 : i32
    %c0_i32_1 = arith.constant 0 : i32
    return %c0_i32, %c0_i32_0 : i32, i32
  }
  func.func @transform_7(%arg0: i32) -> (i32, i32) {
    %c0_i32 = arith.constant 0 : i32
    %c0_i32_0 = arith.constant 0 : i32
    %c0_i32_1 = arith.constant 0 : i32
    return %c0_i32, %c0_i32_0 : i32, i32
  }
  func.func @transform_8(%arg0: i32) -> (i32, i32) {
    %c0_i32 = arith.constant 0 : i32
    %c0_i32_0 = arith.constant 0 : i32
    %c0_i32_1 = arith.constant 0 : i32
    return %c0_i32, %c0_i32_0 : i32, i32
  }
  func.func @transform_9(%arg0: i32) -> (i32, i32) {
    %c0_i32 = arith.constant 0 : i32
    %c0_i32_0 = arith.constant 0 : i32
    %c0_i32_1 = arith.constant 0 : i32
    return %c0_i32, %c0_i32_0 : i32, i32
  }
  func.func @transform_10(%arg0: i32) -> (i32, i32) {
    %c0_i32 = arith.constant 0 : i32
    %c0_i32_0 = arith.constant 0 : i32
    %c0_i32_1 = arith.constant 0 : i32
    return %c0_i32, %c0_i32_0 : i32, i32
  }
  func.func @transform_11(%arg0: i32) -> (i32, i32) {
    %c0_i32 = arith.constant 0 : i32
    %c0_i32_0 = arith.constant 0 : i32
    %c0_i32_1 = arith.constant 0 : i32
    return %c0_i32, %c0_i32_0 : i32, i32
  }
  func.func @transform_12(%arg0: i32) -> (i32, i32) {
    %c0_i32 = arith.constant 0 : i32
    %c0_i32_0 = arith.constant 0 : i32
    %c0_i32_1 = arith.constant 0 : i32
    return %c0_i32, %c0_i32_0 : i32, i32
  }
  func.func @transform_13(%arg0: i32) -> (i32, i32) {
    %c0_i32 = arith.constant 0 : i32
    %c0_i32_0 = arith.constant 0 : i32
    %c0_i32_1 = arith.constant 0 : i32
    return %c0_i32, %c0_i32_0 : i32, i32
  }
  func.func @transform_14(%arg0: i32) -> (i32, i32) {
    %c0_i32 = arith.constant 0 : i32
    %c0_i32_0 = arith.constant 0 : i32
    %c0_i32_1 = arith.constant 0 : i32
    return %c0_i32, %c0_i32_0 : i32, i32
  }
  func.func @transform_15(%arg0: i32) -> (i32, i32) {
    %c0_i32 = arith.constant 0 : i32
    %c0_i32_0 = arith.constant 0 : i32
    %c0_i32_1 = arith.constant 0 : i32
    return %c0_i32, %c0_i32_0 : i32, i32
  }
  func.func @transform_16(%arg0: i32) -> (i32, i32) {
    %c0_i32 = arith.constant 0 : i32
    %c0_i32_0 = arith.constant 0 : i32
    %c0_i32_1 = arith.constant 0 : i32
    return %c0_i32, %c0_i32_0 : i32, i32
  }
  func.func @transform_17(%arg0: i32) -> (i32, i32) {
    %c0_i32 = arith.constant 0 : i32
    %c0_i32_0 = arith.constant 0 : i32
    %c0_i32_1 = arith.constant 0 : i32
    return %c0_i32, %c0_i32_0 : i32, i32
  }
  func.func @transform_18(%arg0: i32) -> (i32, i32) {
    %c0_i32 = arith.constant 0 : i32
    %c0_i32_0 = arith.constant 0 : i32
    return %arg0, %c0_i32 : i32, i32
  }
}

</mosaic_0001>

<bundles_post_ra>
// kernel: decoding_module_forward.4
= control target key start
LH: loop header
LB: loop body
LE: loop exit
PB: predicated region body
PF: predicated region fallthrough
CT: control target
= control target key end

     0   :  { %vm97_vm0 = vcmask 261120   ;;  %vm331_vm2 = vcmask 257024   ;;  %s765_s1 = inlined_call_operand.vmem [shape: bf16[32,32], index: 1, kind: input, shape index: {}]   ;;  %s766_s0 = inlined_call_operand.vmem [shape: bf16[128,32], index: 0, kind: input, shape index: {}]   ;;  %s767_s2 = inlined_call_operand.vmem [shape: f32[1,32], index: 2, kind: input, shape index: {}]   ;;  %s768_s3 = inlined_call_operand.vmem [shape: bf16[128,32], index: 3, kind: output, shape index: {0}]   ;;  %s769_s4 = inlined_call_operand.vmem [shape: f32[1,1,32], index: 4, kind: output, shape index: {1}]   ;;  %s770_s5 = inlined_call_operand.vmem [shape: f32[1,1,32], index: 5, kind: output, shape index: {2}]  }
   0x1   :  { %v538_v0 = vld [vmem:[%s765_s1] sm:$0xff]   ;;  %v539_v1 = vld [vmem:[%s765_s1 + $0x8] sm:$0xff]   ;;  %v542_v4 = vld [vmem:[%s766_s0 + $0x10] sm:$0xff]  }
   0x2   :  { %514 = vmatprep.subr.bf16.mxu0 %v538_v0  ;;  %v540_v2 = vld [vmem:[%s766_s0] sm:$0xff]   ;;  %534 = vmatprep.subr.bf16.mxu1 %v538_v0  ;;  %v541_v3 = vld [vmem:[%s766_s0 + $0x8] sm:$0xff]   ;;  %v546_v7 = vld [vmem:[%s766_s0 + $0x30] sm:$0xff]  }
   0x3   :  { %515 = vmatpush3.bf16.msra.mxu0 %v538_v0  ;;  %536 = vmatpush3.bf16.msra.mxu1 %v538_v0  ;;  %v544_v5 = vld [vmem:[%s766_s0 + $0x20] sm:$0xff]   ;;  %v545_v6 = vld [vmem:[%s766_s0 + $0x28] sm:$0xff]   ;;  %v543_v8 = vld [vmem:[%s766_s0 + $0x18] sm:$0xff]  }
   0x4   :  { %516 = vmatprep.subr.bf16.mxu0 %v539_v1  ;;  %518 = vmatprep.mubr.msk.bf16.mxu0 %vm97_vm0, %v540_v2  ;;  %v547_v9 = vld [vmem:[%s766_s0 + $0x38] sm:$0xff]   ;;  %v619_v10 = vld [vmem:[%s767_s2] ss:$0 sm:$0xff] }
   0x5   :  { %535 = vmatprep.subr.bf16.mxu1 %v539_v1  ;;  %526 = vmatprep.mubr.msk.bf16.mxu1 %vm97_vm0, %v544_v5 }
   0x7   :  { %517 = vmatpush3.bf16.msra.mxu0 %v539_v1  ;;  %537 = vmatpush3.bf16.msra.mxu1 %v539_v1 }
   0xa   :  { %519 = vmatmul.mubr.msk.bf16.vlgmr.msra.gmra.mrb[0].mxu0 %vm97_vm0, %v541_v3  ;;  %527 = vmatmul.mubr.msk.bf16.vlgmr.msra.gmra.mrb[0].mxu1 %vm97_vm0, %v545_v6 }
   0xb   :  { %522 = vmatprep.mubr.msk.bf16.mxu0 %vm97_vm0, %v542_v4  ;;  %530 = vmatprep.mubr.msk.bf16.mxu1 %vm97_vm0, %v546_v7 }
  0x12   :  { %523 = vmatmul.mubr.msk.bf16.gmra.mrb[4].mxu0 %vm97_vm0, %v543_v8  ;;  %531 = vmatmul.mubr.msk.bf16.gmra.mrb[4].mxu1 %vm97_vm0, %v547_v9 }
  0xdd   :  { %v520_v11 = vpop.f32.mrb[0].mxu0  ;;  %v528_v12 = vpop.f32.mrb[0].mxu1 }
  0xde   :  { %v165_v13 = vadd.f32 %v520_v11, %v619_v10  ;;  %v156_v14 = vpop.f32.mrb[1].mxu0  ;;  %v188_v15 = vpop.f32.mrb[1].mxu1  ;;  %v197_v22 = vadd.f32 %v528_v12, %v619_v10 }
  0xdf   :  { %v157_v16 = vadd.f32 %v619_v10, %v156_v14  ;;  %v521_v17 = vpop.f32.mrb[2].mxu0  ;;  %v623_v18 = vpop.f32.mrb[2].mxu1  ;;  %v631_v31 = vadd.f32 %v619_v10, %v188_v15 }
  0xe0   :  { %vm221_vm1 = vcmp.gt.f32.partialorder %v165_v13, 0.0  ;;  %v237_v19 = vmul.f32 0.2, %v165_v13  ;;  %v168_v20 = vadd.f32 %v521_v17, %v619_v10  ;;  %v159_v21 = vpop.f32.mrb[3].mxu0  ;;  %v627_v23 = vpop.f32.mrb[3].mxu1  ;;  %vm229_vm5 = vcmp.gt.f32.partialorder %v197_v22, 0.0 }
  0xe1   :  { %vm219_vm3 = vcmp.gt.f32.partialorder %v157_v16, 0.0  ;;  %v235_v24 = vmul.f32 0.2, %v157_v16  ;;  %v160_v27 = vadd.f32 %v619_v10, %v159_v21  ;;  %v245_v39 = vmul.f32 0.2, %v197_v22 }
  0xe2   :  { %v253_v25 = vsel %vm221_vm1, %v165_v13, %v237_v19  ;;  %vm222_vm4 = vcmp.gt.f32.partialorder %v168_v20, 0.0  ;;  %v238_v26 = vmul.f32 0.2, %v168_v20  ;;  %vm227_vm7 = vcmp.gt.f32.partialorder %v631_v31, 0.0 }
  0xe3   :  { %v490_v28 = vpack.c.bf16 %v253_v25, %v253_v25  ;;  %v389_v29 = vmul.f32 %v253_v25, %v253_v25  ;;  %v251_v30 = vsel %vm219_vm3, %v157_v16, %v235_v24  ;;  %v351_v35 = vsel %vm97_vm0, %v253_v25, 0.0 }
  0xe4   :  { %v488_v32 = vpack.c.bf16 %v251_v30, %v251_v30  ;;  %v387_v33 = vmul.f32 %v251_v30, %v251_v30  ;;  %v254_v34 = vsel %vm222_vm4, %v168_v20, %v238_v26  ;;  %v348_v36 = vsel %vm97_vm0, %v251_v30, 0.0 }
  0xe5   :  { %334 = vst.msk [vmem:[%s768_s3 + $0x8] sm:$0xf] %vm331_vm2, %v490_v28  ;;  %v491_v37 = vpack.c.bf16 %v254_v34, %v254_v34  ;;  %v524_v38 = vpop.f32.mrb[4].mxu0  ;;  %v639_v40 = vpop.f32.mrb[4].mxu1  ;;  %v406_v41 = vsel %vm97_vm0, %v389_v29, 0.0  ;;  %vm220_vm6 = vcmp.gt.f32.partialorder %v160_v27, 0.0  ;;  %v390_v48 = vmul.f32 %v254_v34, %v254_v34 }
  0xe6   :  { %332 = vst.msk [vmem:[%s768_s3] sm:$0xf] %vm331_vm2, %v488_v32  ;;  %v236_v42 = vmul.f32 0.2, %v160_v27  ;;  %v181_v43 = vadd.f32 %v524_v38, %v619_v10  ;;  %v172_v44 = vpop.f32.mrb[5].mxu0  ;;  %v647_v45 = vpop.f32.mrb[5].mxu1  ;;  %v261_v63 = vsel %vm229_vm5, %v197_v22, %v245_v39  ;;  %v200_v32 = vadd.f32 %v623_v18, %v619_v10 }
  0xe7   :  { %v403_v46 = vsel %vm97_vm0, %v387_v33, 0.0  ;;  %335 = vst.msk [vmem:[%s768_s3 + $0xc] sm:$0xf] %vm331_vm2, %v491_v37  ;;  %v353_v47 = vsel %vm97_vm0, %v254_v34, 0.0  ;;  %v173_v49 = vadd.f32 %v619_v10, %v172_v44  ;;  %v525_v50 = vpop.f32.mrb[6].mxu0  ;;  %v657_v51 = vpop.f32.mrb[6].mxu1 }
  0xe8   :  { %v252_v52 = vsel %vm220_vm6, %v160_v27, %v236_v42  ;;  %vm225_vm8 = vcmp.gt.f32.partialorder %v181_v43, 0.0  ;;  %v241_v53 = vmul.f32 0.2, %v181_v43  ;;  %v184_v54 = vadd.f32 %v525_v50, %v619_v10  ;;  %v175_v55 = vpop.f32.mrb[7].mxu0  ;;  %v660_v56 = vpop.f32.mrb[7].mxu1 }
  0xe9   :  { %v489_v57 = vpack.c.bf16 %v252_v52, %v252_v52  ;;  %v349_v58 = vsel %vm97_vm0, %v252_v52, 0.0  ;;  %v388_v59 = vmul.f32 %v252_v52, %v252_v52  ;;  %vm223_vm9 = vcmp.gt.f32.partialorder %v173_v49, 0.0 }
  0xea   :  { %v350_v60 = vadd.f32 %v349_v58, %v348_v36  ;;  %v257_v61 = vsel %vm225_vm8, %v181_v43, %v241_v53  ;;  %v239_v62 = vmul.f32 0.2, %v173_v49  ;;  %vm226_vm10 = vcmp.gt.f32.partialorder %v184_v54, 0.0 }
  0xeb   :  { %333 = vst.msk [vmem:[%s768_s3 + $0x4] sm:$0xf] %vm331_vm2, %v489_v57  ;;  %v404_v0 = vsel %vm97_vm0, %v388_v59, 0.0  ;;  %v494_v1 = vpack.c.bf16 %v257_v61, %v257_v61  ;;  %v243_v2 = vmul.f32 0.2, %v631_v31  ;;  %v393_v7 = vmul.f32 %v257_v61, %v257_v61 }
  0xec   :  { %v352_v3 = vadd.f32 %v351_v35, %v350_v60  ;;  %v405_v4 = vadd.f32 %v404_v0, %v403_v46  ;;  %v255_v5 = vsel %vm223_vm9, %v173_v49, %v239_v62  ;;  %v242_v6 = vmul.f32 0.2, %v184_v54 }
  0xed   :  { %338 = vst.msk [vmem:[%s768_s3 + $0x18] sm:$0xf] %vm331_vm2, %v494_v1  ;;  %v492_v8 = vpack.c.bf16 %v255_v5, %v255_v5  ;;  %v355_v9 = vsel %vm97_vm0, %v255_v5, 0.0  ;;  %v391_v11 = vmul.f32 %v255_v5, %v255_v5  ;;  %v176_v15 = vadd.f32 %v619_v10, %v175_v55 }
  0xee   :  { %v407_v12 = vadd.f32 %v406_v41, %v405_v4  ;;  %v354_v13 = vadd.f32 %v353_v47, %v352_v3  ;;  %v258_v14 = vsel %vm226_vm10, %v184_v54, %v242_v6  ;;  %v408_v16 = vsel %vm97_vm0, %v390_v48, 0.0 }
  0xef   :  { %336 = vst.msk [vmem:[%s768_s3 + $0x10] sm:$0xf] %vm331_vm2, %v492_v8  ;;  %v410_v17 = vsel %vm97_vm0, %v391_v11, 0.0  ;;  %v495_v19 = vpack.c.bf16 %v258_v14, %v258_v14  ;;  %v394_v20 = vmul.f32 %v258_v14, %v258_v14  ;;  %vm224_vm11 = vcmp.gt.f32.partialorder %v176_v15, 0.0 }
  0xf0   :  { %v356_v21 = vadd.f32 %v355_v9, %v354_v13  ;;  %v409_v22 = vadd.f32 %v408_v16, %v407_v12  ;;  %v240_v24 = vmul.f32 0.2, %v176_v15  ;;  %v359_v25 = vsel %vm97_vm0, %v257_v61, 0.0 }
  0xf1   :  { %v414_v26 = vsel %vm97_vm0, %v393_v7, 0.0  ;;  %339 = vst.msk [vmem:[%s768_s3 + $0x1c] sm:$0xf] %vm331_vm2, %v495_v19  ;;  %v498_v27 = vpack.c.bf16 %v261_v63, %v261_v63  ;;  %v259_v30 = vsel %vm227_vm7, %v631_v31, %v243_v2  ;;  %v361_v33 = vsel %vm97_vm0, %v258_v14, 0.0 }
  0xf2   :  { %v411_v28 = vadd.f32 %v410_v17, %v409_v22  ;;  %v256_v29 = vsel %vm224_vm11, %v176_v15, %v240_v24  ;;  %v416_v37 = vsel %vm97_vm0, %v394_v20, 0.0  ;;  %v367_v39 = vsel %vm97_vm0, %v261_v63, 0.0 }
  0xf3   :  { %v493_v34 = vpack.c.bf16 %v256_v29, %v256_v29  ;;  %v357_v35 = vsel %vm97_vm0, %v256_v29, 0.0  ;;  %v392_v36 = vmul.f32 %v256_v29, %v256_v29  ;;  %342 = vst.msk [vmem:[%s768_s3 + $0x28] sm:$0xf] %vm331_vm2, %v498_v27  ;;  %v496_v31 = vpack.c.bf16 %v259_v30, %v259_v30 }
  0xf4   :  { %v358_v38 = vadd.f32 %v357_v35, %v356_v21  ;;  %vm230_vm12 = vcmp.gt.f32.partialorder %v200_v32, 0.0  ;;  %v246_v41 = vmul.f32 0.2, %v200_v32  ;;  %v192_v42 = vadd.f32 %v619_v10, %v627_v23 }
  0xf5   :  { %337 = vst.msk [vmem:[%s768_s3 + $0x14] sm:$0xf] %vm331_vm2, %v493_v34  ;;  %v412_v18 = vsel %vm97_vm0, %v392_v36, 0.0  ;;  %340 = vst.msk [vmem:[%s768_s3 + $0x20] sm:$0xf] %vm331_vm2, %v496_v31  ;;  %v395_v46 = vmul.f32 %v259_v30, %v259_v30  ;;  %v213_v47 = vadd.f32 %v639_v40, %v619_v10  ;;  %v397_v48 = vmul.f32 %v261_v63, %v261_v63 }
  0xf6   :  { %v360_v43 = vadd.f32 %v359_v25, %v358_v38  ;;  %v413_v44 = vadd.f32 %v412_v18, %v411_v28  ;;  %v262_v49 = vsel %vm230_vm12, %v200_v32, %v246_v41  ;;  %vm228_vm13 = vcmp.gt.f32.partialorder %v192_v42, 0.0 }
  0xf7   :  { %v244_v50 = vmul.f32 0.2, %v192_v42  ;;  %v499_v54 = vpack.c.bf16 %v262_v49, %v262_v49  ;;  %v205_v23 = vadd.f32 %v619_v10, %v647_v45  ;;  %v363_v55 = vsel %vm97_vm0, %v259_v30, 0.0 }
  0xf8   :  { %v415_v52 = vadd.f32 %v414_v26, %v413_v44  ;;  %v362_v53 = vadd.f32 %v361_v33, %v360_v43  ;;  %vm233_vm14 = vcmp.gt.f32.partialorder %v213_v47, 0.0  ;;  %v249_v58 = vmul.f32 0.2, %v213_v47 }
  0xf9   :  { %v260_v57 = vsel %vm228_vm13, %v192_v42, %v244_v50  ;;  %v418_v61 = vsel %vm97_vm0, %v395_v46, 0.0  ;;  %343 = vst.msk [vmem:[%s768_s3 + $0x2c] sm:$0xf] %vm331_vm2, %v499_v54  ;;  %v398_v62 = vmul.f32 %v262_v49, %v262_v49  ;;  %vm231_vm15 = vcmp.gt.f32.partialorder %v205_v23, 0.0 }
  0xfa   :  { %v364_v59 = vadd.f32 %v363_v55, %v362_v53  ;;  %v417_v60 = vadd.f32 %v416_v37, %v415_v52  ;;  %v497_v40 = vpack.c.bf16 %v260_v57, %v260_v57  ;;  %v365_v63 = vsel %vm97_vm0, %v260_v57, 0.0 }
  0xfb   :  { %v396_v0 = vmul.f32 %v260_v57, %v260_v57  ;;  %v265_v45 = vsel %vm233_vm14, %v213_v47, %v249_v58  ;;  %v422_v4 = vsel %vm97_vm0, %v397_v48, 0.0  ;;  %v247_v6 = vmul.f32 0.2, %v205_v23 }
  0xfc   :  { %v419_v1 = vadd.f32 %v418_v61, %v417_v60  ;;  %341 = vst.msk [vmem:[%s768_s3 + $0x24] sm:$0xf] %vm331_vm2, %v497_v40  ;;  %v366_v2 = vadd.f32 %v365_v63, %v364_v59  ;;  %v502_v3 = vpack.c.bf16 %v265_v45, %v265_v45  ;;  %v216_v7 = vadd.f32 %v657_v51, %v619_v10 }
  0xfd   :  { %v420_v5 = vsel %vm97_vm0, %v396_v0, 0.0  ;;  %v369_v8 = vsel %vm97_vm0, %v262_v49, 0.0  ;;  %v208_v12 = vadd.f32 %v619_v10, %v660_v56  ;;  %v424_v13 = vsel %vm97_vm0, %v398_v62, 0.0 }
  0xfe   :  { %v368_v9 = vadd.f32 %v367_v39, %v366_v2  ;;  %v421_v11 = vadd.f32 %v420_v5, %v419_v1  ;;  %346 = vst.msk [vmem:[%s768_s3 + $0x38] sm:$0xf] %vm331_vm2, %v502_v3  ;;  %v263_v14 = vsel %vm231_vm15, %v205_v23, %v247_v6  ;;  %vm234_vm1 = vcmp.gt.f32.partialorder %v216_v7, 0.0 }
  0xff   :  { %v250_v15 = vmul.f32 0.2, %v216_v7  ;;  %v500_v17 = vpack.c.bf16 %v263_v14, %v263_v14  ;;  %v371_v19 = vsel %vm97_vm0, %v263_v14, 0.0  ;;  %v399_v20 = vmul.f32 %v263_v14, %v263_v14 }
 0x100   :  { %v423_v16 = vadd.f32 %v422_v4, %v421_v11  ;;  %v370_v51 = vadd.f32 %v369_v8, %v368_v9  ;;  %vm232_vm3 = vcmp.gt.f32.partialorder %v208_v12, 0.0  ;;  %v248_v22 = vmul.f32 0.2, %v208_v12 }
 0x101   :  { %v266_v21 = vsel %vm234_vm1, %v216_v7, %v250_v15  ;;  %344 = vst.msk [vmem:[%s768_s3 + $0x30] sm:$0xf] %vm331_vm2, %v500_v17  ;;  %v401_v25 = vmul.f32 %v265_v45, %v265_v45  ;;  %v426_v26 = vsel %vm97_vm0, %v399_v20, 0.0  ;;  %v375_v34 = vsel %vm97_vm0, %v265_v45, 0.0 }
 0x102   :  { %v372_v10 = vadd.f32 %v371_v19, %v370_v51  ;;  %v425_v56 = vadd.f32 %v424_v13, %v423_v16  ;;  %v503_v24 = vpack.c.bf16 %v266_v21, %v266_v21  ;;  %v264_v27 = vsel %vm232_vm3, %v208_v12, %v248_v22 }
 0x103   :  { %v501_v29 = vpack.c.bf16 %v264_v27, %v264_v27  ;;  %v373_v30 = vsel %vm97_vm0, %v264_v27, 0.0  ;;  %v400_v32 = vmul.f32 %v264_v27, %v264_v27  ;;  %v402_v35 = vmul.f32 %v266_v21, %v266_v21 }
 0x104   :  { %v427_v28 = vadd.f32 %v426_v26, %v425_v56  ;;  %347 = vst.msk [vmem:[%s768_s3 + $0x3c] sm:$0xf] %vm331_vm2, %v503_v24  ;;  %v374_v33 = vadd.f32 %v373_v30, %v372_v10  ;;  %v430_v39 = vsel %vm97_vm0, %v401_v25, 0.0  ;;  %v377_v31 = vsel %vm97_vm0, %v266_v21, 0.0 }
 0x105   :  { %345 = vst.msk [vmem:[%s768_s3 + $0x34] sm:$0xf] %vm331_vm2, %v501_v29  ;;  %v428_v36 = vsel %vm97_vm0, %v400_v32, 0.0  ;;  %v432_v42 = vsel %vm97_vm0, %v402_v35, 0.0  ;;  %vm385_vm2 = vcmask 253952  }
 0x106   :  { %v376_v37 = vadd.f32 %v375_v34, %v374_v33  ;;  %v429_v38 = vadd.f32 %v428_v36, %v427_v28 }
 0x108   :  { %v378_v18 = vadd.f32 %v377_v31, %v376_v37  ;;  %v431_v41 = vadd.f32 %v430_v39, %v429_v38 }
 0x10a   :  { %v379_v43 = vrot.slane %v378_v18, 4  ;;  %v433_v44 = vadd.f32 %v432_v42, %v431_v41 }
 0x10c   :  { %v380_v46 = vadd.f32 %v379_v43, %v378_v18  ;;  %v434_v47 = vrot.slane %v433_v44, 4 }
 0x10e   :  { %v381_v48 = vrot.slane %v380_v46, 2  ;;  %v435_v49 = vadd.f32 %v434_v47, %v433_v44 }
 0x110   :  { %v382_v50 = vadd.f32 %v381_v48, %v380_v46  ;;  %v436_v52 = vrot.slane %v435_v49, 2 }
 0x112   :  { %v383_v53 = vrot.slane %v382_v50, 1  ;;  %v437_v54 = vadd.f32 %v436_v52, %v435_v49 }
 0x114   :  { %v384_v23 = vadd.f32 %v383_v53, %v382_v50  ;;  %v438_v55 = vrot.slane %v437_v54, 1 }
 0x116   :  { %386 = vst.msk [vmem:[%s769_s4] sm:$0x1] %vm385_vm2, %v384_v23  ;;  %v439_v57 = vadd.f32 %v438_v55, %v437_v54 }
 0x118   :  { %440 = vst.msk [vmem:[%s770_s5] sm:$0x1] %vm385_vm2, %v439_v57 }

// kernel: decoding_module_forward.3
= control target key start
LH: loop header
LB: loop body
LE: loop exit
PB: predicated region body
PF: predicated region fallthrough
CT: control target
= control target key end

     0   :  { %vm156_vm0 = vcmask 261120   ;;  %vm139_vm3 = vcmask 257024   ;;  %s470_s0 = inlined_call_operand.vmem [shape: f32[128,32], index: 0, kind: input, shape index: {}]   ;;  %s471_s1 = inlined_call_operand.vmem [shape: bf16[128,32], index: 1, kind: output, shape index: {0}]   ;;  %s472_s2 = inlined_call_operand.vmem [shape: f32[1,1,32], index: 2, kind: output, shape index: {1}]   ;;  %s473_s3 = inlined_call_operand.vmem [shape: f32[1,1,32], index: 3, kind: output, shape index: {2}]  }
   0x1   :  { %v11_v0 = vld [vmem:[%s470_s0] sm:$0xff]  ;;  %v12_v1 = vld [vmem:[%s470_s0 + $0x8] sm:$0xff]  ;;  %v13_v2 = vld [vmem:[%s470_s0 + $0x10] sm:$0xff] }
   0x2   :  { %vm27_vm1 = vcmp.gt.f32.partialorder %v11_v0, 0.0  ;;  %v43_v3 = vmul.f32 0.2, %v11_v0  ;;  %vm28_vm2 = vcmp.gt.f32.partialorder %v12_v1, 0.0  ;;  %v44_v4 = vmul.f32 0.2, %v12_v1 }
   0x3   :  { %vm29_vm4 = vcmp.gt.f32.partialorder %v13_v2, 0.0  ;;  %v45_v5 = vmul.f32 0.2, %v13_v2  ;;  %v14_v6 = vld [vmem:[%s470_s0 + $0x18] sm:$0xff]  ;;  %v15_v18 = vld [vmem:[%s470_s0 + $0x20] sm:$0xff]  ;;  %v16_v23 = vld [vmem:[%s470_s0 + $0x28] sm:$0xff] }
   0x4   :  { %v59_v7 = vsel %vm27_vm1, %v11_v0, %v43_v3  ;;  %v60_v8 = vsel %vm28_vm2, %v12_v1, %v44_v4  ;;  %vm30_vm5 = vcmp.gt.f32.partialorder %v14_v6, 0.0  ;;  %v46_v9 = vmul.f32 0.2, %v14_v6  ;;  %v17_v28 = vld [vmem:[%s470_s0 + $0x30] sm:$0xff]  ;;  %v18_v32 = vld [vmem:[%s470_s0 + $0x38] sm:$0xff]  ;;  %v19_v42 = vld [vmem:[%s470_s0 + $0x40] sm:$0xff] }
   0x5   :  { %v278_v10 = vpack.c.bf16 %v59_v7, %v59_v7  ;;  %v157_v11 = vsel %vm156_vm0, %v59_v7, 0.0  ;;  %v196_v12 = vmul.f32 %v59_v7, %v59_v7  ;;  %v279_v13 = vpack.c.bf16 %v60_v8, %v60_v8  ;;  %v20_v58 = vld [vmem:[%s470_s0 + $0x48] sm:$0xff]  ;;  %v21_v3 = vld [vmem:[%s470_s0 + $0x50] sm:$0xff]  ;;  %v22_v7 = vld [vmem:[%s470_s0 + $0x58] sm:$0xff] }
   0x6   :  { %v158_v14 = vsel %vm156_vm0, %v60_v8, 0.0  ;;  %v197_v15 = vmul.f32 %v60_v8, %v60_v8  ;;  %v61_v16 = vsel %vm29_vm4, %v13_v2, %v45_v5  ;;  %v62_v17 = vsel %vm30_vm5, %v14_v6, %v46_v9 }
   0x7   :  { %140 = vst.msk [vmem:[%s471_s1] sm:$0xf] %vm139_vm3, %v278_v10  ;;  %v212_v19 = vsel %vm156_vm0, %v196_v12, 0.0  ;;  %141 = vst.msk [vmem:[%s471_s1 + $0x4] sm:$0xf] %vm139_vm3, %v279_v13  ;;  %v159_v20 = vadd.f32 %v158_v14, %v157_v11  ;;  %v280_v21 = vpack.c.bf16 %v61_v16, %v61_v16  ;;  %v160_v22 = vsel %vm156_vm0, %v61_v16, 0.0 }
   0x8   :  { %v213_v24 = vsel %vm156_vm0, %v197_v15, 0.0  ;;  %v198_v25 = vmul.f32 %v61_v16, %v61_v16  ;;  %v281_v26 = vpack.c.bf16 %v62_v17, %v62_v17  ;;  %v162_v27 = vsel %vm156_vm0, %v62_v17, 0.0  ;;  %v23_v12 = vld [vmem:[%s470_s0 + $0x60] sm:$0xff] }
   0x9   :  { %v214_v29 = vadd.f32 %v213_v24, %v212_v19  ;;  %142 = vst.msk [vmem:[%s471_s1 + $0x8] sm:$0xf] %vm139_vm3, %v280_v21  ;;  %v161_v30 = vadd.f32 %v160_v22, %v159_v20  ;;  %v199_v31 = vmul.f32 %v62_v17, %v62_v17  ;;  %vm31_vm6 = vcmp.gt.f32.partialorder %v15_v18, 0.0 }
   0xa   :  { %v215_v33 = vsel %vm156_vm0, %v198_v25, 0.0  ;;  %143 = vst.msk [vmem:[%s471_s1 + $0xc] sm:$0xf] %vm139_vm3, %v281_v26  ;;  %v47_v34 = vmul.f32 0.2, %v15_v18  ;;  %vm32_vm7 = vcmp.gt.f32.partialorder %v16_v23, 0.0 }
   0xb   :  { %v48_v35 = vmul.f32 0.2, %v16_v23  ;;  %v216_v36 = vadd.f32 %v215_v33, %v214_v29  ;;  %v163_v37 = vadd.f32 %v162_v27, %v161_v30  ;;  %v217_v38 = vsel %vm156_vm0, %v199_v31, 0.0  ;;  %v24_v30 = vld [vmem:[%s470_s0 + $0x68] sm:$0xff] }
   0xc   :  { %vm33_vm8 = vcmp.gt.f32.partialorder %v17_v28, 0.0  ;;  %v63_v39 = vsel %vm31_vm6, %v15_v18, %v47_v34  ;;  %v49_v41 = vmul.f32 0.2, %v17_v28  ;;  %vm34_vm9 = vcmp.gt.f32.partialorder %v18_v32, 0.0 }
   0xd   :  { %v64_v40 = vsel %vm32_vm7, %v16_v23, %v48_v35  ;;  %v218_v43 = vadd.f32 %v217_v38, %v216_v36  ;;  %v282_v44 = vpack.c.bf16 %v63_v39, %v63_v39  ;;  %v164_v45 = vsel %vm156_vm0, %v63_v39, 0.0 }
   0xe   :  { %v200_v46 = vmul.f32 %v63_v39, %v63_v39  ;;  %v165_v47 = vadd.f32 %v164_v45, %v163_v37  ;;  %v283_v48 = vpack.c.bf16 %v64_v40, %v64_v40  ;;  %v166_v49 = vsel %vm156_vm0, %v64_v40, 0.0  ;;  %v25_v39 = vld [vmem:[%s470_s0 + $0x70] sm:$0xff] }
   0xf   :  { %v201_v50 = vmul.f32 %v64_v40, %v64_v40  ;;  %144 = vst.msk [vmem:[%s471_s1 + $0x10] sm:$0xf] %vm139_vm3, %v282_v44  ;;  %v65_v52 = vsel %vm33_vm8, %v17_v28, %v49_v41  ;;  %v50_v53 = vmul.f32 0.2, %v18_v32  ;;  %vm35_vm10 = vcmp.gt.f32.partialorder %v19_v42, 0.0 }
  0x10   :  { %v219_v51 = vsel %vm156_vm0, %v200_v46, 0.0  ;;  %145 = vst.msk [vmem:[%s471_s1 + $0x14] sm:$0xf] %vm139_vm3, %v283_v48  ;;  %v167_v55 = vadd.f32 %v166_v49, %v165_v47  ;;  %v284_v57 = vpack.c.bf16 %v65_v52, %v65_v52  ;;  %v168_v59 = vsel %vm156_vm0, %v65_v52, 0.0 }
  0x11   :  { %v220_v54 = vadd.f32 %v219_v51, %v218_v43  ;;  %v221_v56 = vsel %vm156_vm0, %v201_v50, 0.0  ;;  %v202_v60 = vmul.f32 %v65_v52, %v65_v52  ;;  %v66_v61 = vsel %vm34_vm9, %v18_v32, %v50_v53  ;;  %v26_v43 = vld [vmem:[%s470_s0 + $0x78] sm:$0xff] }
  0x12   :  { %v51_v62 = vmul.f32 0.2, %v19_v42  ;;  %146 = vst.msk [vmem:[%s471_s1 + $0x18] sm:$0xf] %vm139_vm3, %v284_v57  ;;  %v169_v0 = vadd.f32 %v168_v59, %v167_v55  ;;  %v285_v1 = vpack.c.bf16 %v66_v61, %v66_v61  ;;  %v170_v2 = vsel %vm156_vm0, %v66_v61, 0.0 }
  0x13   :  { %v222_v63 = vadd.f32 %v221_v56, %v220_v54  ;;  %v223_v4 = vsel %vm156_vm0, %v202_v60, 0.0  ;;  %v203_v5 = vmul.f32 %v66_v61, %v66_v61  ;;  %vm36_vm11 = vcmp.gt.f32.partialorder %v20_v58, 0.0 }
  0x14   :  { %v67_v6 = vsel %vm35_vm10, %v19_v42, %v51_v62  ;;  %147 = vst.msk [vmem:[%s471_s1 + $0x1c] sm:$0xf] %vm139_vm3, %v285_v1  ;;  %v171_v9 = vadd.f32 %v170_v2, %v169_v0  ;;  %v52_v15 = vmul.f32 0.2, %v20_v58  ;;  %vm37_vm12 = vcmp.gt.f32.partialorder %v21_v3, 0.0 }
  0x15   :  { %v224_v8 = vadd.f32 %v223_v4, %v222_v63  ;;  %v286_v10 = vpack.c.bf16 %v67_v6, %v67_v6  ;;  %v172_v11 = vsel %vm156_vm0, %v67_v6, 0.0  ;;  %v225_v13 = vsel %vm156_vm0, %v203_v5, 0.0 }
  0x16   :  { %v204_v14 = vmul.f32 %v67_v6, %v67_v6  ;;  %v173_v17 = vadd.f32 %v172_v11, %v171_v9  ;;  %v53_v18 = vmul.f32 0.2, %v21_v3  ;;  %vm38_vm13 = vcmp.gt.f32.partialorder %v22_v7, 0.0 }
  0x17   :  { %v226_v16 = vadd.f32 %v225_v13, %v224_v8  ;;  %148 = vst.msk [vmem:[%s471_s1 + $0x20] sm:$0xf] %vm139_vm3, %v286_v10  ;;  %v68_v20 = vsel %vm36_vm11, %v20_v58, %v52_v15  ;;  %v54_v21 = vmul.f32 0.2, %v22_v7  ;;  %vm39_vm14 = vcmp.gt.f32.partialorder %v23_v12, 0.0 }
  0x18   :  { %v227_v19 = vsel %vm156_vm0, %v204_v14, 0.0  ;;  %v287_v23 = vpack.c.bf16 %v68_v20, %v68_v20  ;;  %v174_v24 = vsel %vm156_vm0, %v68_v20, 0.0  ;;  %v205_v25 = vmul.f32 %v68_v20, %v68_v20 }
  0x19   :  { %v228_v22 = vadd.f32 %v227_v19, %v226_v16  ;;  %v175_v26 = vadd.f32 %v174_v24, %v173_v17  ;;  %v69_v27 = vsel %vm37_vm12, %v21_v3, %v53_v18  ;;  %v70_v28 = vsel %vm38_vm13, %v22_v7, %v54_v21 }
  0x1a   :  { %v55_v29 = vmul.f32 0.2, %v23_v12  ;;  %149 = vst.msk [vmem:[%s471_s1 + $0x24] sm:$0xf] %vm139_vm3, %v287_v23  ;;  %v229_v31 = vsel %vm156_vm0, %v205_v25, 0.0  ;;  %v288_v32 = vpack.c.bf16 %v69_v27, %v69_v27  ;;  %v176_v33 = vsel %vm156_vm0, %v69_v27, 0.0 }
  0x1b   :  { %v206_v34 = vmul.f32 %v69_v27, %v69_v27  ;;  %v230_v35 = vadd.f32 %v229_v31, %v228_v22  ;;  %v177_v36 = vadd.f32 %v176_v33, %v175_v26  ;;  %v289_v37 = vpack.c.bf16 %v70_v28, %v70_v28 }
  0x1c   :  { %v178_v38 = vsel %vm156_vm0, %v70_v28, 0.0  ;;  %150 = vst.msk [vmem:[%s471_s1 + $0x28] sm:$0xf] %vm139_vm3, %v288_v32  ;;  %v207_v41 = vmul.f32 %v70_v28, %v70_v28  ;;  %v71_v42 = vsel %vm39_vm14, %v23_v12, %v55_v29  ;;  %vm40_vm15 = vcmp.gt.f32.partialorder %v24_v30, 0.0 }
  0x1d   :  { %v231_v40 = vsel %vm156_vm0, %v206_v34, 0.0  ;;  %151 = vst.msk [vmem:[%s471_s1 + $0x2c] sm:$0xf] %vm139_vm3, %v289_v37  ;;  %v179_v45 = vadd.f32 %v178_v38, %v177_v36  ;;  %v290_v46 = vpack.c.bf16 %v71_v42, %v71_v42  ;;  %v180_v47 = vsel %vm156_vm0, %v71_v42, 0.0 }
  0x1e   :  { %v232_v44 = vadd.f32 %v231_v40, %v230_v35  ;;  %v233_v48 = vsel %vm156_vm0, %v207_v41, 0.0  ;;  %v208_v49 = vmul.f32 %v71_v42, %v71_v42  ;;  %v56_v50 = vmul.f32 0.2, %v24_v30 }
  0x1f   :  { %vm41_vm1 = vcmp.gt.f32.partialorder %v25_v39, 0.0  ;;  %152 = vst.msk [vmem:[%s471_s1 + $0x30] sm:$0xf] %vm139_vm3, %v290_v46  ;;  %v181_v52 = vadd.f32 %v180_v47, %v179_v45  ;;  %v57_v53 = vmul.f32 0.2, %v25_v39  ;;  %vm42_vm2 = vcmp.gt.f32.partialorder %v26_v43, 0.0 }
  0x20   :  { %v234_v51 = vadd.f32 %v233_v48, %v232_v44  ;;  %v235_v54 = vsel %vm156_vm0, %v208_v49, 0.0  ;;  %v72_v55 = vsel %vm40_vm15, %v24_v30, %v56_v50  ;;  %v58_v56 = vmul.f32 0.2, %v26_v43 }
  0x21   :  { %v291_v58 = vpack.c.bf16 %v72_v55, %v72_v55  ;;  %v182_v59 = vsel %vm156_vm0, %v72_v55, 0.0  ;;  %v209_v60 = vmul.f32 %v72_v55, %v72_v55  ;;  %v73_v62 = vsel %vm41_vm1, %v25_v39, %v57_v53 }
  0x22   :  { %v236_v57 = vadd.f32 %v235_v54, %v234_v51  ;;  %v183_v61 = vadd.f32 %v182_v59, %v181_v52  ;;  %v74_v63 = vsel %vm42_vm2, %v26_v43, %v58_v56  ;;  %v292_v1 = vpack.c.bf16 %v73_v62, %v73_v62 }
  0x23   :  { %153 = vst.msk [vmem:[%s471_s1 + $0x34] sm:$0xf] %vm139_vm3, %v291_v58  ;;  %v237_v0 = vsel %vm156_vm0, %v209_v60, 0.0  ;;  %v184_v2 = vsel %vm156_vm0, %v73_v62, 0.0  ;;  %v210_v3 = vmul.f32 %v73_v62, %v73_v62  ;;  %v293_v6 = vpack.c.bf16 %v74_v63, %v74_v63 }
  0x24   :  { %v238_v4 = vadd.f32 %v237_v0, %v236_v57  ;;  %v185_v5 = vadd.f32 %v184_v2, %v183_v61  ;;  %v186_v7 = vsel %vm156_vm0, %v74_v63, 0.0  ;;  %154 = vst.msk [vmem:[%s471_s1 + $0x38] sm:$0xf] %vm139_vm3, %v292_v1  ;;  %v211_v9 = vmul.f32 %v74_v63, %v74_v63 }
  0x25   :  { %v239_v8 = vsel %vm156_vm0, %v210_v3, 0.0  ;;  %155 = vst.msk [vmem:[%s471_s1 + $0x3c] sm:$0xf] %vm139_vm3, %v293_v6  ;;  %vm194_vm4 = vcmask 253952  }
  0x26   :  { %v240_v10 = vadd.f32 %v239_v8, %v238_v4  ;;  %v187_v11 = vadd.f32 %v186_v7, %v185_v5  ;;  %v241_v12 = vsel %vm156_vm0, %v211_v9, 0.0 }
  0x28   :  { %v188_v13 = vrot.slane %v187_v11, 4  ;;  %v242_v14 = vadd.f32 %v241_v12, %v240_v10 }
  0x2a   :  { %v189_v15 = vadd.f32 %v188_v13, %v187_v11  ;;  %v243_v16 = vrot.slane %v242_v14, 4 }
  0x2c   :  { %v190_v17 = vrot.slane %v189_v15, 2  ;;  %v244_v18 = vadd.f32 %v243_v16, %v242_v14 }
  0x2e   :  { %v191_v19 = vadd.f32 %v190_v17, %v189_v15  ;;  %v245_v20 = vrot.slane %v244_v18, 2 }
  0x30   :  { %v192_v21 = vrot.slane %v191_v19, 1  ;;  %v246_v22 = vadd.f32 %v245_v20, %v244_v18 }
  0x32   :  { %v193_v23 = vadd.f32 %v192_v21, %v191_v19  ;;  %v247_v24 = vrot.slane %v246_v22, 1 }
  0x34   :  { %195 = vst.msk [vmem:[%s472_s2] sm:$0x1] %vm194_vm4, %v193_v23  ;;  %v248_v25 = vadd.f32 %v247_v24, %v246_v22 }
  0x36   :  { %249 = vst.msk [vmem:[%s473_s3] sm:$0x1] %vm194_vm4, %v248_v25 }

// kernel: decoding_module_forward.5
= control target key start
LH: loop header
LB: loop body
LE: loop exit
PB: predicated region body
PF: predicated region fallthrough
CT: control target
= control target key end

     0   :  { %s7945_s0 = inlined_call_operand.vmem [shape: f32[128,32], index: 0, kind: input, shape index: {}]   ;;  %s7946_s1 = inlined_call_operand.vmem [shape: f32[64,32], index: 1, kind: input, shape index: {}]   ;;  %s7947_s2 = inlined_call_operand.vmem [shape: bf16[128,32], index: 2, kind: input, shape index: {}]   ;;  %s7948_s3 = inlined_call_operand.vmem [shape: bf16[32,96], index: 3, kind: input, shape index: {}]   ;;  %s7949_s4 = inlined_call_operand.vmem [shape: f32[1,96], index: 4, kind: input, shape index: {}]   ;;  %s7950_s5 = inlined_call_operand.vmem [shape: bf16[32,32], index: 5, kind: input, shape index: {}]   ;;  %s7951_s6 = inlined_call_operand.vmem [shape: f32[1,32], index: 6, kind: input, shape index: {}]   ;;  %s7952_s7 = inlined_call_operand.vmem [shape: bf16[32,32], index: 7, kind: input, shape index: {}]   ;;  %s7953_s8 = inlined_call_operand.vmem [shape: f32[1,32], index: 8, kind: input, shape index: {}]   ;;  %s7954_s9 = inlined_call_operand.vmem [shape: bf16[32,64], index: 9, kind: input, shape index: {}]   ;;  %s7955_s10 = inlined_call_operand.vmem [shape: f32[1,64], index: 10, kind: input, shape index: {}]   ;;  %s7956_s11 = inlined_call_operand.vmem [shape: bf16[32,32], index: 11, kind: input, shape index: {}]   ;;  %s7957_s12 = inlined_call_operand.vmem [shape: f32[1,32], index: 12, kind: input, shape index: {}]   ;;  %s7958_s13 = inlined_call_operand.vmem [shape: bf16[32,128], index: 13, kind: input, shape index: {}]   ;;  %s7959_s14 = inlined_call_operand.vmem [shape: f32[1,128], index: 14, kind: input, shape index: {}]   ;;  %s7960_s15 = inlined_call_operand.vmem [shape: bf16[128,32], index: 15, kind: input, shape index: {}]   ;;  %s7961_s16 = inlined_call_operand.vmem [shape: f32[1,32], index: 16, kind: input, shape index: {}]   ;;  %s7962_s17 = inlined_call_operand.vmem [shape: f32[6,32], index: 17, kind: input, shape index: {}]   ;;  %s7963_s18 = inlined_call_operand.hbm [shape: f32[128,32], index: 18, kind: output, shape index: {}]  }
   0x1   :  { %7980 = sst [smem:[#allocation12_spill]] %s7945_s0 }
   0x2   :  { %7981 = sst [smem:[#allocation13_spill]] %s7946_s1 }
   0x3   :  { %7982 = sst [smem:[#allocation14_spill]] %s7947_s2 }
   0x4   :  { %7983 = sst [smem:[#allocation15_spill]] %s7948_s3 }
   0x5   :  { %7984 = sst [smem:[#allocation16_spill]] %s7963_s18 }
   0x6   :  { %23 = vsyncpa [#allocation3], 0 }
   0x7   :  { %25 = vsyncpa [#allocation3 + $0x1], 0  ;;  %s6223_s27 = smov 0   ;;  %s6225_s28 = smov 0  }
   0x8   :  { %s6227_s29 = smov 0   ;;  %s6229_s30 = smov 0  }
   0x9 LB: > { %7985 = sst [smem:[#allocation5_spill]] %s6104_s27  ;;  %s6244_s0 = sadd.s32 4294967295, %s6116_s30   ;;  %s6116_s30 = sphi %s6229_s30, %s8007_s30   ;;  %s6112_s29 = sphi %s6227_s29, %s8009_s29   ;;  %s6108_s28 = sphi %s6225_s28, %s8011_s28   ;;  %s6104_s27 = sphi %s6223_s27, %s8010_s27  }
   0xa   : > { %7986 = sst [smem:[#allocation6_spill]] %s6112_s29  ;;  %s4683_s19 = sadd.s32 4294967294, %s6116_s30  }
   0xb   : > { %7987 = sst [smem:[#allocation7_spill]] %s6116_s30  ;;  %s6248_s1 = sadd.s32 1, %s6116_s30  }
   0xc   : > { %7988 = sst [smem:[#allocation8_spill]] %s6248_s1  ;;  %s426_s20 = sadd.s32 1, %s6112_s29 }
   0xd   : > { %s423_s21 = ssub.s32 %s6116_s30, %s6248_s1  ;;  %p436_p0 = scmp.ne.s32.totalorder %s6112_s29, %s6108_s28 }
   0xe   : > { %p424_p1 = scmp.eq.s32.totalorder %s423_s21, 0  ;;  %p437_p2 = scmp.eq.s32.totalorder %s6244_s0, 1 }
   0xf   : > { %p442_p3 = scmp.ne.s32.totalorder %s6108_s28, %s6104_s27  ;;  %p443_p4 = scmp.eq.s32.totalorder %s4683_s19, 1 }
  0x10   : > { %s6259_s22 = scalar_select %p424_p1, %s6112_s29, %s426_s20  }
  0x11   : > { %p6261_p5 = por %p437_p2, %p436_p0  ;;  %p6265_p6 = por %p443_p4, %p442_p3 }
  0x12   : > { %7989 = sst [smem:[#allocation9_spill]] %s6259_s22  ;;  %p4686_p7 = scmp.ge.s32.totalorder %s6116_s30, 1 }
  0x13   : > { %s7990_s2 = scalar_select %p6261_p5, 1, 0 }
  0x14   : > { %s7992_s23 = scalar_select %p6265_p6, 1, 0 }
  0x15   : > { %7991 = sst [smem:[#allocation10_spill]] %s7990_s2  ;;  %p527_p8 = scmp.lt.s32.totalorder %s6116_s30, 3 }
  0x16   : > { %7993 = sst [smem:[#allocation11_spill]] %s7992_s23 }
  0x17   : > { %p528_p9 = pnand %p4686_p7, %p527_p8 }
  0x18   : > { %s7994_s3 = sld [smem:[#allocation15_spill]] (!%p528_p9)  ;;  %s4688_s26 = sshll.u32 (!%p528_p9), %s6244_s0, 3  ;;  %vm652_vm0 = vcmask (!%p528_p9), 261120   ;;  %v4692_v31 = vld [vmem:[%s7949_s4] ss:$0 sm:$0xff] (!%p528_p9)  ;;  %vm843_vm1 = vcmask (!%p528_p9), 64512  }
  0x19   : > { %531 = sbr.rel (%p528_p9) target bundleno = 4588 (0x11ec), region = 92  ;;  %p587_p10 = scmp.lt.s32.totalorder (!%p528_p9), %s4688_s26, 15  ;;  %vm1236_vm2 = vcmask (!%p528_p9), 523264   ;;  %vm2065_vm3 = vcmask (!%p528_p9), 130048   ;;  %vm2074_vm4 = vcmask (!%p528_p9), 195584  }
  0x1a   : > { %s7995_s29 = sld [smem:[#allocation13_spill]] (!%p528_p9)  ;;  %s7997_s18 = sld [smem:[#allocation12_spill]] (!%p528_p9) }
  0x1b   : > { %s6118_s19 = smov (!%p528_p9), 120   ;;  %s6119_s20 = smov (!%p528_p9), 112  }
  0x1c   : > { %s6121_s21 = smov (!%p528_p9), 96   ;;  %s7978_s27 = smov (!%p528_p9), 8  }
  0x1d   : > { %s7976_s30 = smov (!%p528_p9), 16  }
  0x1e   : > { %v5725_v0 = vld [vmem:[%s7994_s3] sm:$0xff] (!%p528_p9)   ;;  %v5726_v1 = vld [vmem:[%s7994_s3 + $0x8] sm:$0xff] (!%p528_p9)   ;;  %s583_s3 = sand.u32 (!%p528_p9), 1, %s6108_s28  }
  0x1f   : > { %4993 = vmatprep.subr.bf16.mxu1 (!%p528_p9), %v5725_v0  ;;  %s4687_s24 = sshll.u32 (!%p528_p9), %s583_s3, 6 }
  0x20   : > { %4994 = vmatpush3.bf16.msra.mxu1 %v5725_v0  ;;  %s8013_s26 = smov (!%p587_p10, %s4688_s26), 15  ;;  %s7996_s1 = smov %s7995_s29  ;;  %v609_v2 = vld [vmem:[%s7995_s29] sm:$0xff] }
  0x21   : > { %v610_v3 = vld [vmem:[%s7996_s1 + $0x8] sm:$0xff]  ;;  %v611_v4 = vld [vmem:[%s7996_s1 + $0x10] sm:$0xff]  ;;  %4995 = vmatprep.subr.bf16.mxu1 %v5726_v1  ;;  %v612_v5 = vld [vmem:[%s7996_s1 + $0x18] sm:$0xff]  ;;  %s4689_s22 = sshll.u32 %s8013_s26, 3  ;;  %s6122_s29 = smov 64  }
  0x22   : > { %v613_v6 = vld [vmem:[%s7996_s1 + $0x20] sm:$0xff]  ;;  %v614_v7 = vld [vmem:[%s7996_s1 + $0x28] sm:$0xff]  ;;  %s590_s2 = scalar_lea.vmem %s7997_s18, %s4689_s22  ;;  %v615_v17 = vld [vmem:[%s7996_s1 + $0x30] sm:$0xff]  ;;  %s6120_s22 = smov 104  }
  0x23   : > { %v601_v8 = vld [vmem:[%s590_s2] sm:$0xff]  ;;  %v602_v9 = vld [vmem:[%s590_s2 + $0x8] sm:$0xff]  ;;  %v603_v10 = vld [vmem:[%s590_s2 + $0x10] sm:$0xff]  ;;  %s7974_s18 = smov 24   ;;  %s7869_s25 = scalar_lea.vmem [#allocation2], %s4687_s24 }
  0x24   : > { %4996 = vmatpush3.bf16.msra.mxu1 %v5726_v1  ;;  %v6302_v11 = vadd.f32 %v609_v2, %v601_v8  ;;  %v6304_v12 = vadd.f32 %v610_v3, %v602_v9  ;;  %v604_v13 = vld [vmem:[%s590_s2 + $0x18] sm:$0xff]  ;;  %v6306_v14 = vadd.f32 %v611_v4, %v603_v10  ;;  %v605_v15 = vld [vmem:[%s590_s2 + $0x20] sm:$0xff]  ;;  %v606_v16 = vld [vmem:[%s590_s2 + $0x28] sm:$0xff] }
  0x25   : > { %v616_v18 = vld [vmem:[%s7996_s1 + $0x38] sm:$0xff]  ;;  %v6314_v19 = vadd.f32 %v612_v5, %v604_v13  ;;  %v6316_v20 = vadd.f32 %v613_v6, %v605_v15  ;;  %v6318_v21 = vadd.f32 %v614_v7, %v606_v16  ;;  %v607_v22 = vld [vmem:[%s590_s2 + $0x30] sm:$0xff] }
  0x26   : > { %v608_v23 = vld [vmem:[%s590_s2 + $0x38] sm:$0xff]  ;;  %v629_v24 = vpack.c.bf16 %v6304_v12, %v6302_v11  ;;  %v6328_v27 = vadd.f32 %v615_v17, %v607_v22  ;;  %s4691_s2 = sshll.u32 %s8013_s26, 2  ;;  %s8003_s26 = sld [smem:[#allocation16_spill]] }
  0x27   : > { %v630_v25 = vpack.c.bf16 %v6314_v19, %v6306_v14  ;;  %v631_v26 = vpack.c.bf16 %v6318_v21, %v6316_v20  ;;  %v6330_v28 = vadd.f32 %v616_v18, %v608_v23 }
  0x28   : > { %4997 = vmatprep.mubr.msk.bf16.mxu1 %vm652_vm0, %v629_v24 }
  0x29   : > { %4998 = vmatmul.mubr.msk.bf16.vlgmr.msra.gmra.mrb[0].mxu1 %vm652_vm0, %v630_v25  ;;  %v632_v29 = vpack.c.bf16 %v6330_v28, %v6328_v27 }
  0x2a   : > { %5001 = vmatprep.mubr.msk.bf16.mxu1 %vm652_vm0, %v631_v26 }
  0x31   : > { %5002 = vmatmul.mubr.msk.bf16.gmra.mrb[4].mxu1 %vm652_vm0, %v632_v29 }
  0xfc   : > { %v4999_v30 = vpop.f32.mrb[0].mxu1 }
  0xfd   : > { %v699_v32 = vpop.f32.mrb[1].mxu1  ;;  %v708_v34 = vadd.f32 %v4999_v30, %v4692_v31 }
  0xfe   : > { %v5000_v33 = vpop.f32.mrb[2].mxu1  ;;  %v700_v37 = vadd.f32 %v4692_v31, %v699_v32 }
  0xff   : > { %v711_v35 = vadd.f32 %v5000_v33, %v4692_v31  ;;  %v702_v36 = vpop.f32.mrb[3].mxu1 }
 0x100   : > { %v703_v38 = vadd.f32 %v4692_v31, %v702_v36 }
 0x101   : > { %v5430_v39 = vpack.i.bf16 %v711_v35, %v708_v34  ;;  %v6339_v40 = vpack.c.bf16 %v711_v35, %v708_v34 }
 0x102   : > { %v5425_v41 = vpack.i.bf16 %v703_v38, %v700_v37  ;;  %v6341_v42 = vpack.c.bf16 %v703_v38, %v700_v37 }
 0x104   : > { %v5003_v43 = vpop.f32.mrb[4].mxu1  ;;  %5426 = vrot.lane.b32.xlu0 %v5425_v41, %s6118_s19  ;;  %5013 = vmatprep.mubr.msk.bf16.mxu1 %vm843_vm1, %v6341_v42 }
 0x105   : > { %v724_v44 = vadd.f32 %v5003_v43, %v4692_v31  ;;  %v715_v45 = vpop.f32.mrb[5].mxu1 }
 0x106   : > { %v716_v46 = vadd.f32 %v4692_v31, %v715_v45  ;;  %v5004_v47 = vpop.f32.mrb[6].mxu1 }
 0x107   : > { %v727_v48 = vadd.f32 %v5004_v47, %v4692_v31  ;;  %v718_v49 = vpop.f32.mrb[7].mxu1 }
 0x108   : > { %v719_v50 = vadd.f32 %v4692_v31, %v718_v49  ;;  %5431 = vrot.lane.b32.xlu0 %v5430_v39, %s6118_s19 }
 0x109   : > { %v5440_v51 = vpack.i.bf16 %v727_v48, %v724_v44  ;;  %v6347_v52 = vpack.c.bf16 %v727_v48, %v724_v44 }
 0x10a   : > { %v5435_v53 = vpack.i.bf16 %v719_v50, %v716_v46  ;;  %v6349_v54 = vpack.c.bf16 %v719_v50, %v716_v46 }
 0x10c   : > { %5436 = vrot.lane.b32.xlu1 %v5435_v53, %s6118_s19  ;;  %5446 = vrot.lane.b32.xlu0 %v5425_v41, %s6119_s20 }
 0x110   : > { %5441 = vrot.lane.b32.xlu1 %v5440_v51, %s6118_s19  ;;  %5456 = vrot.lane.b32.xlu0 %v5430_v39, %s6119_s20 }
 0x114   : > { %5451 = vrot.lane.b32.xlu1 %v5425_v41, %s6120_s22  ;;  %5466 = vrot.lane.b32.xlu0 %v5435_v53, %s6119_s20 }
 0x118   : > { %5461 = vrot.lane.b32.xlu1 %v5430_v39, %s6120_s22  ;;  %5476 = vrot.lane.b32.xlu0 %v5440_v51, %s6119_s20 }
 0x11c   : > { %5471 = vrot.lane.b32.xlu1 %v5435_v53, %s6120_s22  ;;  %835 = vrot.lane.b32.xlu0 %v6341_v42, %s6121_s21 }
 0x120   : > { %5481 = vrot.lane.b32.xlu1 %v5440_v51, %s6120_s22  ;;  %837 = vrot.lane.b32.xlu0 %v6339_v40, %s6121_s21 }
 0x124   : > { %839 = vrot.lane.b32.xlu0 %v6349_v54, %s6121_s21 }
 0x128   : > { %841 = vrot.lane.b32.xlu0 %v6347_v52, %s6121_s21 }
 0x176   : > { %v5427_v55 = vpop.permute.xlu0 %5426 }
 0x177   : > { %v5429_v56 = vunpack.i.h.bf16 %v5427_v55  ;;  %v5428_v57 = vunpack.i.l.bf16 %v5427_v55 }
 0x179   : > { %v819_v58 = vpack.c.bf16 %v5429_v56, %v5428_v57 }
 0x17a   : > { %v5432_v59 = vpop.permute.xlu0 %5431 }
 0x17b   : > { %v5434_v60 = vunpack.i.h.bf16 %v5432_v59  ;;  %v5433_v61 = vunpack.i.l.bf16 %v5432_v59  ;;  %937 = vrot.lane.b32.xlu1 %v819_v58, %s6121_s21  ;;  %5029 = vmatprep.mubr.msk.bf16.mxu0 %vm843_vm1, %v819_v58 }
 0x17d   : > { %v6371_v62 = vpack.c.bf16 %v5434_v60, %v5433_v61 }
 0x17e   : > { %v5437_v63 = vpop.permute.xlu1 %5436  ;;  %v5447_v0 = vpop.permute.xlu0 %5446 }
 0x17f   : > { %v5439_v1 = vunpack.i.h.bf16 %v5437_v63  ;;  %v5438_v2 = vunpack.i.l.bf16 %v5437_v63  ;;  %v5449_v3 = vunpack.i.h.bf16 %v5447_v0  ;;  %v5448_v4 = vunpack.i.l.bf16 %v5447_v0  ;;  %939 = vrot.lane.b32.xlu1 %v6371_v62, %s6121_s21 }
 0x181   : > { %v6375_v5 = vpack.c.bf16 %v5439_v1, %v5438_v2  ;;  %v6377_v6 = vpack.c.bf16 %v5449_v3, %v5448_v4 }
 0x182   : > { %v5442_v7 = vpop.permute.xlu1 %5441  ;;  %v5457_v8 = vpop.permute.xlu0 %5456 }
 0x183   : > { %v5444_v9 = vunpack.i.h.bf16 %v5442_v7  ;;  %v5443_v10 = vunpack.i.l.bf16 %v5442_v7  ;;  %v5459_v13 = vunpack.i.h.bf16 %v5457_v8  ;;  %v5458_v15 = vunpack.i.l.bf16 %v5457_v8  ;;  %941 = vrot.lane.b32.xlu1 %v6375_v5, %s6121_s21  ;;  %1038 = vrot.lane.b32.xlu0 %v6377_v6, %s6121_s21 }
 0x185   : > { %v6383_v16 = vpack.c.bf16 %v5444_v9, %v5443_v10  ;;  %v6385_v17 = vpack.c.bf16 %v5459_v13, %v5458_v15 }
 0x186   : > { %v5452_v18 = vpop.permute.xlu1 %5451  ;;  %v5467_v22 = vpop.permute.xlu0 %5466 }
 0x187   : > { %v5454_v23 = vunpack.i.h.bf16 %v5452_v18  ;;  %v5453_v24 = vunpack.i.l.bf16 %v5452_v18  ;;  %v5469_v25 = vunpack.i.h.bf16 %v5467_v22  ;;  %v5468_v26 = vunpack.i.l.bf16 %v5467_v22  ;;  %943 = vrot.lane.b32.xlu1 %v6383_v16, %s6121_s21  ;;  %1040 = vrot.lane.b32.xlu0 %v6385_v17, %s6121_s21 }
 0x189   : > { %v6391_v29 = vpack.c.bf16 %v5454_v23, %v5453_v24  ;;  %v6393_v30 = vpack.c.bf16 %v5469_v25, %v5468_v26 }
 0x18a   : > { %v5462_v31 = vpop.permute.xlu1 %5461  ;;  %v5477_v32 = vpop.permute.xlu0 %5476 }
 0x18b   : > { %v5464_v33 = vunpack.i.h.bf16 %v5462_v31  ;;  %v5463_v34 = vunpack.i.l.bf16 %v5462_v31  ;;  %v5479_v35 = vunpack.i.h.bf16 %v5477_v32  ;;  %v5478_v36 = vunpack.i.l.bf16 %v5477_v32  ;;  %1139 = vrot.lane.b32.xlu1 %v6391_v29, %s6121_s21  ;;  %1042 = vrot.lane.b32.xlu0 %v6393_v30, %s6121_s21 }
 0x18d   : > { %v6399_v37 = vpack.c.bf16 %v5464_v33, %v5463_v34  ;;  %v6401_v38 = vpack.c.bf16 %v5479_v35, %v5478_v36 }
 0x18e   : > { %v5472_v39 = vpop.permute.xlu1 %5471  ;;  %v836_v41 = vpop.permute.xlu0 %835 }
 0x18f   : > { %v5474_v43 = vunpack.i.h.bf16 %v5472_v39  ;;  %v5473_v44 = vunpack.i.l.bf16 %v5472_v39  ;;  %1141 = vrot.lane.b32.xlu1 %v6399_v37, %s6121_s21  ;;  %1044 = vrot.lane.b32.xlu0 %v6401_v38, %s6121_s21  ;;  %v857_v45 = vsel %vm843_vm1, %v836_v41, 0 }
 0x190   : > { %5345 = vmatprep.subr.msk.bf16.mxu1 %vm843_vm1, %v836_v41 }
 0x191   : > { %5006 = vmatpush3.bf16.xpose.msra.mxu1 %v857_v45  ;;  %v6409_v46 = vpack.c.bf16 %v5474_v43, %v5473_v44 }
 0x192   : > { %v5482_v47 = vpop.permute.xlu1 %5481  ;;  %v838_v48 = vpop.permute.xlu0 %837 }
 0x193   : > { %v5484_v49 = vunpack.i.h.bf16 %v5482_v47  ;;  %v5483_v50 = vunpack.i.l.bf16 %v5482_v47  ;;  %1143 = vrot.lane.b32.xlu1 %v6409_v46, %s6121_s21  ;;  %1694 = vrot.lane.b32.xlu0 %v819_v58, %s6122_s29  ;;  %v860_v53 = vsel %vm843_vm1, %v838_v48, 0 }
 0x194   : > { %5346 = vmatprep.subr.msk.bf16.mxu1 %vm843_vm1, %v838_v48 }
 0x195   : > { %v6415_v51 = vpack.c.bf16 %v5484_v49, %v5483_v50 }
 0x196   : > { %v840_v55 = vpop.permute.xlu0 %839 }
 0x197   : > { %1145 = vrot.lane.b32.xlu1 %v6415_v51, %s6121_s21  ;;  %1696 = vrot.lane.b32.xlu0 %v6371_v62, %s6122_s29  ;;  %v863_v56 = vsel %vm843_vm1, %v840_v55, 0 }
 0x199   : > { %5008 = vmatpush3.bf16.xpose.msra.mxu1 %v860_v53 }
 0x19a   : > { %5347 = vmatprep.subr.msk.bf16.mxu1 %vm843_vm1, %v840_v55  ;;  %v842_v57 = vpop.permute.xlu0 %841 }
 0x19b   : > { %1605 = vrot.lane.b32.xlu1 %v6341_v42, %s6122_s29  ;;  %1611 = vrot.lane.b32.xlu0 %v6347_v52, %s6122_s29  ;;  %v866_v42 = vsel %vm843_vm1, %v842_v57, 0 }
 0x19f   : > { %1607 = vrot.lane.b32.xlu1 %v6339_v40, %s6122_s29  ;;  %1783 = vrot.lane.b32.xlu0 %v6377_v6, %s6122_s29 }
 0x1a1   : > { %5010 = vmatpush3.bf16.xpose.msra.mxu1 %v863_v56 }
 0x1a2   : > { %5348 = vmatprep.subr.msk.bf16.mxu1 %vm843_vm1, %v842_v57 }
 0x1a3   : > { %1609 = vrot.lane.b32.xlu1 %v6349_v54, %s6122_s29  ;;  %1785 = vrot.lane.b32.xlu0 %v6385_v17, %s6122_s29 }
 0x1a7   : > { %1700 = vrot.lane.b32.xlu1 %v6383_v16, %s6122_s29  ;;  %1787 = vrot.lane.b32.xlu0 %v6393_v30, %s6122_s29 }
 0x1a9   : > { %5012 = vmatpush3.bf16.xpose.msra.mxu1 %v866_v42 }
 0x1ab   : > { %1872 = vrot.lane.b32.xlu1 %v6391_v29, %s6122_s29 }
 0x1af   : > { %1874 = vrot.lane.b32.xlu1 %v6399_v37, %s6122_s29 }
 0x1b0   : > { %5014 = vmatmul.mubr.msk.bf16.vlgmr.msra.gmra.mrb[8].mxu1 %vm843_vm1, %v6339_v40 }
 0x1b1   : > { %5017 = vmatprep.mubr.msk.bf16.mxu1 %vm843_vm1, %v6349_v54 }
 0x1b3   : > { %1698 = vrot.lane.b32.xlu1 %v6375_v5, %s6122_s29 }
 0x1b8   : > { %5018 = vmatmul.mubr.msk.bf16.gmra.mrb[12].mxu1 %vm843_vm1, %v6347_v52 }
 0x1b9   : > { %5045 = vmatprep.mubr.msk.bf16.mxu1 %vm843_vm1, %v6377_v6 }
 0x1ed   : > { %v938_v58 = vpop.permute.xlu1 %937 }
 0x1ee   : > { %5349 = vmatprep.subr.msk.bf16.mxu0 %vm843_vm1, %v938_v58  ;;  %v958_v59 = vsel %vm843_vm1, %v938_v58, 0 }
 0x1ef   : > { %5022 = vmatpush3.bf16.xpose.msra.mxu0 %v958_v59 }
 0x1f1   : > { %v940_v60 = vpop.permute.xlu1 %939 }
 0x1f2   : > { %5350 = vmatprep.subr.msk.bf16.mxu0 %vm843_vm1, %v940_v60  ;;  %v961_v61 = vsel %vm843_vm1, %v940_v60, 0 }
 0x1f5   : > { %v942_v40 = vpop.permute.xlu1 %941  ;;  %v1039_v54 = vpop.permute.xlu0 %1038 }
 0x1f6   : > { %5353 = vmatprep.subr.msk.bf16.mxu1 %vm843_vm1, %v1039_v54  ;;  %v1059_v52 = vsel %vm843_vm1, %v1039_v54, 0  ;;  %v964_v1 = vsel %vm843_vm1, %v942_v40, 0 }
 0x1f7   : > { %5024 = vmatpush3.bf16.xpose.msra.mxu0 %v961_v61  ;;  %5038 = vmatpush3.bf16.xpose.msra.mxu1 %v1059_v52 }
 0x1f8   : > { %5351 = vmatprep.subr.msk.bf16.mxu0 %vm843_vm1, %v942_v40 }
 0x1f9   : > { %v944_v63 = vpop.permute.xlu1 %943  ;;  %v1041_v0 = vpop.permute.xlu0 %1040 }
 0x1fa   : > { %5354 = vmatprep.subr.msk.bf16.mxu1 %vm843_vm1, %v1041_v0  ;;  %v1062_v3 = vsel %vm843_vm1, %v1041_v0, 0  ;;  %v967_v8 = vsel %vm843_vm1, %v944_v63, 0 }
 0x1fd   : > { %v1140_v2 = vpop.permute.xlu1 %1139  ;;  %v1043_v4 = vpop.permute.xlu0 %1042 }
 0x1fe   : > { %v1065_v9 = vsel %vm843_vm1, %v1043_v4, 0  ;;  %v1160_v22 = vsel %vm843_vm1, %v1140_v2, 0 }
 0x1ff   : > { %5026 = vmatpush3.bf16.xpose.msra.mxu0 %v964_v1  ;;  %5040 = vmatpush3.bf16.xpose.msra.mxu1 %v1062_v3 }
 0x200   : > { %5352 = vmatprep.subr.msk.bf16.mxu0 %vm843_vm1, %v944_v63  ;;  %5355 = vmatprep.subr.msk.bf16.mxu1 %vm843_vm1, %v1043_v4 }
 0x201   : > { %v1142_v6 = vpop.permute.xlu1 %1141  ;;  %v1045_v10 = vpop.permute.xlu0 %1044 }
 0x202   : > { %v1068_v15 = vsel %vm843_vm1, %v1045_v10, 0 }
 0x205   : > { %v1144_v7 = vpop.permute.xlu1 %1143  ;;  %v1695_v23 = vpop.permute.xlu0 %1694 }
 0x207   : > { %5028 = vmatpush3.bf16.xpose.msra.mxu0 %v967_v8  ;;  %5042 = vmatpush3.bf16.xpose.msra.mxu1 %v1065_v9 }
 0x208   : > { %5356 = vmatprep.subr.msk.bf16.mxu1 %vm843_vm1, %v1045_v10  ;;  %5357 = vmatprep.subr.msk.bf16.mxu0 %vm843_vm1, %v1140_v2 }
 0x209   : > { %v1146_v13 = vpop.permute.xlu1 %1145 }
 0x20d   : > { %v1606_v18 = vpop.permute.xlu1 %1605 }
 0x20e   : > { %5030 = vmatmul.mubr.msk.bf16.vlgmr.msra.gmra.mrb[0].mxu0 %vm843_vm1, %v6371_v62  ;;  %v1163_v62 = vsel %vm843_vm1, %v1142_v6, 0 }
 0x20f   : > { %5033 = vmatprep.mubr.msk.bf16.mxu0 %vm843_vm1, %v6375_v5  ;;  %5044 = vmatpush3.bf16.xpose.msra.mxu1 %v1068_v15  ;;  %v1697_v5 = vpop.permute.xlu0 %1696 }
 0x210   : > { %5054 = vmatpush3.bf16.xpose.msra.mxu0 %v1160_v22  ;;  %5069 = vmatprep.subr.bf16.mxu1 %v1606_v18 }
 0x211   : > { %5358 = vmatprep.subr.msk.bf16.mxu0 %vm843_vm1, %v1142_v6  ;;  %v1608_v24 = vpop.permute.xlu1 %1607 }
 0x215   : > { %v1610_v25 = vpop.permute.xlu1 %1609 }
 0x216   : > { %5034 = vmatmul.mubr.msk.bf16.gmra.mrb[4].mxu0 %vm843_vm1, %v6383_v16  ;;  %5046 = vmatmul.mubr.msk.bf16.vlgmr.msra.gmra.mrb[16].mxu1 %vm843_vm1, %v6385_v17  ;;  %v1612_v16 = vpop.permute.xlu0 %1611  ;;  %v1166_v17 = vsel %vm843_vm1, %v1144_v7, 0 }
 0x217   : > { %5049 = vmatprep.mubr.msk.bf16.mxu1 %vm843_vm1, %v6393_v30  ;;  %5061 = vmatprep.mubr.msk.bf16.mxu0 %vm843_vm1, %v6391_v29  ;;  %v1169_v30 = vsel %vm843_vm1, %v1146_v13, 0 }
 0x218   : > { %5056 = vmatpush3.bf16.xpose.msra.mxu0 %v1163_v62  ;;  %5070 = vmatpush3.bf16.msra.mxu1 %v1606_v18 }
 0x219   : > { %5359 = vmatprep.subr.msk.bf16.mxu0 %vm843_vm1, %v1144_v7  ;;  %5071 = vmatprep.subr.bf16.mxu1 %v1608_v24  ;;  %v1701_v26 = vpop.permute.xlu1 %1700 }
 0x21a   : > { %v6493_v29 = vpop.permute.xlu0 %1783 }
 0x21c   : > { %5072 = vmatpush3.bf16.msra.mxu1 %v1608_v24 }
 0x21d   : > { %5073 = vmatprep.subr.bf16.mxu1 %v1610_v25  ;;  %v6497_v31 = vpop.permute.xlu1 %1872 }
 0x21e   : > { %5050 = vmatmul.mubr.msk.bf16.gmra.mrb[20].mxu1 %vm843_vm1, %v6401_v38 }
 0x220   : > { %5058 = vmatpush3.bf16.xpose.msra.mxu0 %v1166_v17  ;;  %5074 = vmatpush3.bf16.msra.mxu1 %v1610_v25 }
 0x221   : > { %5360 = vmatprep.subr.msk.bf16.mxu0 %vm843_vm1, %v1146_v13  ;;  %5075 = vmatprep.subr.bf16.mxu1 %v1612_v16  ;;  %v6499_v32 = vpop.permute.xlu1 %1874 }
 0x224   : > { %5076 = vmatpush3.bf16.msra.mxu1 %v1612_v16 }
 0x225   : > { %5101 = vmatprep.subr.bf16.mxu1 %v6493_v29  ;;  %v1699_v33 = vpop.permute.xlu1 %1698 }
 0x228   : > { %5060 = vmatpush3.bf16.xpose.msra.mxu0 %v1169_v30 }
 0x229   : > { %5085 = vmatprep.subr.bf16.mxu0 %v1695_v23 }
 0x22f   : > { %5062 = vmatmul.mubr.msk.bf16.vlgmr.msra.gmra.mrb[8].mxu0 %vm843_vm1, %v6399_v37 }
 0x230   : > { %5065 = vmatprep.mubr.msk.bf16.mxu0 %vm843_vm1, %v6409_v46  ;;  %5086 = vmatpush3.bf16.msra.mxu0 %v1695_v23 }
 0x231   : > { %5087 = vmatprep.subr.bf16.mxu0 %v1697_v5 }
 0x234   : > { %5088 = vmatpush3.bf16.msra.mxu0 %v1697_v5 }
 0x235   : > { %5089 = vmatprep.subr.bf16.mxu0 %v1699_v33 }
 0x237   : > { %5066 = vmatmul.mubr.msk.bf16.gmra.mrb[12].mxu0 %vm843_vm1, %v6415_v51 }
 0x238   : > { %5090 = vmatpush3.bf16.msra.mxu0 %v1699_v33 }
 0x239   : > { %5091 = vmatprep.subr.bf16.mxu0 %v1701_v26 }
 0x23c   : > { %5092 = vmatpush3.bf16.msra.mxu0 %v1701_v26 }
 0x23d   : > { %5117 = vmatprep.subr.bf16.mxu0 %v6497_v31 }
 0x283   : > { %v6508_v34 = vpop.f32.mrb[8].mxu1 }
 0x284   : > { %v6510_v35 = vpop.f32.mrb[9].mxu1  ;;  %v1243_v36 = vsel %vm1236_vm2, %v6508_v34, -inf }
 0x285   : > { %1244 = vmax.xlane.f32.xlu0 %v1243_v36  ;;  %v6514_v37 = vpop.f32.mrb[10].mxu1  ;;  %v1237_v43 = vsel %vm1236_vm2, %v6510_v35, -inf }
 0x286   : > { %v6516_v39 = vpop.f32.mrb[11].mxu1  ;;  %v1246_v47 = vsel %vm1236_vm2, %v6514_v37, -inf }
 0x287   : > { %v1240_v41 = vsel %vm1236_vm2, %v6516_v39, -inf }
 0x288   : > { %1241 = vmax.xlane.f32.xlu1 %v1240_v41 }
 0x289   : > { %1238 = vmax.xlane.f32.xlu0 %v1237_v43 }
 0x28b   : > { %v6522_v44 = vpop.f32.mrb[12].mxu1 }
 0x28c   : > { %v6524_v45 = vpop.f32.mrb[13].mxu1  ;;  %v1255_v48 = vsel %vm1236_vm2, %v6522_v44, -inf }
 0x28d   : > { %1247 = vmax.xlane.f32.xlu0 %v1246_v47  ;;  %1256 = vmax.xlane.f32.xlu1 %v1255_v48  ;;  %v6530_v49 = vpop.f32.mrb[14].mxu1  ;;  %v1249_v53 = vsel %vm1236_vm2, %v6524_v45, -inf  ;;  %v6614_v47 = vpop.permute.xlu0 %1785 }
 0x28e   : > { %v6532_v50 = vpop.f32.mrb[15].mxu1  ;;  %v1258_v55 = vsel %vm1236_vm2, %v6530_v49, -inf }
 0x28f   : > { %v1252_v56 = vsel %vm1236_vm2, %v6532_v50, -inf }
 0x291   : > { %1250 = vmax.xlane.f32.xlu1 %v1249_v53  ;;  %1259 = vmax.xlane.f32.xlu0 %v1258_v55 }
 0x295   : > { %1253 = vmax.xlane.f32.xlu0 %v1252_v56 }
 0x2e1   : > { %v6540_v57 = vpop.f32.mrb[0].mxu0 }
 0x2e2   : > { %v6542_v42 = vpop.f32.mrb[1].mxu0  ;;  %v1267_v58 = vsel %vm1236_vm2, %v6540_v57, -inf }
 0x2e3   : > { %v6546_v59 = vpop.f32.mrb[2].mxu0  ;;  %1268 = vmax.xlane.f32.xlu1 %v1267_v58  ;;  %v1261_v7 = vsel %vm1236_vm2, %v6542_v42, -inf }
 0x2e4   : > { %v6548_v60 = vpop.f32.mrb[3].mxu0  ;;  %v1270_v40 = vsel %vm1236_vm2, %v6546_v59, -inf }
 0x2e5   : > { %1271 = vmax.xlane.f32.xlu0 %v1270_v40  ;;  %v1264_v8 = vsel %vm1236_vm2, %v6548_v60, -inf }
 0x2e9   : > { %v6552_v54 = vpop.f32.mrb[4].mxu0  ;;  %v6554_v61 = vpop.f32.mrb[16].mxu1 }
 0x2ea   : > { %v6556_v52 = vpop.f32.mrb[5].mxu0  ;;  %v6558_v63 = vpop.f32.mrb[17].mxu1  ;;  %v1291_v0 = vsel %vm1236_vm2, %v6554_v61, -inf  ;;  %v1279_v23 = vsel %vm1236_vm2, %v6552_v54, -inf }
 0x2eb   : > { %v6562_v1 = vpop.f32.mrb[6].mxu0  ;;  %1292 = vmax.xlane.f32.xlu1 %v1291_v0  ;;  %v6564_v2 = vpop.f32.mrb[18].mxu1  ;;  %v1285_v13 = vsel %vm1236_vm2, %v6558_v63, -inf  ;;  %v1273_v25 = vsel %vm1236_vm2, %v6556_v52, -inf }
 0x2ec   : > { %v6566_v3 = vpop.f32.mrb[7].mxu0  ;;  %v6568_v4 = vpop.f32.mrb[19].mxu1  ;;  %v1294_v6 = vsel %vm1236_vm2, %v6564_v2, -inf  ;;  %v1282_v24 = vsel %vm1236_vm2, %v6562_v1, -inf }
 0x2ed   : > { %1295 = vmax.xlane.f32.xlu0 %v1294_v6  ;;  %v1288_v22 = vsel %vm1236_vm2, %v6568_v4, -inf  ;;  %v1276_v16 = vsel %vm1236_vm2, %v6566_v3, -inf  ;;  %v6630_v6 = vpop.permute.xlu0 %1787 }
 0x2ef   : > { %1262 = vmax.xlane.f32.xlu1 %v1261_v7 }
 0x2f1   : > { %1265 = vmax.xlane.f32.xlu0 %v1264_v8  ;;  %v6576_v9 = vpop.f32.mrb[20].mxu1 }
 0x2f2   : > { %v6578_v10 = vpop.f32.mrb[21].mxu1  ;;  %v1303_v62 = vsel %vm1236_vm2, %v6576_v9, -inf }
 0x2f3   : > { %1286 = vmax.xlane.f32.xlu1 %v1285_v13  ;;  %v6582_v15 = vpop.f32.mrb[22].mxu1  ;;  %v1297_v26 = vsel %vm1236_vm2, %v6578_v10, -inf }
 0x2f4   : > { %v6584_v18 = vpop.f32.mrb[23].mxu1  ;;  %v1306_v5 = vsel %vm1236_vm2, %v6582_v15, -inf }
 0x2f5   : > { %1289 = vmax.xlane.f32.xlu0 %v1288_v22  ;;  %v1300_v36 = vsel %vm1236_vm2, %v6584_v18, -inf }
 0x2f7   : > { %1280 = vmax.xlane.f32.xlu1 %v1279_v23 }
 0x2f9   : > { %1283 = vmax.xlane.f32.xlu0 %v1282_v24 }
 0x2fb   : > { %1304 = vmax.xlane.f32.xlu1 %v1303_v62 }
 0x2fd   : > { %1307 = vmax.xlane.f32.xlu0 %v1306_v5 }
 0x2ff   : > { %1274 = vmax.xlane.f32.xlu1 %v1273_v25 }
 0x301   : > { %1277 = vmax.xlane.f32.xlu0 %v1276_v16 }
 0x302   : > { %v6600_v17 = vpop.f32.mrb[8].mxu0 }
 0x303   : > { %v6604_v30 = vpop.f32.mrb[9].mxu0  ;;  %1298 = vmax.xlane.f32.xlu1 %v1297_v26  ;;  %v1315_v43 = vsel %vm1236_vm2, %v6600_v17, -inf }
 0x304   : > { %v6606_v33 = vpop.f32.mrb[10].mxu0  ;;  %v1309_v55 = vsel %vm1236_vm2, %v6604_v30, -inf }
 0x305   : > { %v6610_v41 = vpop.f32.mrb[11].mxu0  ;;  %1301 = vmax.xlane.f32.xlu0 %v1300_v36  ;;  %v1318_v48 = vsel %vm1236_vm2, %v6606_v33, -inf }
 0x306   : > { %v1312_v40 = vsel %vm1236_vm2, %v6610_v41, -inf }
 0x307   : > { %1316 = vmax.xlane.f32.xlu1 %v1315_v43 }
 0x309   : > { %1319 = vmax.xlane.f32.xlu0 %v1318_v48 }
 0x30a   : > { %v6618_v53 = vpop.f32.mrb[12].mxu0 }
 0x30b   : > { %v6622_v56 = vpop.f32.mrb[13].mxu0  ;;  %1310 = vmax.xlane.f32.xlu1 %v1309_v55  ;;  %v1327_v7 = vsel %vm1236_vm2, %v6618_v53, -inf }
 0x30c   : > { %v6624_v58 = vpop.f32.mrb[14].mxu0  ;;  %v1321_v22 = vsel %vm1236_vm2, %v6622_v56, -inf }
 0x30d   : > { %v6628_v0 = vpop.f32.mrb[15].mxu0  ;;  %1313 = vmax.xlane.f32.xlu0 %v1312_v40  ;;  %v1330_v8 = vsel %vm1236_vm2, %v6624_v58, -inf }
 0x30e   : > { %v1324_v24 = vsel %vm1236_vm2, %v6628_v0, -inf }
 0x30f   : > { %1328 = vmax.xlane.f32.xlu1 %v1327_v7 }
 0x311   : > { %1331 = vmax.xlane.f32.xlu0 %v1330_v8 }
 0x312   : > { %v1245_v13 = vpop.xlane.xlu0 %1244 }
 0x313   : > { %v1335_v23 = vsub.f32 %v6508_v34, %v1245_v13  ;;  %1322 = vmax.xlane.f32.xlu1 %v1321_v22 }
 0x315   : > { %v1369_v62 = vmul.f32 1.442695, %v1335_v23  ;;  %v1242_v5 = vpop.xlane.xlu1 %1241  ;;  %1325 = vmax.xlane.f32.xlu0 %v1324_v24 }
 0x316   : > { %v1239_v25 = vpop.xlane.xlu0 %1238 }
 0x317   : > { %5749 = vpow2.f32 %v1369_v62  ;;  %v1333_v16 = vsub.f32 %v6510_v35, %v1239_v25 }
 0x319   : > { %v1365_v26 = vmul.f32 1.442695, %v1333_v16  ;;  %v1334_v16 = vsub.f32 %v6516_v39, %v1242_v5 }
 0x31a   : > { %v1257_v36 = vpop.xlane.xlu1 %1256  ;;  %v1248_v24 = vpop.xlane.xlu0 %1247 }
 0x31b   : > { %5751 = vpow2.f32 %v1365_v26  ;;  %v1339_v43 = vsub.f32 %v6522_v44, %v1257_v36  ;;  %v1336_v62 = vsub.f32 %v6514_v37, %v1248_v24  ;;  %v1367_v36 = vmul.f32 1.442695, %v1334_v16 }
 0x31d   : > { %v1377_v48 = vmul.f32 1.442695, %v1339_v43  ;;  %v1371_v26 = vmul.f32 1.442695, %v1336_v62 }
 0x31e   : > { %v1251_v55 = vpop.xlane.xlu1 %1250  ;;  %v1260_v25 = vpop.xlane.xlu0 %1259 }
 0x31f   : > { %v1337_v34 = vsub.f32 %v6524_v45, %v1251_v55  ;;  %5753 = vpow2.f32 %v1377_v48  ;;  %v1340_v43 = vsub.f32 %v6530_v49, %v1260_v25 }
 0x321   : > { %v6644_v40 = vpop.eup %5749  ;;  %v1373_v7 = vmul.f32 1.442695, %v1337_v34 }
 0x322   : > { %v1435_v8 = vsel %vm1236_vm2, %v6644_v40, 0.0  ;;  %v1254_v48 = vpop.xlane.xlu0 %1253 }
 0x323   : > { %5755 = vpow2.f32 %v1373_v7  ;;  %1436 = vadd.xlane.f32.xlu1 %v1435_v8  ;;  %v1338_v55 = vsub.f32 %v6532_v50, %v1254_v48 }
 0x324   : > { %5757 = vpow2.f32 %v1371_v26 }
 0x325   : > { %v6648_v13 = vpop.eup %5751  ;;  %5759 = vpow2.f32 %v1367_v36  ;;  %v1375_v34 = vmul.f32 1.442695, %v1338_v55 }
 0x326   : > { %v1429_v35 = vsel %vm1236_vm2, %v6648_v13, 0.0 }
 0x327   : > { %1430 = vadd.xlane.f32.xlu1 %v1429_v35 }
 0x329   : > { %v6652_v44 = vpop.eup %5753 }
 0x32a   : > { %v1447_v45 = vsel %vm1236_vm2, %v6652_v44, 0.0 }
 0x32b   : > { %1876 = vrot.lane.b32.xlu0 %v6409_v46, %s6122_s29  ;;  %1448 = vadd.xlane.f32.xlu1 %v1447_v45  ;;  %v1379_v46 = vmul.f32 1.442695, %v1340_v43 }
 0x32d   : > { %v6658_v22 = vpop.eup %5755  ;;  %5761 = vpow2.f32 %v1379_v46 }
 0x32e   : > { %v1441_v23 = vsel %vm1236_vm2, %v6658_v22, 0.0  ;;  %v6666_v7 = vpop.eup %5757  ;;  %5763 = vpow2.f32 %v1375_v34 }
 0x32f   : > { %1442 = vadd.xlane.f32.xlu1 %v1441_v23  ;;  %v1438_v37 = vsel %vm1236_vm2, %v6666_v7, 0.0  ;;  %v6670_v8 = vpop.eup %5759 }
 0x330   : > { %v1432_v39 = vsel %vm1236_vm2, %v6670_v8, 0.0 }
 0x337   : > { %v6674_v49 = vpop.eup %5761 }
 0x338   : > { %v1450_v50 = vsel %vm1236_vm2, %v6674_v49, 0.0  ;;  %v6678_v5 = vpop.eup %5763 }
 0x339   : > { %v1444_v35 = vsel %vm1236_vm2, %v6678_v5, 0.0 }
 0x34a   : > { %1439 = vadd.xlane.f32.xlu0 %v1438_v37 }
 0x34e   : > { %1433 = vadd.xlane.f32.xlu0 %v1432_v39 }
 0x352   : > { %1451 = vadd.xlane.f32.xlu0 %v1450_v50 }
 0x356   : > { %1445 = vadd.xlane.f32.xlu0 %v1444_v35 }
 0x370   : > { %v1269_v45 = vpop.xlane.xlu1 %1268 }
 0x371   : > { %v1343_v23 = vsub.f32 %v6540_v57, %v1269_v45 }
 0x372   : > { %v1272_v24 = vpop.xlane.xlu0 %1271 }
 0x373   : > { %v1385_v62 = vmul.f32 1.442695, %v1343_v23  ;;  %v1344_v25 = vsub.f32 %v6546_v59, %v1272_v24 }
 0x375   : > { %5765 = vpow2.f32 %v1385_v62  ;;  %v1387_v16 = vmul.f32 1.442695, %v1344_v25 }
 0x377   : > { %5767 = vpow2.f32 %v1387_v16 }
 0x378   : > { %v1293_v26 = vpop.xlane.xlu1 %1292 }
 0x379   : > { %v1351_v36 = vsub.f32 %v6554_v61, %v1293_v26 }
 0x37a   : > { %v1296_v43 = vpop.xlane.xlu0 %1295 }
 0x37b   : > { %v1401_v48 = vmul.f32 1.442695, %v1351_v36  ;;  %v1352_v46 = vsub.f32 %v6564_v2, %v1296_v43 }
 0x37c   : > { %v1263_v55 = vpop.xlane.xlu1 %1262 }
 0x37d   : > { %5769 = vpow2.f32 %v1401_v48  ;;  %v1403_v34 = vmul.f32 1.442695, %v1352_v46  ;;  %v1341_v37 = vsub.f32 %v6542_v42, %v1263_v55 }
 0x37e   : > { %v1266_v57 = vpop.xlane.xlu0 %1265 }
 0x37f   : > { %v6687_v39 = vpop.eup %5765  ;;  %5771 = vpow2.f32 %v1403_v34  ;;  %v1381_v59 = vmul.f32 1.442695, %v1341_v37  ;;  %v1342_v50 = vsub.f32 %v6548_v60, %v1266_v57 }
 0x380   : > { %v1287_v35 = vpop.xlane.xlu1 %1286  ;;  %v1459_v61 = vsel %vm1236_vm2, %v6687_v39, 0.0 }
 0x381   : > { %v6692_v45 = vpop.eup %5767  ;;  %5773 = vpow2.f32 %v1381_v59  ;;  %v1383_v2 = vmul.f32 1.442695, %v1342_v50  ;;  %v1349_v23 = vsub.f32 %v6558_v63, %v1287_v35  ;;  %1460 = vadd.xlane.f32.xlu1 %v1459_v61 }
 0x382   : > { %v1290_v24 = vpop.xlane.xlu0 %1289  ;;  %v1462_v42 = vsel %vm1236_vm2, %v6692_v45, 0.0 }
 0x383   : > { %5775 = vpow2.f32 %v1383_v2  ;;  %v1397_v62 = vmul.f32 1.442695, %v1349_v23  ;;  %v1350_v25 = vsub.f32 %v6568_v4, %v1290_v24  ;;  %1463 = vadd.xlane.f32.xlu0 %v1462_v42 }
 0x384   : > { %v1281_v60 = vpop.xlane.xlu1 %1280 }
 0x385   : > { %5777 = vpow2.f32 %v1397_v62  ;;  %v1399_v16 = vmul.f32 1.442695, %v1350_v25  ;;  %v1347_v26 = vsub.f32 %v6552_v54, %v1281_v60 }
 0x386   : > { %v1284_v36 = vpop.xlane.xlu0 %1283 }
 0x387   : > { %v6699_v43 = vpop.eup %5769  ;;  %5779 = vpow2.f32 %v1399_v16  ;;  %v1393_v63 = vmul.f32 1.442695, %v1347_v26  ;;  %v1348_v48 = vsub.f32 %v6562_v1, %v1284_v36 }
 0x388   : > { %v1305_v46 = vpop.xlane.xlu1 %1304  ;;  %v1483_v55 = vsel %vm1236_vm2, %v6699_v43, 0.0 }
 0x389   : > { %v6704_v34 = vpop.eup %5771  ;;  %5781 = vpow2.f32 %v1393_v63  ;;  %v1395_v4 = vmul.f32 1.442695, %v1348_v48  ;;  %v1355_v37 = vsub.f32 %v6576_v9, %v1305_v46  ;;  %1484 = vadd.xlane.f32.xlu1 %v1483_v55 }
 0x38a   : > { %v1308_v57 = vpop.xlane.xlu0 %1307  ;;  %v1486_v54 = vsel %vm1236_vm2, %v6704_v34, 0.0 }
 0x38b   : > { %v6709_v59 = vpop.eup %5773  ;;  %5783 = vpow2.f32 %v1395_v4  ;;  %v1409_v50 = vmul.f32 1.442695, %v1355_v37  ;;  %1487 = vadd.xlane.f32.xlu0 %v1486_v54  ;;  %v1356_v9 = vsub.f32 %v6582_v15, %v1308_v57 }
 0x38c   : > { %v1275_v1 = vpop.xlane.xlu1 %1274  ;;  %v1453_v35 = vsel %vm1236_vm2, %v6709_v59, 0.0 }
 0x38d   : > { %v6713_v61 = vpop.eup %5775  ;;  %5785 = vpow2.f32 %v1409_v50  ;;  %v1345_v2 = vsub.f32 %v6556_v52, %v1275_v1  ;;  %1454 = vadd.xlane.f32.xlu1 %v1453_v35  ;;  %v1411_v36 = vmul.f32 1.442695, %v1356_v9 }
 0x38e   : > { %v1278_v23 = vpop.xlane.xlu0 %1277  ;;  %v1456_v24 = vsel %vm1236_vm2, %v6713_v61, 0.0 }
 0x38f   : > { %v6719_v42 = vpop.eup %5777  ;;  %v1389_v62 = vmul.f32 1.442695, %v1345_v2  ;;  %v1346_v25 = vsub.f32 %v6566_v3, %v1278_v23  ;;  %1457 = vadd.xlane.f32.xlu0 %v1456_v24 }
 0x390   : > { %v1299_v60 = vpop.xlane.xlu1 %1298  ;;  %v1477_v16 = vsel %vm1236_vm2, %v6719_v42, 0.0 }
 0x391   : > { %v6724_v26 = vpop.eup %5779  ;;  %5787 = vpow2.f32 %v1389_v62  ;;  %v1391_v52 = vmul.f32 1.442695, %v1346_v25  ;;  %v1353_v15 = vsub.f32 %v6578_v10, %v1299_v60  ;;  %1478 = vadd.xlane.f32.xlu1 %v1477_v16 }
 0x392   : > { %v1302_v63 = vpop.xlane.xlu0 %1301  ;;  %v1480_v48 = vsel %vm1236_vm2, %v6724_v26, 0.0 }
 0x393   : > { %v6729_v46 = vpop.eup %5781  ;;  %5789 = vpow2.f32 %v1391_v52  ;;  %v1405_v3 = vmul.f32 1.442695, %v1353_v15  ;;  %v1354_v55 = vsub.f32 %v6584_v18, %v1302_v63  ;;  %1481 = vadd.xlane.f32.xlu0 %v1480_v48 }
 0x394   : > { %v1317_v4 = vpop.xlane.xlu1 %1316  ;;  %v1471_v37 = vsel %vm1236_vm2, %v6729_v46, 0.0 }
 0x395   : > { %v6734_v57 = vpop.eup %5783  ;;  %5791 = vpow2.f32 %v1405_v3  ;;  %v1407_v10 = vmul.f32 1.442695, %v1354_v55  ;;  %v1359_v54 = vsub.f32 %v6600_v17, %v1317_v4  ;;  %1472 = vadd.xlane.f32.xlu1 %v1471_v37 }
 0x396   : > { %5793 = vpow2.f32 %v1411_v36  ;;  %v1320_v50 = vpop.xlane.xlu0 %1319  ;;  %v1474_v1 = vsel %vm1236_vm2, %v6734_v57, 0.0 }
 0x397   : > { %v6739_v35 = vpop.eup %5785  ;;  %5795 = vpow2.f32 %v1407_v10  ;;  %v1417_v18 = vmul.f32 1.442695, %v1359_v54  ;;  %v1360_v2 = vsub.f32 %v6606_v33, %v1320_v50  ;;  %1475 = vadd.xlane.f32.xlu0 %v1474_v1 }
 0x398   : > { %v1311_v9 = vpop.xlane.xlu1 %1310  ;;  %v1495_v23 = vsel %vm1236_vm2, %v6739_v35, 0.0 }
 0x399   : > { %v1419_v24 = vmul.f32 1.442695, %v1360_v2  ;;  %v1357_v17 = vsub.f32 %v6604_v30, %v1311_v9  ;;  %1496 = vadd.xlane.f32.xlu1 %v1495_v23  ;;  %5797 = vpow2.f32 %v1417_v18 }
 0x39a   : > { %v1314_v62 = vpop.xlane.xlu0 %1313 }
 0x39b   : > { %v6745_v25 = vpop.eup %5787  ;;  %5799 = vpow2.f32 %v1419_v24  ;;  %v1413_v60 = vmul.f32 1.442695, %v1357_v17  ;;  %v1358_v16 = vsub.f32 %v6610_v41, %v1314_v62 }
 0x39c   : > { %v1329_v52 = vpop.xlane.xlu1 %1328  ;;  %v1465_v33 = vsel %vm1236_vm2, %v6745_v25, 0.0 }
 0x39d   : > { %v6750_v15 = vpop.eup %5789  ;;  %v1415_v36 = vmul.f32 1.442695, %v1358_v16  ;;  %v1363_v63 = vsub.f32 %v6618_v53, %v1329_v52  ;;  %1466 = vadd.xlane.f32.xlu1 %v1465_v33  ;;  %5801 = vpow2.f32 %v1413_v60 }
 0x39e   : > { %v1332_v30 = vpop.xlane.xlu0 %1331  ;;  %v1468_v48 = vsel %vm1236_vm2, %v6750_v15, 0.0 }
 0x39f   : > { %v6755_v3 = vpop.eup %5791  ;;  %5803 = vpow2.f32 %v1415_v36  ;;  %v1425_v55 = vmul.f32 1.442695, %v1363_v63  ;;  %1469 = vadd.xlane.f32.xlu0 %v1468_v48  ;;  %v1364_v50 = vsub.f32 %v6624_v58, %v1332_v30 }
 0x3a0   : > { %v6757_v41 = vpop.eup %5793  ;;  %v1323_v4 = vpop.xlane.xlu1 %1322  ;;  %v1489_v37 = vsel %vm1236_vm2, %v6755_v3, 0.0 }
 0x3a1   : > { %v6761_v10 = vpop.eup %5795  ;;  %v1361_v53 = vsub.f32 %v6622_v56, %v1323_v4  ;;  %1490 = vadd.xlane.f32.xlu1 %v1489_v37  ;;  %5805 = vpow2.f32 %v1425_v55  ;;  %v1498_v9 = vsel %vm1236_vm2, %v6757_v41, 0.0  ;;  %v1427_v24 = vmul.f32 1.442695, %v1364_v50 }
 0x3a2   : > { %v1492_v54 = vsel %vm1236_vm2, %v6761_v10, 0.0  ;;  %v1326_v2 = vpop.xlane.xlu0 %1325 }
 0x3a3   : > { %v1421_v1 = vmul.f32 1.442695, %v1361_v53  ;;  %1493 = vadd.xlane.f32.xlu0 %v1492_v54  ;;  %v6767_v18 = vpop.eup %5797  ;;  %v1362_v17 = vsub.f32 %v6628_v0, %v1326_v2 }
 0x3a4   : > { %v1507_v62 = vsel %vm1236_vm2, %v6767_v18, 0.0 }
 0x3a5   : > { %v6771_v23 = vpop.eup %5799  ;;  %1499 = vadd.xlane.f32.xlu1 %v1498_v9  ;;  %5807 = vpow2.f32 %v1421_v1  ;;  %v1423_v52 = vmul.f32 1.442695, %v1362_v17 }
 0x3a6   : > { %v1510_v56 = vsel %vm1236_vm2, %v6771_v23, 0.0  ;;  %5809 = vpow2.f32 %v1427_v24  ;;  %v6806_v54 = vpop.permute.xlu0 %1876 }
 0x3a7   : > { %1511 = vadd.xlane.f32.xlu0 %v1510_v56  ;;  %v6776_v58 = vpop.eup %5801  ;;  %5811 = vpow2.f32 %v1423_v52 }
 0x3a8   : > { %v1501_v33 = vsel %vm1236_vm2, %v6776_v58, 0.0 }
 0x3a9   : > { %v6780_v60 = vpop.eup %5803  ;;  %1508 = vadd.xlane.f32.xlu1 %v1507_v62 }
 0x3aa   : > { %v1504_v16 = vsel %vm1236_vm2, %v6780_v60, 0.0 }
 0x3ab   : > { %1505 = vadd.xlane.f32.xlu0 %v1504_v16  ;;  %v6786_v36 = vpop.eup %5805 }
 0x3ac   : > { %v1519_v0 = vsel %vm1236_vm2, %v6786_v36, 0.0 }
 0x3ad   : > { %1502 = vadd.xlane.f32.xlu1 %v1501_v33 }
 0x3af   : > { %v6790_v63 = vpop.eup %5807 }
 0x3b0   : > { %v1513_v30 = vsel %vm1236_vm2, %v6790_v63, 0.0  ;;  %v6794_v48 = vpop.eup %5809  ;;  %v1437_v53 = vpop.xlane.xlu1 %1436 }
 0x3b1   : > { %1520 = vadd.xlane.f32.xlu1 %v1519_v0  ;;  %v1522_v55 = vsel %vm1236_vm2, %v6794_v48, 0.0  ;;  %v6798_v4 = vpop.eup %5811 }
 0x3b2   : > { %v1516_v37 = vsel %vm1236_vm2, %v6798_v4, 0.0 }
 0x3b4   : > { %v1431_v50 = vpop.xlane.xlu1 %1430 }
 0x3b5   : > { %1514 = vadd.xlane.f32.xlu1 %v1513_v30 }
 0x3b8   : > { %v1449_v2 = vpop.xlane.xlu1 %1448 }
 0x3b9   : > { %1523 = vadd.xlane.f32.xlu1 %v1522_v55 }
 0x3bc   : > { %v1443_v56 = vpop.xlane.xlu1 %1442 }
 0x3bd   : > { %1517 = vadd.xlane.f32.xlu1 %v1516_v37 }
 0x3c1   : > { %1789 = vrot.lane.b32.xlu0 %v6401_v38, %s6122_s29 }
 0x3ce   : > { %1878 = vrot.lane.b32.xlu1 %v6415_v51, %s6122_s29  ;;  %s4816_s29 = sshll.u32 %s6244_s0, 10  ;;  %s7903_s0 = scalar_lea.sflag [#allocation3], %s583_s3 }
 0x3d7   : > { %v1440_v1 = vpop.xlane.xlu0 %1439 }
 0x3d8   : > { %5813 = vrcp.f32 %v1440_v1 }
 0x3d9   : > { %5815 = vrcp.f32 %v1431_v50 }
 0x3da   : > { %5817 = vrcp.f32 %v1437_v53 }
 0x3db   : > { %v1434_v9 = vpop.xlane.xlu0 %1433 }
 0x3dc   : > { %5819 = vrcp.f32 %v1434_v9 }
 0x3df   : > { %v1452_v24 = vpop.xlane.xlu0 %1451 }
 0x3e0   : > { %5821 = vrcp.f32 %v1452_v24 }
 0x3e1   : > { %5823 = vrcp.f32 %v1443_v56 }
 0x3e2   : > { %v5814_v17 = vpop.eup %5813  ;;  %5825 = vrcp.f32 %v1449_v2 }
 0x3e3   : > { %v1446_v38 = vpop.xlane.xlu0 %1445  ;;  %v5816_v62 = vpop.eup %5815  ;;  %v1560_v52 = vmul.f32 %v5814_v17, %v6666_v7 }
 0x3e4   : > { %5827 = vrcp.f32 %v1446_v38  ;;  %v5818_v51 = vpop.eup %5817  ;;  %v1557_v33 = vmul.f32 %v5816_v62, %v6648_v13 }
 0x3e5   : > { %v1559_v30 = vmul.f32 %v5818_v51, %v6644_v40 }
 0x3e6   : > { %v5820_v16 = vpop.eup %5819 }
 0x3e7   : > { %v1558_v0 = vmul.f32 %v5820_v16, %v6670_v8  ;;  %v1590_v37 = vpack.c.bf16 %v1560_v52, %v1559_v30 }
 0x3e9   : > { %v1589_v55 = vpack.c.bf16 %v1558_v0, %v1557_v33 }
 0x3ea   : > { %v5822_v53 = vpop.eup %5821 }
 0x3eb   : > { %5077 = vmatprep.mubr.msk.bf16.mxu1 %vm1236_vm2, %v1589_v55  ;;  %v5824_v50 = vpop.eup %5823  ;;  %v1564_v13 = vmul.f32 %v5822_v53, %v6674_v49 }
 0x3ec   : > { %5078 = vmatmul.mubr.msk.bf16.vlgmr.msra.gmra.mrb[24].mxu1 %vm1236_vm2, %v1590_v37  ;;  %v5826_v1 = vpop.eup %5825  ;;  %v1561_v7 = vmul.f32 %v5824_v50, %v6658_v22 }
 0x3ed   : > { %5102 = vmatpush3.bf16.msra.mxu1 %v6493_v29  ;;  %v1563_v8 = vmul.f32 %v5826_v1, %v6652_v44 }
 0x3ee   : > { %v5828_v2 = vpop.eup %5827  ;;  %5103 = vmatprep.subr.bf16.mxu1 %v6614_v47 }
 0x3ef   : > { %v1562_v40 = vmul.f32 %v5828_v2, %v6678_v5  ;;  %v1592_v56 = vpack.c.bf16 %v1564_v13, %v1563_v8 }
 0x3f1   : > { %5104 = vmatpush3.bf16.msra.mxu1 %v6614_v47  ;;  %v1591_v9 = vpack.c.bf16 %v1562_v40, %v1561_v7 }
 0x3f2   : > { %5105 = vmatprep.subr.bf16.mxu1 %v6630_v6 }
 0x3f3   : > { %5081 = vmatprep.mubr.msk.bf16.mxu1 %vm1236_vm2, %v1591_v9 }
 0x3f4   : > { %5082 = vmatmul.mubr.msk.bf16.gmra.mrb[28].mxu1 %vm1236_vm2, %v1592_v56 }
 0x3f5   : > { %5106 = vmatpush3.bf16.msra.mxu1 %v6630_v6 }
 0x40e   : > { %v1461_v29 = vpop.xlane.xlu1 %1460 }
 0x410   : > { %v1464_v49 = vpop.xlane.xlu0 %1463 }
 0x411   : > { %5829 = vrcp.f32 %v1464_v49 }
 0x416   : > { %v1485_v24 = vpop.xlane.xlu1 %1484 }
 0x418   : > { %v1488_v22 = vpop.xlane.xlu0 %1487 }
 0x41a   : > { %v1455_v5 = vpop.xlane.xlu1 %1454 }
 0x41b   : > { %5831 = vrcp.f32 %v1455_v5  ;;  %v5830_v62 = vpop.eup %5829 }
 0x41c   : > { %5833 = vrcp.f32 %v1461_v29  ;;  %v1458_v44 = vpop.xlane.xlu0 %1457  ;;  %v1568_v33 = vmul.f32 %v5830_v62, %v6692_v45 }
 0x41d   : > { %5835 = vrcp.f32 %v1458_v44 }
 0x41e   : > { %v1479_v47 = vpop.xlane.xlu1 %1478 }
 0x41f   : > { %5837 = vrcp.f32 %v1479_v47 }
 0x420   : > { %v1482_v17 = vpop.xlane.xlu0 %1481 }
 0x421   : > { %5839 = vrcp.f32 %v1482_v17 }
 0x422   : > { %v1473_v38 = vpop.xlane.xlu1 %1472 }
 0x424   : > { %v1476_v0 = vpop.xlane.xlu0 %1475 }
 0x425   : > { %v5832_v51 = vpop.eup %5831  ;;  %5841 = vrcp.f32 %v1476_v0 }
 0x426   : > { %v5834_v16 = vpop.eup %5833  ;;  %v1497_v52 = vpop.xlane.xlu1 %1496  ;;  %v1565_v30 = vmul.f32 %v5832_v51, %v6709_v59 }
 0x427   : > { %v5836_v6 = vpop.eup %5835  ;;  %v1567_v53 = vmul.f32 %v5834_v16, %v6687_v39 }
 0x428   : > { %v1566_v55 = vmul.f32 %v5836_v6, %v6713_v61 }
 0x429   : > { %v5838_v37 = vpop.eup %5837  ;;  %v1594_v13 = vpack.c.bf16 %v1568_v33, %v1567_v53 }
 0x42a   : > { %v1467_v50 = vpop.xlane.xlu1 %1466  ;;  %v1593_v1 = vpack.c.bf16 %v1566_v55, %v1565_v30  ;;  %v1573_v45 = vmul.f32 %v5838_v37, %v6719_v42 }
 0x42b   : > { %v5840_v2 = vpop.eup %5839  ;;  %5843 = vrcp.f32 %v1467_v50 }
 0x42c   : > { %5845 = vrcp.f32 %v1473_v38  ;;  %5093 = vmatprep.mubr.msk.bf16.mxu0 %vm1236_vm2, %v1593_v1  ;;  %v1470_v7 = vpop.xlane.xlu0 %1469  ;;  %v1574_v40 = vmul.f32 %v5840_v2, %v6724_v26 }
 0x42d   : > { %5847 = vrcp.f32 %v1470_v7  ;;  %5094 = vmatmul.mubr.msk.bf16.vlgmr.msra.gmra.mrb[16].mxu0 %vm1236_vm2, %v1594_v13 }
 0x42e   : > { %5849 = vrcp.f32 %v1488_v22  ;;  %5118 = vmatpush3.bf16.msra.mxu0 %v6497_v31  ;;  %v1491_v39 = vpop.xlane.xlu1 %1490  ;;  %v1597_v59 = vpack.c.bf16 %v1574_v40, %v1573_v45 }
 0x42f   : > { %5851 = vrcp.f32 %v1485_v24  ;;  %5119 = vmatprep.subr.bf16.mxu0 %v6499_v32  ;;  %v5842_v26 = vpop.eup %5841 }
 0x430   : > { %5853 = vrcp.f32 %v1491_v39  ;;  %5109 = vmatprep.mubr.msk.bf16.mxu1 %vm1236_vm2, %v1597_v59  ;;  %v1494_v61 = vpop.xlane.xlu0 %1493  ;;  %v1572_v49 = vmul.f32 %v5842_v26, %v6734_v57 }
 0x431   : > { %5855 = vrcp.f32 %v1494_v61 }
 0x432   : > { %5120 = vmatpush3.bf16.msra.mxu0 %v6499_v32  ;;  %v1500_v42 = vpop.xlane.xlu1 %1499 }
 0x433   : > { %5121 = vmatprep.subr.bf16.mxu0 %v6806_v54  ;;  %5857 = vrcp.f32 %v1500_v42 }
 0x434   : > { %v1512_v8 = vpop.xlane.xlu0 %1511  ;;  %5859 = vrcp.f32 %v1497_v52 }
 0x435   : > { %v5844_v9 = vpop.eup %5843 }
 0x436   : > { %v5846_v56 = vpop.eup %5845  ;;  %5122 = vmatpush3.bf16.msra.mxu0 %v6806_v54  ;;  %v1509_v31 = vpop.xlane.xlu1 %1508  ;;  %v1569_v5 = vmul.f32 %v5844_v9, %v6745_v25 }
 0x437   : > { %v5848_v29 = vpop.eup %5847  ;;  %v1571_v47 = vmul.f32 %v5846_v56, %v6729_v46 }
 0x438   : > { %v5850_v24 = vpop.eup %5849  ;;  %v1506_v22 = vpop.xlane.xlu0 %1505  ;;  %v1570_v32 = vmul.f32 %v5848_v29, %v6750_v15 }
 0x439   : > { %v5852_v44 = vpop.eup %5851  ;;  %5861 = vrcp.f32 %v1506_v22  ;;  %v1576_v54 = vmul.f32 %v5850_v24, %v6704_v34  ;;  %v1596_v16 = vpack.c.bf16 %v1572_v49, %v1571_v47 }
 0x43a   : > { %v5854_v17 = vpop.eup %5853  ;;  %v1503_v38 = vpop.xlane.xlu1 %1502  ;;  %v1595_v62 = vpack.c.bf16 %v1570_v32, %v1569_v5  ;;  %v1575_v25 = vmul.f32 %v5852_v44, %v6699_v43 }
 0x43b   : > { %v5856_v51 = vpop.eup %5855  ;;  %5863 = vrcp.f32 %v1503_v38  ;;  %v1577_v46 = vmul.f32 %v5854_v17, %v6755_v3 }
 0x43c   : > { %5097 = vmatprep.mubr.msk.bf16.mxu0 %vm1236_vm2, %v1595_v62  ;;  %v1790_v57 = vpop.permute.xlu0 %1789  ;;  %v1578_v52 = vmul.f32 %v5856_v51, %v6761_v10  ;;  %v1598_v6 = vpack.c.bf16 %v1576_v54, %v1575_v25  ;;  %5865 = vrcp.f32 %v1509_v31 }
 0x43d   : > { %5098 = vmatmul.mubr.msk.bf16.gmra.mrb[20].mxu0 %vm1236_vm2, %v1596_v16  ;;  %5107 = vmatprep.subr.bf16.mxu1 %v1790_v57  ;;  %v5858_v33 = vpop.eup %5857  ;;  %5867 = vrcp.f32 %v1512_v8 }
 0x43e   : > { %v1521_v15 = vpop.xlane.xlu1 %1520  ;;  %5108 = vmatpush3.bf16.msra.mxu1 %v1790_v57  ;;  %v1599_v34 = vpack.c.bf16 %v1578_v52, %v1577_v46  ;;  %v5860_v0 = vpop.eup %5859  ;;  %v1580_v43 = vmul.f32 %v5858_v33, %v6757_v41 }
 0x43f   : > { %v1579_v37 = vmul.f32 %v5860_v0, %v6739_v35 }
 0x441   : > { %5110 = vmatmul.mubr.msk.bf16.vlgmr.msra.gmra.mrb[32].mxu1 %vm1236_vm2, %v1598_v6  ;;  %v1600_v1 = vpack.c.bf16 %v1580_v43, %v1579_v37  ;;  %v5728_v37 = vld [vmem:[%s7950_s5 + $0x8] sm:$0xff]  }
 0x442   : > { %v1515_v30 = vpop.xlane.xlu1 %1514  ;;  %5113 = vmatprep.mubr.msk.bf16.mxu1 %vm1236_vm2, %v1599_v34 }
 0x443   : > { %v5862_v10 = vpop.eup %5861 }
 0x444   : > { %v1582_v50 = vmul.f32 %v5862_v10, %v6780_v60 }
 0x445   : > { %v5864_v55 = vpop.eup %5863 }
 0x446   : > { %v1524_v53 = vpop.xlane.xlu1 %1523  ;;  %v1581_v3 = vmul.f32 %v5864_v55, %v6776_v58  ;;  %v5866_v13 = vpop.eup %5865 }
 0x447   : > { %5869 = vrcp.f32 %v1524_v53  ;;  %v5868_v41 = vpop.eup %5867  ;;  %v1583_v35 = vmul.f32 %v5866_v13, %v6767_v18 }
 0x448   : > { %v1601_v2 = vpack.c.bf16 %v1582_v50, %v1581_v3  ;;  %5871 = vrcp.f32 %v1515_v30  ;;  %v1584_v58 = vmul.f32 %v5868_v41, %v6771_v23 }
 0x449   : > { %5114 = vmatmul.mubr.msk.bf16.gmra.mrb[36].mxu1 %vm1236_vm2, %v1600_v1  ;;  %5873 = vrcp.f32 %v1521_v15  ;;  %v5727_v15 = vld [vmem:[%s7950_s5] sm:$0xff]  }
 0x44a   : > { %v1518_v7 = vpop.xlane.xlu1 %1517  ;;  %5125 = vmatprep.mubr.msk.bf16.mxu0 %vm1236_vm2, %v1601_v2  ;;  %v1602_v60 = vpack.c.bf16 %v1584_v58, %v1583_v35  ;;  %5133 = vmatprep.subr.bf16.mxu1 %v5727_v15 }
 0x44b   : > { %5875 = vrcp.f32 %v1518_v7  ;;  %5134 = vmatpush3.bf16.msra.mxu1 %v5727_v15 }
 0x44c   : > { %5135 = vmatprep.subr.bf16.mxu1 %v5728_v37 }
 0x44e   : > { %v1879_v45 = vpop.permute.xlu1 %1878 }
 0x44f   : > { %5123 = vmatprep.subr.bf16.mxu0 %v1879_v45  ;;  %5136 = vmatpush3.bf16.msra.mxu1 %v5728_v37 }
 0x450   : > { %5124 = vmatpush3.bf16.msra.mxu0 %v1879_v45 }
 0x451   : > { %v5870_v40 = vpop.eup %5869 }
 0x452   : > { %v5872_v39 = vpop.eup %5871  ;;  %v1588_v42 = vmul.f32 %v5870_v40, %v6794_v48 }
 0x453   : > { %5126 = vmatmul.mubr.msk.bf16.vlgmr.msra.gmra.mrb[24].mxu0 %vm1236_vm2, %v1602_v60  ;;  %v5874_v59 = vpop.eup %5873  ;;  %v1585_v26 = vmul.f32 %v5872_v39, %v6790_v63 }
 0x454   : > { %v1587_v18 = vmul.f32 %v5874_v59, %v6786_v36 }
 0x455   : > { %v5876_v61 = vpop.eup %5875 }
 0x456   : > { %v1586_v8 = vmul.f32 %v5876_v61, %v6798_v4  ;;  %v1604_v56 = vpack.c.bf16 %v1588_v42, %v1587_v18 }
 0x458   : > { %v1603_v9 = vpack.c.bf16 %v1586_v8, %v1585_v26 }
 0x45a   : > { %5129 = vmatprep.mubr.msk.bf16.mxu0 %vm1236_vm2, %v1603_v9 }
 0x45b   : > { %5130 = vmatmul.mubr.msk.bf16.gmra.mrb[28].mxu0 %vm1236_vm2, %v1604_v56 }
 0x4bf   : > { %v6866_v23 = vpop.f32.mrb[24].mxu1 }
 0x4c0   : > { %v6868_v31 = vpop.f32.mrb[25].mxu1 }
 0x4c1   : > { %v6870_v29 = vpop.f32.mrb[26].mxu1 }
 0x4c2   : > { %v6872_v49 = vpop.f32.mrb[27].mxu1 }
 0x4c7   : > { %v6874_v48 = vpop.f32.mrb[28].mxu1 }
 0x4c8   : > { %v6876_v63 = vpop.f32.mrb[29].mxu1 }
 0x4c9   : > { %v6878_v4 = vpop.f32.mrb[30].mxu1 }
 0x4ca   : > { %v6880_v36 = vpop.f32.mrb[31].mxu1 }
 0x500   : > { %v5095_v24 = vpop.f32.mrb[16].mxu0 }
 0x501   : > { %v1752_v22 = vpop.f32.mrb[17].mxu0 }
 0x502   : > { %v5096_v5 = vpop.f32.mrb[18].mxu0 }
 0x503   : > { %v5485_v32 = vpack.i.bf16 %v5096_v5, %v5095_v24  ;;  %v1755_v44 = vpop.f32.mrb[19].mxu0 }
 0x504   : > { %v5495_v47 = vpack.i.bf16 %v1755_v44, %v1752_v22 }
 0x505   : > { %5486 = vrot.lane.b32.xlu0 %v5485_v32, %s7978_s27 }
 0x510   : > { %v5099_v17 = vpop.f32.mrb[20].mxu0 }
 0x511   : > { %v1768_v38 = vpop.f32.mrb[21].mxu0 }
 0x512   : > { %v5100_v62 = vpop.f32.mrb[22].mxu0 }
 0x513   : > { %v5520_v51 = vpack.i.bf16 %v5100_v62, %v5099_v17  ;;  %v1771_v54 = vpop.f32.mrb[23].mxu0 }
 0x514   : > { %v5515_v16 = vpack.i.bf16 %v1771_v54, %v1768_v38  ;;  %v5111_v57 = vpop.f32.mrb[32].mxu1 }
 0x515   : > { %v1841_v52 = vpop.f32.mrb[33].mxu1 }
 0x516   : > { %v5112_v25 = vpop.f32.mrb[34].mxu1 }
 0x517   : > { %v5490_v46 = vpack.i.bf16 %v5112_v25, %v5111_v57  ;;  %v1844_v6 = vpop.f32.mrb[35].mxu1 }
 0x518   : > { %v5500_v33 = vpack.i.bf16 %v1844_v6, %v1841_v52 }
 0x519   : > { %5491 = vrot.lane.b32.xlu0 %v5490_v46, %s7976_s30 }
 0x51c   : > { %v5115_v34 = vpop.f32.mrb[36].mxu1 }
 0x51d   : > { %5496 = vrot.lane.b32.xlu0 %v5495_v47, %s7978_s27  ;;  %v1857_v0 = vpop.f32.mrb[37].mxu1 }
 0x51e   : > { %v5116_v30 = vpop.f32.mrb[38].mxu1 }
 0x51f   : > { %v5530_v10 = vpack.i.bf16 %v5116_v30, %v5115_v34  ;;  %v1860_v43 = vpop.f32.mrb[39].mxu1 }
 0x520   : > { %v5525_v55 = vpack.i.bf16 %v1860_v43, %v1857_v0 }
 0x521   : > { %5501 = vrot.lane.b32.xlu0 %v5500_v33, %s7976_s30 }
 0x526   : > { %v5127_v53 = vpop.f32.mrb[24].mxu0 }
 0x527   : > { %v1930_v3 = vpop.f32.mrb[25].mxu0 }
 0x528   : > { %v5128_v50 = vpop.f32.mrb[26].mxu0 }
 0x529   : > { %v5510_v1 = vpack.i.bf16 %v5128_v50, %v5127_v53  ;;  %v1933_v2 = vpop.f32.mrb[27].mxu0 }
 0x52a   : > { %v5505_v13 = vpack.i.bf16 %v1933_v2, %v1930_v3 }
 0x52b   : > { %5511 = vrot.lane.b32.xlu1 %v5510_v1, %s7974_s18 }
 0x52c   : > { %5506 = vrot.lane.b32.xlu0 %v5505_v13, %s7974_s18 }
 0x52e   : > { %v5131_v7 = vpop.f32.mrb[28].mxu0 }
 0x52f   : > { %5521 = vrot.lane.b32.xlu1 %v5520_v51, %s7978_s27  ;;  %v1946_v41 = vpop.f32.mrb[29].mxu0 }
 0x530   : > { %v5132_v35 = vpop.f32.mrb[30].mxu0  ;;  %5516 = vrot.lane.b32.xlu0 %v5515_v16, %s7978_s27 }
 0x531   : > { %v5540_v45 = vpack.i.bf16 %v5132_v35, %v5131_v7  ;;  %v1949_v58 = vpop.f32.mrb[31].mxu0 }
 0x532   : > { %v5535_v60 = vpack.i.bf16 %v1949_v58, %v1946_v41 }
 0x533   : > { %5531 = vrot.lane.b32.xlu1 %v5530_v10, %s7976_s30 }
 0x534   : > { %5526 = vrot.lane.b32.xlu0 %v5525_v55, %s7976_s30  ;;  %s7998_s30 = sld [smem:[#allocation14_spill]] }
 0x537   : > { %5541 = vrot.lane.b32.xlu1 %v5540_v45, %s7974_s18 }
 0x538   : > { %5536 = vrot.lane.b32.xlu0 %v5535_v60, %s7974_s18  ;;  %s6126_s18 = smov [#allocation2]  }
 0x539   : > { %s6058_s23 = sshll.u32 %s6126_s18, 4  ;;  %s6059_s23 = int_to_ptr.vmem [resolvable:$false] %s6058_s23 }
 0x53a   : > { %s596_s27 = scalar_lea.vmem %s7998_s30, %s4691_s2  ;;  %s8001_s30 = smov 24  }
 0x53b   : > { %s6060_s24 = scalar_lea.vmem %s6059_s23, 2048 }
 0x577   : > { %v5487_v40 = vpop.permute.xlu0 %5486 }
 0x578   : > { %v5489_v61 = vunpack.i.h.bf16 %v5487_v40  ;;  %v5488_v42 = vunpack.i.l.bf16 %v5487_v40 }
 0x57a   : > { %v2060_v5 = vsel %vm843_vm1, %v6870_v29, %v5489_v61  ;;  %v2059_v32 = vsel %vm843_vm1, %v6866_v23, %v5488_v42 }
 0x58b   : > { %v5492_v39 = vpop.permute.xlu0 %5491 }
 0x58c   : > { %v5494_v8 = vunpack.i.h.bf16 %v5492_v39  ;;  %v5493_v18 = vunpack.i.l.bf16 %v5492_v39 }
 0x58e   : > { %v2068_v47 = vsel %vm2065_vm3, %v2059_v32, %v5493_v18  ;;  %v2069_v17 = vsel %vm2065_vm3, %v2060_v5, %v5494_v8 }
 0x58f   : > { %v5497_v59 = vpop.permute.xlu0 %5496 }
 0x590   : > { %v5499_v9 = vunpack.i.h.bf16 %v5497_v59  ;;  %v5498_v56 = vunpack.i.l.bf16 %v5497_v59 }
 0x592   : > { %v2058_v54 = vsel %vm843_vm1, %v6872_v49, %v5499_v9  ;;  %v2057_v16 = vsel %vm843_vm1, %v6868_v31, %v5498_v56  ;;  %v4731_v9 = vld [vmem:[%s7951_s6] ss:$0 sm:$0xff] }
 0x593   : > { %v5502_v26 = vpop.permute.xlu0 %5501 }
 0x594   : > { %v5504_v24 = vunpack.i.h.bf16 %v5502_v26  ;;  %v5503_v22 = vunpack.i.l.bf16 %v5502_v26 }
 0x596   : > { %v2066_v52 = vsel %vm2065_vm3, %v2057_v16, %v5503_v22  ;;  %v2067_v23 = vsel %vm2065_vm3, %v2058_v54, %v5504_v24 }
 0x59d   : > { %v5512_v44 = vpop.permute.xlu1 %5511 }
 0x59e   : > { %v5514_v38 = vunpack.i.h.bf16 %v5512_v44  ;;  %v5513_v62 = vunpack.i.l.bf16 %v5512_v44  ;;  %v5507_v51 = vpop.permute.xlu0 %5506 }
 0x59f   : > { %v5509_v57 = vunpack.i.h.bf16 %v5507_v51  ;;  %v5508_v29 = vunpack.i.l.bf16 %v5507_v51 }
 0x5a0   : > { %v2077_v25 = vsel %vm2074_vm4, %v2068_v47, %v5513_v62  ;;  %v2078_v15 = vsel %vm2074_vm4, %v2069_v17, %v5514_v38 }
 0x5a1   : > { %v2084_v46 = vpack.c.bf16 %v2078_v15, %v2077_v25  ;;  %v2075_v6 = vsel %vm2074_vm4, %v2066_v52, %v5508_v29  ;;  %v2076_v33 = vsel %vm2074_vm4, %v2067_v23, %v5509_v57  ;;  %v5522_v34 = vpop.permute.xlu1 %5521 }
 0x5a2   : > { %v5517_v49 = vpop.permute.xlu0 %5516  ;;  %v2083_v0 = vpack.c.bf16 %v2076_v33, %v2075_v6  ;;  %v5524_v31 = vunpack.i.h.bf16 %v5522_v34  ;;  %v5523_v30 = vunpack.i.l.bf16 %v5522_v34 }
 0x5a3   : > { %v5519_v43 = vunpack.i.h.bf16 %v5517_v49  ;;  %v5518_v55 = vunpack.i.l.bf16 %v5517_v49 }
 0x5a4   : > { %5137 = vmatprep.mubr.msk.bf16.mxu1 %vm652_vm0, %v2083_v0  ;;  %v2064_v2 = vsel %vm843_vm1, %v6878_v4, %v5524_v31  ;;  %v2063_v13 = vsel %vm843_vm1, %v6874_v48, %v5523_v30 }
 0x5a5   : > { %v5532_v10 = vpop.permute.xlu1 %5531  ;;  %5138 = vmatmul.mubr.msk.bf16.vlgmr.msra.gmra.mrb[40].mxu1 %vm652_vm0, %v2084_v46  ;;  %v2062_v41 = vsel %vm843_vm1, %v6880_v36, %v5519_v43  ;;  %v2061_v35 = vsel %vm843_vm1, %v6876_v63, %v5518_v55  ;;  %v5733_v43 = vld [vmem:[%s596_s27 + $0x10] sm:$0xff]   ;;  %v5734_v55 = vld [vmem:[%s596_s27 + $0x18] sm:$0xff]  }
 0x5a6   : > { %v5527_v37 = vpop.permute.xlu0 %5526  ;;  %v5534_v53 = vunpack.i.h.bf16 %v5532_v10  ;;  %v5533_v3 = vunpack.i.l.bf16 %v5532_v10  ;;  %v5732_v10 = vld [vmem:[%s596_s27 + $0x8] sm:$0xff]  }
 0x5a7   : > { %v5529_v50 = vunpack.i.h.bf16 %v5527_v37  ;;  %v5528_v1 = vunpack.i.l.bf16 %v5527_v37 }
 0x5a8   : > { %v2073_v40 = vsel %vm2065_vm3, %v2064_v2, %v5534_v53  ;;  %v2072_v39 = vsel %vm2065_vm3, %v2063_v13, %v5533_v3 }
 0x5a9   : > { %v5542_v7 = vpop.permute.xlu1 %5541  ;;  %v2070_v4 = vsel %vm2065_vm3, %v2061_v35, %v5528_v1  ;;  %v2071_v48 = vsel %vm2065_vm3, %v2062_v41, %v5529_v50 }
 0x5aa   : > { %v5544_v45 = vunpack.i.h.bf16 %v5542_v7  ;;  %v5543_v58 = vunpack.i.l.bf16 %v5542_v7  ;;  %v5537_v60 = vpop.permute.xlu0 %5536 }
 0x5ab   : > { %v5539_v59 = vunpack.i.h.bf16 %v5537_v60  ;;  %v5538_v61 = vunpack.i.l.bf16 %v5537_v60 }
 0x5ac   : > { %v2081_v42 = vsel %vm2074_vm4, %v2072_v39, %v5543_v58  ;;  %v2082_v36 = vsel %vm2074_vm4, %v2073_v40, %v5544_v45 }
 0x5ad   : > { %v2079_v26 = vsel %vm2074_vm4, %v2070_v4, %v5538_v61  ;;  %v2080_v63 = vsel %vm2074_vm4, %v2071_v48, %v5539_v59  ;;  %v2086_v8 = vpack.c.bf16 %v2082_v36, %v2081_v42 }
 0x5ae   : > { %v2085_v18 = vpack.c.bf16 %v2080_v63, %v2079_v26 }
 0x5b0   : > { %5141 = vmatprep.mubr.msk.bf16.mxu1 %vm652_vm0, %v2085_v18 }
 0x5b1   : > { %5142 = vmatmul.mubr.msk.bf16.gmra.mrb[44].mxu1 %vm652_vm0, %v2086_v8 }
 0x678   : > { %v5139_v56 = vpop.f32.mrb[40].mxu1 }
 0x679   : > { %v2151_v24 = vpop.f32.mrb[41].mxu1  ;;  %v2160_v22 = vadd.f32 %v5139_v56, %v4731_v9 }
 0x67a   : > { %v2152_v5 = vadd.f32 %v4731_v9, %v2151_v24  ;;  %v5140_v32 = vpop.f32.mrb[42].mxu1 }
 0x67b   : > { %v2154_v44 = vpop.f32.mrb[43].mxu1  ;;  %v2184_v38 = vadd.f32 %v2160_v22, %v6306_v14  ;;  %v2163_v62 = vadd.f32 %v5140_v32, %v4731_v9 }
 0x67c   : > { %v2182_v47 = vadd.f32 %v2152_v5, %v6302_v11  ;;  %v2155_v17 = vadd.f32 %v4731_v9, %v2154_v44 }
 0x67d   : > { %v2185_v57 = vadd.f32 %v2163_v62, %v6314_v19  ;;  %v2196_v29 = vsel %vm652_vm0, %v2184_v38, 0.0 }
 0x67e   : > { %v2183_v51 = vadd.f32 %v2155_v17, %v6304_v12  ;;  %v2190_v54 = vsel %vm652_vm0, %v2182_v47, 0.0 }
 0x67f   : > { %2191 = vadd.xlane.f32.xlu0 %v2190_v54  ;;  %v2199_v14 = vsel %vm652_vm0, %v2185_v57, 0.0 }
 0x680   : > { %v2193_v16 = vsel %vm652_vm0, %v2183_v51, 0.0 }
 0x681   : > { %2194 = vadd.xlane.f32.xlu1 %v2193_v16 }
 0x683   : > { %2197 = vadd.xlane.f32.xlu0 %v2196_v29  ;;  %v5735_v29 = vld [vmem:[%s7952_s7] sm:$0xff]  }
 0x684   : > { %v5143_v52 = vpop.f32.mrb[44].mxu1  ;;  %5157 = vmatprep.subr.bf16.mxu1 %v5735_v29 }
 0x685   : > { %v2167_v23 = vpop.f32.mrb[45].mxu1  ;;  %v2176_v11 = vadd.f32 %v5143_v52, %v4731_v9  ;;  %5158 = vmatpush3.bf16.msra.mxu1 %v5735_v29  ;;  %v5736_v52 = vld [vmem:[%s7952_s7 + $0x8] sm:$0xff]  }
 0x686   : > { %v2168_v25 = vadd.f32 %v4731_v9, %v2167_v23  ;;  %v5144_v15 = vpop.f32.mrb[46].mxu1  ;;  %5159 = vmatprep.subr.bf16.mxu1 %v5736_v52  ;;  %v4738_v23 = vld [vmem:[%s7955_s10] ss:$0 sm:$0xff] }
 0x687   : > { %v2170_v46 = vpop.f32.mrb[47].mxu1  ;;  %2200 = vadd.xlane.f32.xlu0 %v2199_v14  ;;  %v2179_v6 = vadd.f32 %v5144_v15, %v4731_v9  ;;  %v2188_v34 = vadd.f32 %v2176_v11, %v6328_v27  ;;  %v5729_v27 = vld [vmem:[%s7954_s9] sm:$0xff]  }
 0x688   : > { %v2186_v12 = vadd.f32 %v2168_v25, %v6316_v20  ;;  %v2171_v33 = vadd.f32 %v4731_v9, %v2170_v46  ;;  %5145 = vmatprep.subr.bf16.mxu0 %v5729_v27 }
 0x689   : > { %v2189_v0 = vadd.f32 %v2179_v6, %v6330_v28  ;;  %v2208_v30 = vsel %vm652_vm0, %v2188_v34, 0.0  ;;  %v5731_v28 = vld [vmem:[%s596_s27] sm:$0xff]   ;;  %5146 = vmatpush3.bf16.msra.mxu0 %v5729_v27  ;;  %5160 = vmatpush3.bf16.msra.mxu1 %v5736_v52  ;;  %s8000_s27 = smov 16  }
 0x68a   : > { %v2187_v19 = vadd.f32 %v2171_v33, %v6318_v21  ;;  %v2202_v49 = vsel %vm652_vm0, %v2186_v12, 0.0  ;;  %v5730_v21 = vld [vmem:[%s7954_s9 + $0x8] sm:$0xff]   ;;  %5149 = vmatprep.mubr.msk.bf16.mxu0 %vm652_vm0, %v5731_v28 }
 0x68b   : > { %2203 = vadd.xlane.f32.xlu1 %v2202_v49  ;;  %v2211_v20 = vsel %vm652_vm0, %v2189_v0, 0.0  ;;  %5147 = vmatprep.subr.bf16.mxu0 %v5730_v21 }
 0x68c   : > { %v2205_v31 = vsel %vm652_vm0, %v2187_v19, 0.0 }
 0x68d   : > { %2206 = vadd.xlane.f32.xlu0 %v2205_v31  ;;  %5148 = vmatpush3.bf16.msra.mxu0 %v5730_v21 }
 0x68f   : > { %2209 = vadd.xlane.f32.xlu1 %v2208_v30 }
 0x690   : > { %5150 = vmatmul.mubr.msk.bf16.vlgmr.msra.gmra.mrb[32].mxu0 %vm652_vm0, %v5732_v10 }
 0x691   : > { %2212 = vadd.xlane.f32.xlu0 %v2211_v20  ;;  %5153 = vmatprep.mubr.msk.bf16.mxu0 %vm652_vm0, %v5733_v43 }
 0x698   : > { %5154 = vmatmul.mubr.msk.bf16.gmra.mrb[36].mxu0 %vm652_vm0, %v5734_v55 }
 0x70c   : > { %v2192_v37 = vpop.xlane.xlu0 %2191 }
 0x70d   : > { %v2215_v53 = vmul.f32 0.03125, %v2192_v37 }
 0x70e   : > { %v2195_v3 = vpop.xlane.xlu1 %2194 }
 0x70f   : > { %v6969_v50 = vsub.f32 %v2182_v47, %v2215_v53  ;;  %v2216_v1 = vmul.f32 0.03125, %v2195_v3 }
 0x710   : > { %v2198_v2 = vpop.xlane.xlu0 %2197 }
 0x711   : > { %v6971_v13 = vsub.f32 %v2183_v51, %v2216_v1  ;;  %v2217_v7 = vmul.f32 0.03125, %v2198_v2  ;;  %v2231_v41 = vmul.f32 %v6969_v50, %v6969_v50 }
 0x713   : > { %v6975_v35 = vsub.f32 %v2184_v38, %v2217_v7  ;;  %v2239_v45 = vsel %vm652_vm0, %v2231_v41, 0.0  ;;  %v2232_v58 = vmul.f32 %v6971_v13, %v6971_v13 }
 0x714   : > { %2240 = vadd.xlane.f32.xlu1 %v2239_v45  ;;  %v2201_v60 = vpop.xlane.xlu0 %2200 }
 0x715   : > { %v2218_v40 = vmul.f32 0.03125, %v2201_v60  ;;  %v2242_v39 = vsel %vm652_vm0, %v2232_v58, 0.0  ;;  %v2233_v59 = vmul.f32 %v6975_v35, %v6975_v35 }
 0x716   : > { %2243 = vadd.xlane.f32.xlu0 %v2242_v39 }
 0x717   : > { %v6983_v61 = vsub.f32 %v2185_v57, %v2218_v40  ;;  %v2245_v4 = vsel %vm652_vm0, %v2233_v59, 0.0  ;;  %v2295_v40 = vlaneseq }
 0x718   : > { %v2204_v48 = vpop.xlane.xlu1 %2203  ;;  %2246 = vadd.xlane.f32.xlu1 %v2245_v4 }
 0x719   : > { %v2219_v42 = vmul.f32 0.03125, %v2204_v48  ;;  %v2234_v36 = vmul.f32 %v6983_v61, %v6983_v61 }
 0x71a   : > { %v2207_v26 = vpop.xlane.xlu0 %2206 }
 0x71b   : > { %v6988_v63 = vsub.f32 %v2186_v12, %v2219_v42  ;;  %v2220_v8 = vmul.f32 0.03125, %v2207_v26  ;;  %v2248_v18 = vsel %vm652_vm0, %v2234_v36, 0.0  ;;  %v7061_v36 = vshrl.u32 %v2295_v40, 7 }
 0x71c   : > { %v2210_v9 = vpop.xlane.xlu1 %2209  ;;  %2249 = vadd.xlane.f32.xlu0 %v2248_v18 }
 0x71d   : > { %v6991_v56 = vsub.f32 %v2187_v19, %v2220_v8  ;;  %v2221_v24 = vmul.f32 0.03125, %v2210_v9  ;;  %v2235_v22 = vmul.f32 %v6988_v63, %v6988_v63  ;;  %v2297_v9 = vsub.s32 0, %v7061_v36 }
 0x71e   : > { %v2213_v5 = vpop.xlane.xlu0 %2212 }
 0x71f   : > { %v6995_v32 = vsub.f32 %v2188_v34, %v2221_v24  ;;  %v2222_v44 = vmul.f32 0.03125, %v2213_v5  ;;  %v2251_v47 = vsel %vm652_vm0, %v2235_v22, 0.0  ;;  %v2236_v17 = vmul.f32 %v6991_v56, %v6991_v56  ;;  %v600_v24 = vld [vmem:[%s7962_s17] sm:$0x3f] }
 0x720   : > { %2252 = vadd.xlane.f32.xlu1 %v2251_v47  ;;  %v2298_v47 = vrot.slane %v600_v24, %v2297_v9 }
 0x721   : > { %v7000_v38 = vsub.f32 %v2189_v0, %v2222_v44  ;;  %v2254_v62 = vsel %vm652_vm0, %v2236_v17, 0.0  ;;  %v2237_v51 = vmul.f32 %v6995_v32, %v6995_v32  ;;  %v2309_v17 = vsub.s32 1, %v7061_v36 }
 0x722   : > { %2255 = vadd.xlane.f32.xlu0 %v2254_v62 }
 0x723   : > { %v2257_v54 = vsel %vm652_vm0, %v2237_v51, 0.0  ;;  %v2238_v16 = vmul.f32 %v7000_v38, %v7000_v38 }
 0x724   : > { %2258 = vadd.xlane.f32.xlu1 %v2257_v54 }
 0x725   : > { %v2260_v57 = vsel %vm652_vm0, %v2238_v16, 0.0 }
 0x726   : > { %2261 = vadd.xlane.f32.xlu0 %v2260_v57 }
 0x763   : > { %v5151_v11 = vpop.f32.mrb[32].mxu0 }
 0x764   : > { %v2425_v25 = vadd.f32 %v5151_v11, %v4738_v23  ;;  %v2416_v15 = vpop.f32.mrb[33].mxu0 }
 0x765   : > { %v2417_v14 = vadd.f32 %v4738_v23, %v2416_v15  ;;  %v5152_v46 = vpop.f32.mrb[34].mxu0 }
 0x766   : > { %v2428_v12 = vadd.f32 %v5152_v46, %v4738_v23  ;;  %v2419_v6 = vpop.f32.mrb[35].mxu0 }
 0x767   : > { %v2420_v33 = vadd.f32 %v4738_v23, %v2419_v6 }
 0x768   : > { %v7018_v34 = vpack.i.bf16 %v2428_v12, %v2425_v25  ;;  %v7020_v19 = vpack.c.bf16 %v2428_v12, %v2425_v25  ;;  %v2310_v25 = vrot.slane %v600_v24, %v2309_v17 }
 0x769   : > { %v5545_v49 = vpack.i.bf16 %v2420_v33, %v2417_v14  ;;  %v7022_v0 = vpack.c.bf16 %v2420_v33, %v2417_v14 }
 0x76a   : > { %5551 = vrot.lane.b32.xlu0 %v7018_v34, %s6118_s19  ;;  %v2764_v53 = vsel %vm843_vm1, %v7020_v19, 0 }
 0x76b   : > { %v5155_v31 = vpop.f32.mrb[36].mxu0  ;;  %5546 = vrot.lane.b32.xlu1 %v5545_v49, %s6118_s19  ;;  %5361 = vmatprep.subr.msk.bf16.mxu0 %vm843_vm1, %v7022_v0  ;;  %v2761_v30 = vsel %vm843_vm1, %v7022_v0, 0 }
 0x76c   : > { %v2432_v20 = vpop.f32.mrb[37].mxu0  ;;  %5170 = vmatpush3.bf16.xpose.msra.mxu0 %v2761_v30  ;;  %v2441_v10 = vadd.f32 %v5155_v31, %v4738_v23 }
 0x76d   : > { %v2433_v27 = vadd.f32 %v4738_v23, %v2432_v20  ;;  %v5156_v21 = vpop.f32.mrb[38].mxu0  ;;  %5362 = vmatprep.subr.msk.bf16.mxu0 %vm843_vm1, %v7020_v19 }
 0x76e   : > { %v2435_v28 = vpop.f32.mrb[39].mxu0  ;;  %5566 = vrot.lane.b32.xlu0 %v5545_v49, %s6119_s20  ;;  %v2444_v43 = vadd.f32 %v5156_v21, %v4738_v23 }
 0x76f   : > { %v2436_v55 = vadd.f32 %v4738_v23, %v2435_v28 }
 0x770   : > { %v7043_v1 = vpack.i.bf16 %v2444_v43, %v2441_v10  ;;  %v7053_v7 = vpack.c.bf16 %v2444_v43, %v2441_v10 }
 0x771   : > { %v7034_v37 = vpack.i.bf16 %v2436_v55, %v2433_v27  ;;  %v7038_v3 = vpack.c.bf16 %v2436_v55, %v2433_v27 }
 0x772   : > { %5571 = vrot.lane.b32.xlu0 %v5545_v49, %s6120_s22  ;;  %v2770_v45 = vsel %vm843_vm1, %v7053_v7, 0 }
 0x773   : > { %5556 = vrot.lane.b32.xlu1 %v7034_v37, %s6118_s19  ;;  %v2767_v2 = vsel %vm843_vm1, %v7038_v3, 0 }
 0x774   : > { %5172 = vmatpush3.bf16.xpose.msra.mxu0 %v2764_v53 }
 0x775   : > { %5363 = vmatprep.subr.msk.bf16.mxu0 %vm843_vm1, %v7038_v3 }
 0x776   : > { %5586 = vrot.lane.b32.xlu0 %v7018_v34, %s6119_s20 }
 0x777   : > { %5561 = vrot.lane.b32.xlu1 %v7043_v1, %s6118_s19 }
 0x77a   : > { %5596 = vrot.lane.b32.xlu0 %v7034_v37, %s6119_s20 }
 0x77c   : > { %5174 = vmatpush3.bf16.xpose.msra.mxu0 %v2767_v2 }
 0x77d   : > { %5364 = vmatprep.subr.msk.bf16.mxu0 %vm843_vm1, %v7053_v7 }
 0x784   : > { %5176 = vmatpush3.bf16.xpose.msra.mxu0 %v2770_v45 }
 0x7a1   : > { %v2241_v41 = vpop.xlane.xlu1 %2240 }
 0x7a2   : > { %v2263_v58 = vmul.f32 0.03125, %v2241_v41 }
 0x7a3   : > { %v2244_v60 = vpop.xlane.xlu0 %2243 }
 0x7a4   : > { %v2271_v39 = vadd.f32 1e-06, %v2263_v58  ;;  %v2264_v59 = vmul.f32 0.03125, %v2244_v60 }
 0x7a5   : > { %v2247_v4 = vpop.xlane.xlu1 %2246 }
 0x7a6   : > { %5877 = vrsqrt.f32 %v2271_v39  ;;  %v2272_v48 = vadd.f32 1e-06, %v2264_v59  ;;  %v2265_v42 = vmul.f32 0.03125, %v2247_v4 }
 0x7a8   : > { %5879 = vrsqrt.f32 %v2272_v48  ;;  %v2273_v26 = vadd.f32 1e-06, %v2265_v42 }
 0x7a9   : > { %v2250_v8 = vpop.xlane.xlu0 %2249 }
 0x7aa   : > { %5881 = vrsqrt.f32 %v2273_v26  ;;  %v2266_v18 = vmul.f32 0.03125, %v2250_v8 }
 0x7ac   : > { %v2274_v22 = vadd.f32 1e-06, %v2266_v18 }
 0x7ad   : > { %v2253_v5 = vpop.xlane.xlu1 %2252 }
 0x7ae   : > { %5883 = vrsqrt.f32 %v2274_v22  ;;  %v2267_v44 = vmul.f32 0.03125, %v2253_v5 }
 0x7af   : > { %v2256_v62 = vpop.xlane.xlu0 %2255 }
 0x7b0   : > { %v5878_v51 = vpop.eup %5877  ;;  %v2275_v54 = vadd.f32 1e-06, %v2267_v44  ;;  %v2268_v16 = vmul.f32 0.03125, %v2256_v62 }
 0x7b1   : > { %v2259_v57 = vpop.xlane.xlu1 %2258  ;;  %v2287_v29 = vmul.f32 %v5878_v51, %v6969_v50 }
 0x7b2   : > { %v5880_v52 = vpop.eup %5879  ;;  %5885 = vrsqrt.f32 %v2275_v54  ;;  %v2276_v23 = vadd.f32 1e-06, %v2268_v16  ;;  %v2269_v11 = vmul.f32 0.03125, %v2259_v57 }
 0x7b3   : > { %v2262_v15 = vpop.xlane.xlu0 %2261  ;;  %v2288_v14 = vmul.f32 %v5880_v52, %v6971_v13  ;;  %v2299_v46 = vmul.f32 %v2298_v47, %v2287_v29 }
 0x7b4   : > { %v5882_v12 = vpop.eup %5881  ;;  %5887 = vrsqrt.f32 %v2276_v23  ;;  %v2277_v6 = vadd.f32 1e-06, %v2269_v11  ;;  %v2270_v33 = vmul.f32 0.03125, %v2262_v15 }
 0x7b5   : > { %v2289_v49 = vmul.f32 %v5882_v12, %v6975_v35  ;;  %v2300_v31 = vmul.f32 %v2298_v47, %v2288_v14  ;;  %v7071_v20 = vadd.f32 %v2310_v25, %v2299_v46 }
 0x7b6   : > { %5889 = vrsqrt.f32 %v2277_v6  ;;  %v2278_v30 = vadd.f32 1e-06, %v2270_v33 }
 0x7b7   : > { %v7073_v50 = vadd.f32 %v2310_v25, %v2300_v31  ;;  %v2301_v21 = vmul.f32 %v2298_v47, %v2289_v49 }
 0x7b8   : > { %v5884_v27 = vpop.eup %5883  ;;  %5891 = vrsqrt.f32 %v2278_v30 }
 0x7b9   : > { %v2290_v28 = vmul.f32 %v5884_v27, %v6983_v61  ;;  %v2451_v13 = vpack.c.bf16 %v7073_v50, %v7071_v20  ;;  %v7079_v35 = vadd.f32 %v2310_v25, %v2301_v21  ;;  %v4749_v21 = vld [vmem:[%s7953_s8] ss:$0 sm:$0xff] }
 0x7bb   : > { %v2302_v10 = vmul.f32 %v2298_v47, %v2290_v28  ;;  %5161 = vmatprep.mubr.msk.bf16.mxu1 %vm652_vm0, %v2451_v13 }
 0x7bc   : > { %v5886_v43 = vpop.eup %5885 }
 0x7bd   : > { %v7081_v55 = vadd.f32 %v2310_v25, %v2302_v10  ;;  %v2291_v53 = vmul.f32 %v5886_v43, %v6988_v63 }
 0x7be   : > { %v5888_v2 = vpop.eup %5887 }
 0x7bf   : > { %v2452_v41 = vpack.c.bf16 %v7081_v55, %v7079_v35  ;;  %v2292_v45 = vmul.f32 %v5888_v2, %v6991_v56  ;;  %v2303_v61 = vmul.f32 %v2298_v47, %v2291_v53 }
 0x7c0   : > { %v5890_v58 = vpop.eup %5889 }
 0x7c1   : > { %5162 = vmatmul.mubr.msk.bf16.vlgmr.msra.gmra.mrb[48].mxu1 %vm652_vm0, %v2452_v41  ;;  %v2304_v60 = vmul.f32 %v2298_v47, %v2292_v45  ;;  %v2293_v40 = vmul.f32 %v5890_v58, %v6995_v32  ;;  %v7089_v59 = vadd.f32 %v2310_v25, %v2303_v61 }
 0x7c2   : > { %v5892_v39 = vpop.eup %5891 }
 0x7c3   : > { %v7091_v4 = vadd.f32 %v2310_v25, %v2304_v60  ;;  %v2294_v63 = vmul.f32 %v5892_v39, %v7000_v38  ;;  %v2305_v48 = vmul.f32 %v2298_v47, %v2293_v40 }
 0x7c5   : > { %v2453_v42 = vpack.c.bf16 %v7091_v4, %v7089_v59  ;;  %v2306_v26 = vmul.f32 %v2298_v47, %v2294_v63  ;;  %v7097_v56 = vadd.f32 %v2310_v25, %v2305_v48 }
 0x7c7   : > { %5165 = vmatprep.mubr.msk.bf16.mxu1 %vm652_vm0, %v2453_v42  ;;  %v7099_v8 = vadd.f32 %v2310_v25, %v2306_v26 }
 0x7c9   : > { %v2454_v32 = vpack.c.bf16 %v7099_v8, %v7097_v56 }
 0x7cb   : > { %5166 = vmatmul.mubr.msk.bf16.gmra.mrb[52].mxu1 %vm652_vm0, %v2454_v32 }
 0x7dc   : > { %v5552_v5 = vpop.permute.xlu0 %5551 }
 0x7dd   : > { %v5547_v18 = vpop.permute.xlu1 %5546  ;;  %v5554_v47 = vunpack.i.h.bf16 %v5552_v5  ;;  %v5553_v17 = vunpack.i.l.bf16 %v5552_v5 }
 0x7de   : > { %v5549_v9 = vunpack.i.h.bf16 %v5547_v18  ;;  %v5548_v24 = vunpack.i.l.bf16 %v5547_v18 }
 0x7df   : > { %v7110_v62 = vpack.c.bf16 %v5554_v47, %v5553_v17 }
 0x7e0   : > { %v7104_v38 = vpack.c.bf16 %v5549_v9, %v5548_v24  ;;  %v5567_v16 = vpop.permute.xlu0 %5566 }
 0x7e1   : > { %v5569_v57 = vunpack.i.h.bf16 %v5567_v16  ;;  %v5568_v29 = vunpack.i.l.bf16 %v5567_v16  ;;  %v2853_v52 = vsel %vm843_vm1, %v7110_v62, 0 }
 0x7e2   : > { %5365 = vmatprep.subr.msk.bf16.mxu1 %vm843_vm1, %v7104_v38  ;;  %v2850_v22 = vsel %vm843_vm1, %v7104_v38, 0 }
 0x7e3   : > { %5186 = vmatpush3.bf16.xpose.msra.mxu1 %v2850_v22  ;;  %v7116_v23 = vpack.c.bf16 %v5569_v57, %v5568_v29 }
 0x7e4   : > { %5366 = vmatprep.subr.msk.bf16.mxu1 %vm843_vm1, %v7110_v62  ;;  %v5572_v6 = vpop.permute.xlu0 %5571 }
 0x7e5   : > { %v5557_v44 = vpop.permute.xlu1 %5556  ;;  %5369 = vmatprep.subr.msk.bf16.mxu0 %vm843_vm1, %v7116_v23  ;;  %v5574_v33 = vunpack.i.h.bf16 %v5572_v6  ;;  %v5573_v49 = vunpack.i.l.bf16 %v5572_v6  ;;  %v2939_v48 = vsel %vm843_vm1, %v7116_v23, 0 }
 0x7e6   : > { %v5559_v51 = vunpack.i.h.bf16 %v5557_v44  ;;  %v5558_v54 = vunpack.i.l.bf16 %v5557_v44 }
 0x7e7   : > { %v7130_v31 = vpack.c.bf16 %v5574_v33, %v5573_v49 }
 0x7e8   : > { %v7118_v11 = vpack.c.bf16 %v5559_v51, %v5558_v54  ;;  %v5587_v28 = vpop.permute.xlu0 %5586 }
 0x7e9   : > { %v5562_v25 = vpop.permute.xlu1 %5561  ;;  %v5589_v41 = vunpack.i.h.bf16 %v5587_v28  ;;  %v5588_v45 = vunpack.i.l.bf16 %v5587_v28 }
 0x7ea   : > { %v5564_v15 = vunpack.i.h.bf16 %v5562_v25  ;;  %v5563_v14 = vunpack.i.l.bf16 %v5562_v25  ;;  %v2856_v46 = vsel %vm843_vm1, %v7118_v11, 0 }
 0x7eb   : > { %5188 = vmatpush3.bf16.xpose.msra.mxu1 %v2853_v52  ;;  %v2741_v42 = vpack.c.bf16 %v5589_v41, %v5588_v45 }
 0x7ec   : > { %5367 = vmatprep.subr.msk.bf16.mxu1 %vm843_vm1, %v7118_v11  ;;  %v7126_v12 = vpack.c.bf16 %v5564_v15, %v5563_v14  ;;  %v5597_v26 = vpop.permute.xlu0 %5596 }
 0x7ed   : > { %v5599_v18 = vunpack.i.h.bf16 %v5597_v26  ;;  %v5598_v9 = vunpack.i.l.bf16 %v5597_v26  ;;  %v2942_v54 = vsel %vm843_vm1, %v2741_v42, 0 }
 0x7ee   : > { %v2859_v30 = vsel %vm843_vm1, %v7126_v12, 0 }
 0x7ef   : > { %v7147_v16 = vpack.c.bf16 %v5599_v18, %v5598_v9 }
 0x7f3   : > { %5190 = vmatpush3.bf16.xpose.msra.mxu1 %v2856_v46 }
 0x7f4   : > { %5368 = vmatprep.subr.msk.bf16.mxu1 %vm843_vm1, %v7126_v12 }
 0x7fb   : > { %5192 = vmatpush3.bf16.xpose.msra.mxu1 %v2859_v30 }
 0x7fc   : > { %5373 = vmatprep.subr.msk.bf16.mxu1 %vm843_vm1, %v7130_v31 }
 0x894   : > { %v5163_v27 = vpop.f32.mrb[48].mxu1 }
 0x895   : > { %v2520_v13 = vpop.f32.mrb[49].mxu1  ;;  %v2529_v43 = vadd.f32 %v5163_v27, %v4749_v21 }
 0x896   : > { %v5164_v10 = vpop.f32.mrb[50].mxu1  ;;  %v2521_v61 = vadd.f32 %v4749_v21, %v2520_v13 }
 0x897   : > { %v2532_v53 = vadd.f32 %v5164_v10, %v4749_v21  ;;  %v2523_v2 = vpop.f32.mrb[51].mxu1 }
 0x898   : > { %v2524_v58 = vadd.f32 %v4749_v21, %v2523_v2 }
 0x899   : > { %v2717_v60 = vpack.c.bf16 %v2532_v53, %v2529_v43  ;;  %v5580_v40 = vpack.i.bf16 %v2532_v53, %v2529_v43 }
 0x89a   : > { %v5575_v39 = vpack.i.bf16 %v2524_v58, %v2521_v61  ;;  %v2716_v63 = vpack.c.bf16 %v2524_v58, %v2521_v61 }
 0x89c   : > { %5576 = vrot.lane.b32.xlu1 %v5575_v39, %s6118_s19  ;;  %5177 = vmatprep.mubr.msk.bf16.mxu0 %vm843_vm1, %v2716_v63 }
 0x89d   : > { %5178 = vmatmul.mubr.msk.bf16.vlgmr.msra.gmra.mrb[40].mxu0 %vm843_vm1, %v2717_v60 }
 0x89e   : > { %v5167_v32 = vpop.f32.mrb[52].mxu1  ;;  %5202 = vmatpush3.bf16.xpose.msra.mxu0 %v2939_v48 }
 0x89f   : > { %v2536_v24 = vpop.f32.mrb[53].mxu1  ;;  %5370 = vmatprep.subr.msk.bf16.mxu0 %vm843_vm1, %v2741_v42  ;;  %v2545_v5 = vadd.f32 %v5167_v32, %v4749_v21 }
 0x8a0   : > { %5581 = vrot.lane.b32.xlu1 %v5580_v40, %s6118_s19  ;;  %v5168_v22 = vpop.f32.mrb[54].mxu1  ;;  %v2537_v17 = vadd.f32 %v4749_v21, %v2536_v24 }
 0x8a1   : > { %v2548_v44 = vadd.f32 %v5168_v22, %v4749_v21  ;;  %v2539_v47 = vpop.f32.mrb[55].mxu1 }
 0x8a2   : > { %v2540_v51 = vadd.f32 %v4749_v21, %v2539_v47 }
 0x8a3   : > { %v5615_v57 = vpack.i.bf16 %v2548_v44, %v2545_v5  ;;  %v2719_v29 = vpack.c.bf16 %v2548_v44, %v2545_v5 }
 0x8a4   : > { %5591 = vrot.lane.b32.xlu1 %v7018_v34, %s6120_s22  ;;  %v2718_v52 = vpack.c.bf16 %v2540_v51, %v2537_v17  ;;  %v5620_v25 = vpack.i.bf16 %v2540_v51, %v2537_v17  ;;  %v2945_v34 = vsel %vm843_vm1, %v7147_v16, 0 }
 0x8a5   : > { %5616 = vrot.lane.b32.xlu0 %v5615_v57, %s6118_s19 }
 0x8a6   : > { %5181 = vmatprep.mubr.msk.bf16.mxu0 %vm843_vm1, %v2718_v52  ;;  %5204 = vmatpush3.bf16.xpose.msra.mxu0 %v2942_v54 }
 0x8a7   : > { %5182 = vmatmul.mubr.msk.bf16.gmra.mrb[44].mxu0 %vm843_vm1, %v2719_v29  ;;  %5371 = vmatprep.subr.msk.bf16.mxu0 %vm843_vm1, %v7147_v16 }
 0x8a8   : > { %5601 = vrot.lane.b32.xlu1 %v7034_v37, %s6120_s22 }
 0x8a9   : > { %5621 = vrot.lane.b32.xlu0 %v5620_v25, %s6118_s19  ;;  %s4609_s19 = sshll.u32 %s7869_s25, 4  ;;  %s7897_s19 = int_to_ptr.vmem [resolvable:$true] %s4609_s19 }
 0x8aa   : > { %p6061_p0 = scmp.lt.s32.totalorder %s7897_s19, %s6059_s23 }
 0x8ac   : > { %5606 = vrot.lane.b32.xlu1 %v7043_v1, %s6119_s20 }
 0x8ad   : > { %5626 = vrot.lane.b32.xlu0 %v5575_v39, %s6119_s20 }
 0x8ae   : > { %5206 = vmatpush3.bf16.xpose.msra.mxu0 %v2945_v34 }
 0x8b0   : > { %5611 = vrot.lane.b32.xlu1 %v7043_v1, %s6120_s22 }
 0x8b1   : > { %5636 = vrot.lane.b32.xlu0 %v5575_v39, %s6120_s22 }
 0x8b4   : > { %5631 = vrot.lane.b32.xlu1 %v5580_v40, %s6119_s20 }
 0x8b5   : > { %5651 = vrot.lane.b32.xlu0 %v5620_v25, %s6119_s20 }
 0x8b8   : > { %5641 = vrot.lane.b32.xlu1 %v5580_v40, %s6120_s22 }
 0x8b9   : > { %5656 = vrot.lane.b32.xlu0 %v5620_v25, %s6120_s22 }
 0x8bc   : > { %5646 = vrot.lane.b32.xlu1 %v5615_v57, %s6119_s20 }
 0x8bd   : > { %3569 = vrot.lane.b32.xlu0 %v7104_v38, %s6121_s21 }
 0x8c0   : > { %5661 = vrot.lane.b32.xlu1 %v5615_v57, %s6120_s22  ;;  %s7999_s22 = smov 8  }
 0x8c1   : > { %3571 = vrot.lane.b32.xlu0 %v7110_v62, %s6121_s21 }
 0x8c4   : > { %3476 = vrot.lane.b32.xlu1 %v7022_v0, %s6121_s21 }
 0x8c5   : > { %3575 = vrot.lane.b32.xlu0 %v7126_v12, %s6121_s21 }
 0x8c8   : > { %3478 = vrot.lane.b32.xlu1 %v7020_v19, %s6121_s21 }
 0x8c9   : > { %3664 = vrot.lane.b32.xlu0 %v2741_v42, %s6121_s21 }
 0x8cc   : > { %3480 = vrot.lane.b32.xlu1 %v7038_v3, %s6121_s21 }
 0x8d0   : > { %3573 = vrot.lane.b32.xlu1 %v7118_v11, %s6121_s21 }
 0x8d4   : > { %3482 = vrot.lane.b32.xlu1 %v7053_v7, %s6121_s21 }
 0x8d8   : > { %3662 = vrot.lane.b32.xlu1 %v7116_v23, %s6121_s21  ;;  %v3028_v23 = vsel %vm843_vm1, %v7130_v31, 0 }
 0x8dc   : > { %3755 = vrot.lane.b32.xlu1 %v7130_v31, %s6121_s21 }
 0x90e   : > { %v5577_v0 = vpop.permute.xlu1 %5576 }
 0x90f   : > { %v5579_v37 = vunpack.i.h.bf16 %v5577_v0  ;;  %v5578_v19 = vunpack.i.l.bf16 %v5577_v0 }
 0x911   : > { %v2720_v1 = vpack.c.bf16 %v5579_v37, %v5578_v19 }
 0x912   : > { %v5582_v38 = vpop.permute.xlu1 %5581 }
 0x913   : > { %v5584_v62 = vunpack.i.h.bf16 %v5582_v38  ;;  %v5583_v15 = vunpack.i.l.bf16 %v5582_v38  ;;  %5193 = vmatprep.mubr.msk.bf16.mxu1 %vm843_vm1, %v2720_v1 }
 0x915   : > { %v2721_v3 = vpack.c.bf16 %v5584_v62, %v5583_v15 }
 0x916   : > { %v5592_v11 = vpop.permute.xlu1 %5591 }
 0x917   : > { %v5594_v14 = vunpack.i.h.bf16 %v5592_v11  ;;  %v5593_v46 = vunpack.i.l.bf16 %v5592_v11  ;;  %v5617_v7 = vpop.permute.xlu0 %5616  ;;  %5194 = vmatmul.mubr.msk.bf16.vlgmr.msra.gmra.mrb[56].mxu1 %vm843_vm1, %v2721_v3 }
 0x918   : > { %5218 = vmatpush3.bf16.xpose.msra.mxu1 %v3028_v23  ;;  %v5619_v33 = vunpack.i.h.bf16 %v5617_v7  ;;  %v5618_v49 = vunpack.i.l.bf16 %v5617_v7 }
 0x919   : > { %v2745_v12 = vpack.c.bf16 %v5594_v14, %v5593_v46 }
 0x91a   : > { %v5602_v6 = vpop.permute.xlu1 %5601  ;;  %v2723_v2 = vpack.c.bf16 %v5619_v33, %v5618_v49 }
 0x91b   : > { %v5604_v30 = vunpack.i.h.bf16 %v5602_v6  ;;  %v5603_v27 = vunpack.i.l.bf16 %v5602_v6  ;;  %v5622_v21 = vpop.permute.xlu0 %5621  ;;  %3757 = vrot.lane.b32.xlu1 %v2745_v12, %s6121_s21  ;;  %5374 = vmatprep.subr.msk.bf16.mxu1 %vm843_vm1, %v2745_v12  ;;  %v3031_v61 = vsel %vm843_vm1, %v2745_v12, 0 }
 0x91c   : > { %v5624_v28 = vunpack.i.h.bf16 %v5622_v21  ;;  %v5623_v13 = vunpack.i.l.bf16 %v5622_v21 }
 0x91d   : > { %v7200_v10 = vpack.c.bf16 %v5604_v30, %v5603_v27 }
 0x91e   : > { %v2722_v43 = vpack.c.bf16 %v5624_v28, %v5623_v13  ;;  %v5607_v53 = vpop.permute.xlu1 %5606 }
 0x91f   : > { %v5609_v31 = vunpack.i.h.bf16 %v5607_v53  ;;  %v5608_v41 = vunpack.i.l.bf16 %v5607_v53  ;;  %v5627_v45 = vpop.permute.xlu0 %5626  ;;  %v3034_v51 = vsel %vm843_vm1, %v7200_v10, 0 }
 0x920   : > { %v5629_v58 = vunpack.i.h.bf16 %v5627_v45  ;;  %v5628_v60 = vunpack.i.l.bf16 %v5627_v45  ;;  %5220 = vmatpush3.bf16.xpose.msra.mxu1 %v3031_v61  ;;  %5197 = vmatprep.mubr.msk.bf16.mxu1 %vm843_vm1, %v2722_v43 }
 0x921   : > { %v7204_v40 = vpack.c.bf16 %v5609_v31, %v5608_v41  ;;  %5375 = vmatprep.subr.msk.bf16.mxu1 %vm843_vm1, %v7200_v10  ;;  %5198 = vmatmul.mubr.msk.bf16.gmra.mrb[60].mxu1 %vm843_vm1, %v2723_v2 }
 0x922   : > { %v2724_v39 = vpack.c.bf16 %v5629_v58, %v5628_v60  ;;  %v5612_v63 = vpop.permute.xlu1 %5611 }
 0x923   : > { %v5614_v48 = vunpack.i.h.bf16 %v5612_v63  ;;  %v5613_v42 = vunpack.i.l.bf16 %v5612_v63  ;;  %v5637_v26 = vpop.permute.xlu0 %5636  ;;  %5372 = vmatprep.subr.msk.bf16.mxu0 %vm843_vm1, %v7204_v40  ;;  %v2948_v32 = vsel %vm843_vm1, %v7204_v40, 0 }
 0x924   : > { %v5639_v18 = vunpack.i.h.bf16 %v5637_v26  ;;  %v5638_v9 = vunpack.i.l.bf16 %v5637_v26  ;;  %5208 = vmatpush3.bf16.xpose.msra.mxu0 %v2948_v32  ;;  %5209 = vmatprep.mubr.msk.bf16.mxu0 %vm843_vm1, %v2724_v39 }
 0x925   : > { %v7214_v24 = vpack.c.bf16 %v5614_v48, %v5613_v42 }
 0x926   : > { %v2728_v22 = vpack.c.bf16 %v5639_v18, %v5638_v9  ;;  %v5632_v5 = vpop.permute.xlu1 %5631 }
 0x927   : > { %v5634_v44 = vunpack.i.h.bf16 %v5632_v5  ;;  %v5633_v47 = vunpack.i.l.bf16 %v5632_v5  ;;  %v5652_v17 = vpop.permute.xlu0 %5651  ;;  %v3037_v1 = vsel %vm843_vm1, %v7214_v24, 0 }
 0x928   : > { %v5654_v54 = vunpack.i.h.bf16 %v5652_v17  ;;  %v5653_v57 = vunpack.i.l.bf16 %v5652_v17  ;;  %5222 = vmatpush3.bf16.xpose.msra.mxu1 %v3034_v51  ;;  %5225 = vmatprep.mubr.msk.bf16.mxu1 %vm843_vm1, %v2728_v22 }
 0x929   : > { %v2725_v29 = vpack.c.bf16 %v5634_v44, %v5633_v47  ;;  %5376 = vmatprep.subr.msk.bf16.mxu1 %vm843_vm1, %v7214_v24 }
 0x92a   : > { %v2726_v52 = vpack.c.bf16 %v5654_v54, %v5653_v57  ;;  %v5642_v25 = vpop.permute.xlu1 %5641 }
 0x92b   : > { %v5657_v34 = vpop.permute.xlu0 %5656  ;;  %5210 = vmatmul.mubr.msk.bf16.vlgmr.msra.gmra.mrb[48].mxu0 %vm843_vm1, %v2725_v29  ;;  %v5644_v62 = vunpack.i.h.bf16 %v5642_v25  ;;  %v5643_v15 = vunpack.i.l.bf16 %v5642_v25 }
 0x92c   : > { %5213 = vmatprep.mubr.msk.bf16.mxu0 %vm843_vm1, %v2726_v52  ;;  %v5659_v11 = vunpack.i.h.bf16 %v5657_v34  ;;  %v5658_v14 = vunpack.i.l.bf16 %v5657_v34 }
 0x92d   : > { %v2729_v7 = vpack.c.bf16 %v5644_v62, %v5643_v15 }
 0x92e   : > { %v5647_v0 = vpop.permute.xlu1 %5646  ;;  %v2730_v23 = vpack.c.bf16 %v5659_v11, %v5658_v14 }
 0x92f   : > { %v5649_v37 = vunpack.i.h.bf16 %v5647_v0  ;;  %v5648_v19 = vunpack.i.l.bf16 %v5647_v0  ;;  %v3570_v38 = vpop.permute.xlu0 %3569 }
 0x930   : > { %5224 = vmatpush3.bf16.xpose.msra.mxu1 %v3037_v1 }
 0x931   : > { %v2727_v3 = vpack.c.bf16 %v5649_v37, %v5648_v19  ;;  %5249 = vmatprep.subr.bf16.mxu1 %v3570_v38 }
 0x932   : > { %v5662_v46 = vpop.permute.xlu1 %5661 }
 0x933   : > { %5214 = vmatmul.mubr.msk.bf16.gmra.mrb[52].mxu0 %vm843_vm1, %v2727_v3  ;;  %v3572_v6 = vpop.permute.xlu0 %3571  ;;  %v5664_v33 = vunpack.i.h.bf16 %v5662_v46  ;;  %v5663_v49 = vunpack.i.l.bf16 %v5662_v46 }
 0x935   : > { %v2731_v27 = vpack.c.bf16 %v5664_v33, %v5663_v49 }
 0x936   : > { %v3477_v12 = vpop.permute.xlu1 %3476 }
 0x937   : > { %5226 = vmatmul.mubr.msk.bf16.vlgmr.msra.gmra.mrb[64].mxu1 %vm843_vm1, %v2729_v7  ;;  %5233 = vmatprep.subr.bf16.mxu0 %v3477_v12  ;;  %v3576_v13 = vpop.permute.xlu0 %3575 }
 0x938   : > { %5229 = vmatprep.mubr.msk.bf16.mxu1 %vm843_vm1, %v2730_v23  ;;  %5234 = vmatpush3.bf16.msra.mxu0 %v3477_v12 }
 0x939   : > { %5250 = vmatpush3.bf16.msra.mxu1 %v3570_v38 }
 0x93a   : > { %v3479_v30 = vpop.permute.xlu1 %3478  ;;  %5251 = vmatprep.subr.bf16.mxu1 %v3572_v6 }
 0x93b   : > { %5235 = vmatprep.subr.bf16.mxu0 %v3479_v30 }
 0x93c   : > { %5236 = vmatpush3.bf16.msra.mxu0 %v3479_v30 }
 0x93d   : > { %5252 = vmatpush3.bf16.msra.mxu1 %v3572_v6 }
 0x93e   : > { %v3481_v21 = vpop.permute.xlu1 %3480 }
 0x93f   : > { %5230 = vmatmul.mubr.msk.bf16.gmra.mrb[68].mxu1 %vm843_vm1, %v2731_v27  ;;  %5237 = vmatprep.subr.bf16.mxu0 %v3481_v21 }
 0x940   : > { %5238 = vmatpush3.bf16.msra.mxu0 %v3481_v21 }
 0x942   : > { %v3574_v28 = vpop.permute.xlu1 %3573 }
 0x943   : > { %5253 = vmatprep.subr.bf16.mxu1 %v3574_v28 }
 0x944   : > { %5254 = vmatpush3.bf16.msra.mxu1 %v3574_v28 }
 0x945   : > { %5255 = vmatprep.subr.bf16.mxu1 %v3576_v13 }
 0x946   : > { %v3483_v43 = vpop.permute.xlu1 %3482 }
 0x947   : > { %5239 = vmatprep.subr.bf16.mxu0 %v3483_v43 }
 0x948   : > { %5240 = vmatpush3.bf16.msra.mxu0 %v3483_v43  ;;  %5256 = vmatpush3.bf16.msra.mxu1 %v3576_v13 }
 0x94a   : > { %v7229_v53 = vpop.permute.xlu1 %3662 }
 0x94b   : > { %5265 = vmatprep.subr.bf16.mxu0 %v7229_v53 }
 0x94e   : > { %v7232_v2 = vpop.permute.xlu1 %3755 }
 0x94f   : > { %5281 = vmatprep.subr.bf16.mxu1 %v7232_v2 }
 0x970   : > { %v7235_v31 = vpop.f32.mrb[40].mxu0 }
 0x971   : > { %v7237_v41 = vpop.f32.mrb[41].mxu0  ;;  %v3110_v45 = vsel %vm1236_vm2, %v7235_v31, -inf }
 0x972   : > { %v7241_v61 = vpop.f32.mrb[42].mxu0  ;;  %3111 = vmax.xlane.f32.xlu0 %v3110_v45  ;;  %v3104_v39 = vsel %vm1236_vm2, %v7237_v41, -inf }
 0x973   : > { %v7243_v58 = vpop.f32.mrb[43].mxu0  ;;  %v3113_v63 = vsel %vm1236_vm2, %v7241_v61, -inf }
 0x974   : > { %v3107_v60 = vsel %vm1236_vm2, %v7243_v58, -inf }
 0x975   : > { %3108 = vmax.xlane.f32.xlu1 %v3107_v60 }
 0x976   : > { %3105 = vmax.xlane.f32.xlu0 %v3104_v39 }
 0x97a   : > { %v7251_v48 = vpop.f32.mrb[44].mxu0  ;;  %3114 = vmax.xlane.f32.xlu0 %v3113_v63 }
 0x97b   : > { %v7253_v42 = vpop.f32.mrb[45].mxu0  ;;  %v3122_v26 = vsel %vm1236_vm2, %v7251_v48, -inf }
 0x97c   : > { %v7257_v32 = vpop.f32.mrb[46].mxu0  ;;  %3123 = vmax.xlane.f32.xlu1 %v3122_v26  ;;  %v3116_v22 = vsel %vm1236_vm2, %v7253_v42, -inf }
 0x97d   : > { %v7259_v18 = vpop.f32.mrb[47].mxu0  ;;  %v3125_v9 = vsel %vm1236_vm2, %v7257_v32, -inf }
 0x97e   : > { %3126 = vmax.xlane.f32.xlu0 %v3125_v9  ;;  %v3119_v5 = vsel %vm1236_vm2, %v7259_v18, -inf }
 0x980   : > { %3117 = vmax.xlane.f32.xlu1 %v3116_v22 }
 0x982   : > { %3120 = vmax.xlane.f32.xlu0 %v3119_v5 }
 0x9ea   : > { %v7267_v44 = vpop.f32.mrb[56].mxu1 }
 0x9eb   : > { %v7269_v47 = vpop.f32.mrb[57].mxu1  ;;  %v3134_v17 = vsel %vm1236_vm2, %v7267_v44, -inf }
 0x9ec   : > { %3135 = vmax.xlane.f32.xlu1 %v3134_v17  ;;  %v7273_v51 = vpop.f32.mrb[58].mxu1  ;;  %v3128_v15 = vsel %vm1236_vm2, %v7269_v47, -inf }
 0x9ed   : > { %v7275_v54 = vpop.f32.mrb[59].mxu1  ;;  %v3137_v57 = vsel %vm1236_vm2, %v7273_v51, -inf }
 0x9ee   : > { %3138 = vmax.xlane.f32.xlu0 %v3137_v57  ;;  %v3131_v3 = vsel %vm1236_vm2, %v7275_v54, -inf }
 0x9f4   : > { %v7279_v29 = vpop.f32.mrb[60].mxu1 }
 0x9f5   : > { %v7281_v52 = vpop.f32.mrb[61].mxu1  ;;  %v3146_v49 = vsel %vm1236_vm2, %v7279_v29, -inf }
 0x9f6   : > { %v7283_v25 = vpop.f32.mrb[62].mxu1  ;;  %v3140_v60 = vsel %vm1236_vm2, %v7281_v52, -inf }
 0x9f7   : > { %v7285_v34 = vpop.f32.mrb[63].mxu1  ;;  %v3149_v21 = vsel %vm1236_vm2, %v7283_v25, -inf }
 0x9f8   : > { %v3143_v26 = vsel %vm1236_vm2, %v7285_v34, -inf }
 0x9fe   : > { %v7287_v0 = vpop.f32.mrb[48].mxu0 }
 0x9ff   : > { %v7289_v37 = vpop.f32.mrb[49].mxu0  ;;  %v3158_v19 = vsel %vm1236_vm2, %v7287_v0, -inf }
 0xa00   : > { %v7293_v1 = vpop.f32.mrb[50].mxu0  ;;  %3159 = vmax.xlane.f32.xlu1 %v3158_v19  ;;  %v3152_v46 = vsel %vm1236_vm2, %v7289_v37, -inf }
 0xa01   : > { %v7295_v38 = vpop.f32.mrb[51].mxu0  ;;  %v3161_v62 = vsel %vm1236_vm2, %v7293_v1, -inf }
 0xa02   : > { %3162 = vmax.xlane.f32.xlu0 %v3161_v62  ;;  %v3155_v12 = vsel %vm1236_vm2, %v7295_v38, -inf }
 0xa04   : > { %3129 = vmax.xlane.f32.xlu1 %v3128_v15 }
 0xa06   : > { %v7303_v11 = vpop.f32.mrb[52].mxu0  ;;  %3132 = vmax.xlane.f32.xlu0 %v3131_v3 }
 0xa07   : > { %v7305_v14 = vpop.f32.mrb[53].mxu0  ;;  %v3170_v28 = vsel %vm1236_vm2, %v7303_v11, -inf }
 0xa08   : > { %v7309_v7 = vpop.f32.mrb[54].mxu0  ;;  %3153 = vmax.xlane.f32.xlu1 %v3152_v46  ;;  %v3164_v9 = vsel %vm1236_vm2, %v7305_v14, -inf }
 0xa09   : > { %v7311_v23 = vpop.f32.mrb[55].mxu0  ;;  %v3173_v13 = vsel %vm1236_vm2, %v7309_v7, -inf }
 0xa0a   : > { %v7315_v6 = vpop.f32.mrb[64].mxu1  ;;  %3156 = vmax.xlane.f32.xlu0 %v3155_v12  ;;  %v3167_v22 = vsel %vm1236_vm2, %v7311_v23, -inf  ;;  %v7363_v12 = vpop.permute.xlu0 %3664 }
 0xa0b   : > { %v7317_v33 = vpop.f32.mrb[65].mxu1  ;;  %v3182_v5 = vsel %vm1236_vm2, %v7315_v6, -inf }
 0xa0c   : > { %v7321_v30 = vpop.f32.mrb[66].mxu1  ;;  %3147 = vmax.xlane.f32.xlu1 %v3146_v49  ;;  %v3176_v57 = vsel %vm1236_vm2, %v7317_v33, -inf }
 0xa0d   : > { %v7323_v27 = vpop.f32.mrb[67].mxu1  ;;  %v3185_v17 = vsel %vm1236_vm2, %v7321_v30, -inf }
 0xa0e   : > { %3150 = vmax.xlane.f32.xlu0 %v3149_v21  ;;  %v3179_v19 = vsel %vm1236_vm2, %v7323_v27, -inf  ;;  %v3112_v49 = vpop.xlane.xlu0 %3111 }
 0xa10   : > { %3171 = vmax.xlane.f32.xlu1 %v3170_v28  ;;  %v7369_v28 = vpop.permute.xlu1 %3757 }
 0xa12   : > { %v7331_v43 = vpop.f32.mrb[68].mxu1  ;;  %3174 = vmax.xlane.f32.xlu0 %v3173_v13  ;;  %v3106_v21 = vpop.xlane.xlu0 %3105 }
 0xa13   : > { %v7333_v45 = vpop.f32.mrb[69].mxu1  ;;  %v3194_v62 = vsel %vm1236_vm2, %v7331_v43, -inf }
 0xa14   : > { %v7337_v39 = vpop.f32.mrb[70].mxu1  ;;  %3141 = vmax.xlane.f32.xlu1 %v3140_v60  ;;  %v3188_v3 = vsel %vm1236_vm2, %v7333_v45, -inf  ;;  %v3109_v13 = vpop.xlane.xlu1 %3108 }
 0xa15   : > { %v7339_v63 = vpop.f32.mrb[71].mxu1  ;;  %v3197_v15 = vsel %vm1236_vm2, %v7337_v39, -inf }
 0xa16   : > { %3144 = vmax.xlane.f32.xlu0 %v3143_v26  ;;  %v3191_v46 = vsel %vm1236_vm2, %v7339_v63, -inf  ;;  %v3115_v60 = vpop.xlane.xlu0 %3114  ;;  %v3202_v26 = vsub.f32 %v7235_v31, %v3112_v49 }
 0xa18   : > { %3165 = vmax.xlane.f32.xlu1 %v3164_v9  ;;  %v3203_v9 = vsub.f32 %v7241_v61, %v3115_v60 }
 0xa1a   : > { %3168 = vmax.xlane.f32.xlu0 %v3167_v22  ;;  %v3124_v22 = vpop.xlane.xlu1 %3123 }
 0xa1c   : > { %3183 = vmax.xlane.f32.xlu1 %v3182_v5  ;;  %v3236_v5 = vmul.f32 1.442695, %v3202_v26 }
 0xa1e   : > { %3186 = vmax.xlane.f32.xlu0 %v3185_v17  ;;  %v3200_v17 = vsub.f32 %v7237_v41, %v3106_v21  ;;  %5893 = vpow2.f32 %v3236_v5 }
 0xa20   : > { %3177 = vmax.xlane.f32.xlu1 %v3176_v57  ;;  %v3127_v57 = vpop.xlane.xlu0 %3126 }
 0xa22   : > { %3180 = vmax.xlane.f32.xlu0 %v3179_v19  ;;  %v3238_v19 = vmul.f32 1.442695, %v3203_v9 }
 0xa24   : > { %3195 = vmax.xlane.f32.xlu1 %v3194_v62  ;;  %v3232_v62 = vmul.f32 1.442695, %v3200_v17  ;;  %5895 = vpow2.f32 %v3238_v19  ;;  %v3121_v31 = vpop.xlane.xlu0 %3120 }
 0xa25   : > { %v3205_v21 = vsub.f32 %v7259_v18, %v3121_v31 }
 0xa26   : > { %3198 = vmax.xlane.f32.xlu0 %v3197_v15  ;;  %v3118_v15 = vpop.xlane.xlu1 %3117  ;;  %5897 = vpow2.f32 %v3232_v62 }
 0xa27   : > { %v3204_v49 = vsub.f32 %v7253_v42, %v3118_v15 }
 0xa28   : > { %3189 = vmax.xlane.f32.xlu1 %v3188_v3 }
 0xa2a   : > { %3192 = vmax.xlane.f32.xlu0 %v3191_v46  ;;  %v3207_v46 = vsub.f32 %v7257_v32, %v3127_v57 }
 0xa2c   : > { %v3246_v41 = vmul.f32 1.442695, %v3207_v46 }
 0xa39   : > { %3759 = vrot.lane.b32.xlu1 %v7200_v10, %s6121_s21  ;;  %v3201_v10 = vsub.f32 %v7243_v58, %v3109_v13  ;;  %v3240_v58 = vmul.f32 1.442695, %v3204_v49  ;;  %v7379_v13 = vpop.eup %5893 }
 0xa3a   : > { %v7381_v60 = vpop.eup %5895  ;;  %v3302_v32 = vsel %vm1236_vm2, %v7379_v13, 0.0 }
 0xa3b   : > { %v3234_v3 = vmul.f32 1.442695, %v3201_v10  ;;  %v7385_v26 = vpop.eup %5897  ;;  %v3305_v42 = vsel %vm1236_vm2, %v7381_v60, 0.0 }
 0xa3c   : > { %v3296_v9 = vsel %vm1236_vm2, %v7385_v26, 0.0 }
 0xa3d   : > { %5899 = vpow2.f32 %v3234_v3 }
 0xa40   : > { %3666 = vrot.lane.b32.xlu0 %v7147_v16, %s6121_s21  ;;  %v3206_v16 = vsub.f32 %v7251_v48, %v3124_v22  ;;  %v3242_v48 = vmul.f32 1.442695, %v3205_v21 }
 0xa42   : > { %v3244_v61 = vmul.f32 1.442695, %v3206_v16 }
 0xa44   : > { %5901 = vpow2.f32 %v3244_v61 }
 0xa45   : > { %5903 = vpow2.f32 %v3246_v41 }
 0xa46   : > { %5905 = vpow2.f32 %v3240_v58 }
 0xa47   : > { %5907 = vpow2.f32 %v3242_v48  ;;  %v7389_v18 = vpop.eup %5899 }
 0xa48   : > { %v3299_v5 = vsel %vm1236_vm2, %v7389_v18, 0.0 }
 0xa4e   : > { %v7393_v22 = vpop.eup %5901 }
 0xa4f   : > { %v7397_v17 = vpop.eup %5903  ;;  %v3314_v57 = vsel %vm1236_vm2, %v7393_v22, 0.0 }
 0xa50   : > { %v7401_v10 = vpop.eup %5905  ;;  %v3317_v19 = vsel %vm1236_vm2, %v7397_v17, 0.0 }
 0xa51   : > { %v7405_v62 = vpop.eup %5907  ;;  %v3308_v16 = vsel %vm1236_vm2, %v7401_v10, 0.0 }
 0xa52   : > { %v3311_v15 = vsel %vm1236_vm2, %v7405_v62, 0.0 }
 0xa5d   : > { %3303 = vadd.xlane.f32.xlu1 %v3302_v32 }
 0xa5f   : > { %3306 = vadd.xlane.f32.xlu0 %v3305_v42 }
 0xa61   : > { %3297 = vadd.xlane.f32.xlu1 %v3296_v9 }
 0xa63   : > { %3300 = vadd.xlane.f32.xlu0 %v3299_v5 }
 0xa65   : > { %3315 = vadd.xlane.f32.xlu1 %v3314_v57 }
 0xa67   : > { %3318 = vadd.xlane.f32.xlu0 %v3317_v19 }
 0xa69   : > { %3309 = vadd.xlane.f32.xlu1 %v3308_v16 }
 0xa6b   : > { %3312 = vadd.xlane.f32.xlu0 %v3311_v15 }
 0xa79   : > { %v3136_v3 = vpop.xlane.xlu1 %3135 }
 0xa7a   : > { %v3210_v46 = vsub.f32 %v7267_v44, %v3136_v3 }
 0xa7b   : > { %v3139_v31 = vpop.xlane.xlu0 %3138 }
 0xa7c   : > { %v3252_v61 = vmul.f32 1.442695, %v3210_v46  ;;  %v3211_v49 = vsub.f32 %v7273_v51, %v3139_v31 }
 0xa7e   : > { %5909 = vpow2.f32 %v3252_v61  ;;  %v3254_v41 = vmul.f32 1.442695, %v3211_v49 }
 0xa80   : > { %5911 = vpow2.f32 %v3254_v41 }
 0xa88   : > { %v7413_v21 = vpop.eup %5909 }
 0xa89   : > { %v3326_v58 = vsel %vm1236_vm2, %v7413_v21, 0.0 }
 0xa8a   : > { %v7417_v48 = vpop.eup %5911  ;;  %3327 = vadd.xlane.f32.xlu1 %v3326_v58 }
 0xa8b   : > { %v3329_v32 = vsel %vm1236_vm2, %v7417_v48, 0.0 }
 0xa8c   : > { %3330 = vadd.xlane.f32.xlu0 %v3329_v32 }
 0xa8d   : > { %v3160_v44 = vpop.xlane.xlu1 %3159 }
 0xa8e   : > { %v3218_v42 = vsub.f32 %v7287_v0, %v3160_v44 }
 0xa8f   : > { %v3163_v9 = vpop.xlane.xlu0 %3162 }
 0xa90   : > { %v3268_v51 = vmul.f32 1.442695, %v3218_v42  ;;  %v3219_v5 = vsub.f32 %v7293_v1, %v3163_v9 }
 0xa91   : > { %v3130_v57 = vpop.xlane.xlu1 %3129 }
 0xa92   : > { %5913 = vpow2.f32 %v3268_v51  ;;  %v3270_v19 = vmul.f32 1.442695, %v3219_v5  ;;  %v3208_v16 = vsub.f32 %v7269_v47, %v3130_v57 }
 0xa93   : > { %v3133_v15 = vpop.xlane.xlu0 %3132 }
 0xa94   : > { %5915 = vpow2.f32 %v3270_v19  ;;  %v3248_v3 = vmul.f32 1.442695, %v3208_v16  ;;  %v3209_v46 = vsub.f32 %v7275_v54, %v3133_v15 }
 0xa95   : > { %v3154_v31 = vpop.xlane.xlu1 %3153 }
 0xa96   : > { %5917 = vpow2.f32 %v3248_v3  ;;  %v3250_v61 = vmul.f32 1.442695, %v3209_v46  ;;  %v3216_v49 = vsub.f32 %v7289_v37, %v3154_v31 }
 0xa97   : > { %v3157_v0 = vpop.xlane.xlu0 %3156 }
 0xa98   : > { %5919 = vpow2.f32 %v3250_v61  ;;  %v3264_v41 = vmul.f32 1.442695, %v3216_v49  ;;  %v3217_v1 = vsub.f32 %v7295_v38, %v3157_v0 }
 0xa99   : > { %v3148_v58 = vpop.xlane.xlu1 %3147 }
 0xa9a   : > { %5921 = vpow2.f32 %v3264_v41  ;;  %v3266_v32 = vmul.f32 1.442695, %v3217_v1  ;;  %v3214_v47 = vsub.f32 %v7279_v29, %v3148_v58 }
 0xa9b   : > { %v3151_v44 = vpop.xlane.xlu0 %3150 }
 0xa9c   : > { %v7428_v42 = vpop.eup %5913  ;;  %5923 = vpow2.f32 %v3266_v32  ;;  %v3260_v54 = vmul.f32 1.442695, %v3214_v47 }
 0xa9d   : > { %v3172_v9 = vpop.xlane.xlu1 %3171  ;;  %v3350_v51 = vsel %vm1236_vm2, %v7428_v42, 0.0 }
 0xa9e   : > { %v7432_v37 = vpop.eup %5915  ;;  %5925 = vpow2.f32 %v3260_v54  ;;  %v3222_v5 = vsub.f32 %v7303_v11, %v3172_v9  ;;  %3351 = vadd.xlane.f32.xlu1 %v3350_v51  ;;  %v3215_v11 = vsub.f32 %v7283_v25, %v3151_v44 }
 0xa9f   : > { %v3175_v38 = vpop.xlane.xlu0 %3174  ;;  %v3353_v57 = vsel %vm1236_vm2, %v7432_v37, 0.0 }
 0xaa0   : > { %v7437_v29 = vpop.eup %5917  ;;  %v3276_v19 = vmul.f32 1.442695, %v3222_v5  ;;  %3354 = vadd.xlane.f32.xlu0 %v3353_v57  ;;  %v3262_v32 = vmul.f32 1.442695, %v3215_v11  ;;  %v3223_v54 = vsub.f32 %v7309_v7, %v3175_v38 }
 0xaa1   : > { %v3142_v16 = vpop.xlane.xlu1 %3141  ;;  %v3320_v15 = vsel %vm1236_vm2, %v7437_v29, 0.0 }
 0xaa2   : > { %v7441_v3 = vpop.eup %5919  ;;  %5927 = vpow2.f32 %v3276_v19  ;;  %v3212_v46 = vsub.f32 %v7281_v52, %v3142_v16  ;;  %3321 = vadd.xlane.f32.xlu1 %v3320_v15 }
 0xaa3   : > { %v3145_v31 = vpop.xlane.xlu0 %3144  ;;  %v3323_v61 = vsel %vm1236_vm2, %v7441_v3, 0.0 }
 0xaa4   : > { %v7447_v49 = vpop.eup %5921  ;;  %v3256_v0 = vmul.f32 1.442695, %v3212_v46  ;;  %3324 = vadd.xlane.f32.xlu0 %v3323_v61  ;;  %v3278_v46 = vmul.f32 1.442695, %v3223_v54  ;;  %v3213_v7 = vsub.f32 %v7285_v34, %v3145_v31 }
 0xaa5   : > { %v3166_v41 = vpop.xlane.xlu1 %3165  ;;  %v3344_v1 = vsel %vm1236_vm2, %v7447_v49, 0.0 }
 0xaa6   : > { %v7451_v58 = vpop.eup %5923  ;;  %5929 = vpow2.f32 %v3256_v0  ;;  %v3220_v52 = vsub.f32 %v7305_v14, %v3166_v41  ;;  %3345 = vadd.xlane.f32.xlu1 %v3344_v1  ;;  %v3258_v41 = vmul.f32 1.442695, %v3213_v7 }
 0xaa7   : > { %v3169_v25 = vpop.xlane.xlu0 %3168  ;;  %v3347_v47 = vsel %vm1236_vm2, %v7451_v58, 0.0 }
 0xaa8   : > { %v7456_v44 = vpop.eup %5925  ;;  %v3272_v9 = vmul.f32 1.442695, %v3220_v52  ;;  %v3221_v51 = vsub.f32 %v7311_v23, %v3169_v25  ;;  %3348 = vadd.xlane.f32.xlu0 %v3347_v47 }
 0xaa9   : > { %v3184_v5 = vpop.xlane.xlu1 %3183  ;;  %v3338_v57 = vsel %vm1236_vm2, %v7456_v44, 0.0 }
 0xaaa   : > { %5931 = vpow2.f32 %v3272_v9  ;;  %v3274_v14 = vmul.f32 1.442695, %v3221_v51  ;;  %v3226_v19 = vsub.f32 %v7315_v6, %v3184_v5  ;;  %3339 = vadd.xlane.f32.xlu1 %v3338_v57 }
 0xaab   : > { %5933 = vpow2.f32 %v3262_v32  ;;  %v3187_v16 = vpop.xlane.xlu0 %3186 }
 0xaac   : > { %v7463_v15 = vpop.eup %5927  ;;  %5935 = vpow2.f32 %v3274_v14  ;;  %v3284_v38 = vmul.f32 1.442695, %v3226_v19  ;;  %v3227_v1 = vsub.f32 %v7321_v30, %v3187_v16 }
 0xaad   : > { %v3178_v23 = vpop.xlane.xlu1 %3177  ;;  %v3362_v11 = vsel %vm1236_vm2, %v7463_v15, 0.0 }
 0xaae   : > { %5937 = vpow2.f32 %v3284_v38  ;;  %v3224_v61 = vsub.f32 %v7317_v33, %v3178_v23  ;;  %3363 = vadd.xlane.f32.xlu0 %v3362_v11  ;;  %v3286_v33 = vmul.f32 1.442695, %v3227_v1 }
 0xaaf   : > { %v3181_v0 = vpop.xlane.xlu0 %3180  ;;  %5939 = vpow2.f32 %v3278_v46 }
 0xab0   : > { %v7469_v6 = vpop.eup %5929  ;;  %v3280_v52 = vmul.f32 1.442695, %v3224_v61  ;;  %v3225_v54 = vsub.f32 %v7323_v27, %v3181_v0 }
 0xab1   : > { %v3196_v32 = vpop.xlane.xlu1 %3195  ;;  %v3332_v34 = vsel %vm1236_vm2, %v7469_v6, 0.0 }
 0xab2   : > { %5941 = vpow2.f32 %v3280_v52  ;;  %v3230_v31 = vsub.f32 %v7331_v43, %v3196_v32  ;;  %3333 = vadd.xlane.f32.xlu1 %v3332_v34  ;;  %v3282_v27 = vmul.f32 1.442695, %v3225_v54 }
 0xab3   : > { %v3199_v25 = vpop.xlane.xlu0 %3198  ;;  %5943 = vpow2.f32 %v3258_v41 }
 0xab4   : > { %v7475_v47 = vpop.eup %5931  ;;  %v3292_v9 = vmul.f32 1.442695, %v3230_v31  ;;  %v3231_v16 = vsub.f32 %v7337_v39, %v3199_v25 }
 0xab5   : > { %v7478_v51 = vpop.eup %5933  ;;  %v3190_v30 = vpop.xlane.xlu1 %3189  ;;  %v3356_v5 = vsel %vm1236_vm2, %v7475_v47, 0.0 }
 0xab6   : > { %v7482_v57 = vpop.eup %5935  ;;  %5945 = vpow2.f32 %v3292_v9  ;;  %v3228_v43 = vsub.f32 %v7333_v45, %v3190_v30  ;;  %3357 = vadd.xlane.f32.xlu0 %v3356_v5  ;;  %v3341_v38 = vsel %vm1236_vm2, %v7478_v51, 0.0  ;;  %v3294_v61 = vmul.f32 1.442695, %v3231_v16 }
 0xab7   : > { %v3359_v14 = vsel %vm1236_vm2, %v7482_v57, 0.0  ;;  %5947 = vpow2.f32 %v3286_v33  ;;  %v3193_v7 = vpop.xlane.xlu0 %3192 }
 0xab8   : > { %v7487_v19 = vpop.eup %5937  ;;  %v3288_v46 = vmul.f32 1.442695, %v3228_v43  ;;  %3360 = vadd.xlane.f32.xlu1 %v3359_v14  ;;  %v3229_v0 = vsub.f32 %v7339_v63, %v3193_v7 }
 0xab9   : > { %v7492_v23 = vpop.eup %5939  ;;  %v3374_v45 = vsel %vm1236_vm2, %v7487_v19, 0.0  ;;  %v7533_v16 = vpop.permute.xlu1 %3759 }
 0xaba   : > { %5949 = vpow2.f32 %v3288_v46  ;;  %3342 = vadd.xlane.f32.xlu0 %v3341_v38  ;;  %v3365_v39 = vsel %vm1236_vm2, %v7492_v23, 0.0  ;;  %v3290_v32 = vmul.f32 1.442695, %v3229_v0 }
 0xabb   : > { %5951 = vpow2.f32 %v3282_v27  ;;  %v3667_v46 = vpop.permute.xlu0 %3666 }
 0xabc   : > { %v7496_v11 = vpop.eup %5941  ;;  %3375 = vadd.xlane.f32.xlu1 %v3374_v45  ;;  %5953 = vpow2.f32 %v3294_v61 }
 0xabd   : > { %v7501_v41 = vpop.eup %5943  ;;  %v3368_v1 = vsel %vm1236_vm2, %v7496_v11, 0.0  ;;  %5955 = vpow2.f32 %v3290_v32 }
 0xabe   : > { %3366 = vadd.xlane.f32.xlu0 %v3365_v39  ;;  %v3335_v34 = vsel %vm1236_vm2, %v7501_v41, 0.0 }
 0xac0   : > { %v7505_v52 = vpop.eup %5945  ;;  %3369 = vadd.xlane.f32.xlu1 %v3368_v1 }
 0xac1   : > { %v7509_v31 = vpop.eup %5947  ;;  %v3386_v63 = vsel %vm1236_vm2, %v7505_v52, 0.0 }
 0xac2   : > { %3336 = vadd.xlane.f32.xlu0 %v3335_v34  ;;  %v3377_v33 = vsel %vm1236_vm2, %v7509_v31, 0.0 }
 0xac4   : > { %v7513_v25 = vpop.eup %5949  ;;  %3387 = vadd.xlane.f32.xlu1 %v3386_v63 }
 0xac5   : > { %v7517_v54 = vpop.eup %5951  ;;  %v3380_v9 = vsel %vm1236_vm2, %v7513_v25, 0.0 }
 0xac6   : > { %3378 = vadd.xlane.f32.xlu0 %v3377_v33  ;;  %v3371_v30 = vsel %vm1236_vm2, %v7517_v54, 0.0  ;;  %v7523_v5 = vpop.eup %5953 }
 0xac7   : > { %v3389_v43 = vsel %vm1236_vm2, %v7523_v5, 0.0  ;;  %v7527_v14 = vpop.eup %5955 }
 0xac8   : > { %3381 = vadd.xlane.f32.xlu1 %v3380_v9  ;;  %v3383_v27 = vsel %vm1236_vm2, %v7527_v14, 0.0 }
 0xaca   : > { %3372 = vadd.xlane.f32.xlu0 %v3371_v30 }
 0xace   : > { %3390 = vadd.xlane.f32.xlu0 %v3389_v43 }
 0xad2   : > { %3384 = vadd.xlane.f32.xlu0 %v3383_v27 }
 0xad9   : > { %3761 = vrot.lane.b32.xlu1 %v7214_v24, %s6121_s21 }
 0xae8   : > { %3668 = vrot.lane.b32.xlu0 %v7204_v40, %s6121_s21 }
 0xaea   : > { %v3304_v7 = vpop.xlane.xlu1 %3303 }
 0xaec   : > { %v3307_v38 = vpop.xlane.xlu0 %3306 }
 0xaed   : > { %5957 = vrcp.f32 %v3307_v38 }
 0xaee   : > { %v3298_v45 = vpop.xlane.xlu1 %3297 }
 0xaef   : > { %5959 = vrcp.f32 %v3298_v45 }
 0xaf0   : > { %5961 = vrcp.f32 %v3304_v7  ;;  %v3301_v61 = vpop.xlane.xlu0 %3300 }
 0xaf1   : > { %5963 = vrcp.f32 %v3301_v61 }
 0xaf2   : > { %v3316_v0 = vpop.xlane.xlu1 %3315 }
 0xaf4   : > { %v3319_v39 = vpop.xlane.xlu0 %3318 }
 0xaf5   : > { %5965 = vrcp.f32 %v3319_v39 }
 0xaf6   : > { %v3310_v1 = vpop.xlane.xlu1 %3309 }
 0xaf7   : > { %5967 = vrcp.f32 %v3310_v1  ;;  %v5958_v24 = vpop.eup %5957 }
 0xaf8   : > { %5969 = vrcp.f32 %v3316_v0  ;;  %v3313_v32 = vpop.xlane.xlu0 %3312  ;;  %v3427_v33 = vmul.f32 %v5958_v24, %v7381_v60 }
 0xaf9   : > { %v5960_v34 = vpop.eup %5959  ;;  %5971 = vrcp.f32 %v3313_v32 }
 0xafa   : > { %v5962_v63 = vpop.eup %5961  ;;  %v3424_v9 = vmul.f32 %v5960_v34, %v7385_v26 }
 0xafb   : > { %v5964_v40 = vpop.eup %5963  ;;  %v3426_v43 = vmul.f32 %v5962_v63, %v7379_v13 }
 0xafc   : > { %v3425_v30 = vmul.f32 %v5964_v40, %v7389_v18 }
 0xafd   : > { %v3457_v7 = vpack.c.bf16 %v3427_v33, %v3426_v43 }
 0xafe   : > { %v3456_v27 = vpack.c.bf16 %v3425_v30, %v3424_v9 }
 0xaff   : > { %v5966_v38 = vpop.eup %5965 }
 0xb00   : > { %5241 = vmatprep.mubr.msk.bf16.mxu0 %vm1236_vm2, %v3456_v27  ;;  %v3431_v60 = vmul.f32 %v5966_v38, %v7397_v17 }
 0xb01   : > { %v5968_v45 = vpop.eup %5967  ;;  %5242 = vmatmul.mubr.msk.bf16.vlgmr.msra.gmra.mrb[56].mxu0 %vm1236_vm2, %v3457_v7 }
 0xb02   : > { %v5970_v61 = vpop.eup %5969  ;;  %5266 = vmatpush3.bf16.msra.mxu0 %v7229_v53  ;;  %v3428_v26 = vmul.f32 %v5968_v45, %v7401_v10 }
 0xb03   : > { %v5972_v0 = vpop.eup %5971  ;;  %5267 = vmatprep.subr.bf16.mxu0 %v7363_v12  ;;  %v3430_v18 = vmul.f32 %v5970_v61, %v7393_v22 }
 0xb04   : > { %v3429_v13 = vmul.f32 %v5972_v0, %v7405_v62 }
 0xb05   : > { %v3459_v1 = vpack.c.bf16 %v3431_v60, %v3430_v18 }
 0xb06   : > { %5268 = vmatpush3.bf16.msra.mxu0 %v7363_v12  ;;  %v3458_v39 = vpack.c.bf16 %v3429_v13, %v3428_v26 }
 0xb07   : > { %5269 = vmatprep.subr.bf16.mxu0 %v3667_v46 }
 0xb08   : > { %5245 = vmatprep.mubr.msk.bf16.mxu0 %vm1236_vm2, %v3458_v39 }
 0xb09   : > { %5246 = vmatmul.mubr.msk.bf16.gmra.mrb[60].mxu0 %vm1236_vm2, %v3459_v1 }
 0xb0a   : > { %5270 = vmatpush3.bf16.msra.mxu0 %v3667_v46 }
 0xb17   : > { %v3328_v53 = vpop.xlane.xlu1 %3327 }
 0xb19   : > { %v3331_v24 = vpop.xlane.xlu0 %3330 }
 0xb1a   : > { %5973 = vrcp.f32 %v3331_v24 }
 0xb24   : > { %v5974_v34 = vpop.eup %5973 }
 0xb25   : > { %v3435_v46 = vmul.f32 %v5974_v34, %v7417_v48 }
 0xb2b   : > { %v3352_v32 = vpop.xlane.xlu1 %3351 }
 0xb2d   : > { %v3355_v17 = vpop.xlane.xlu0 %3354 }
 0xb2f   : > { %v3322_v10 = vpop.xlane.xlu1 %3321 }
 0xb30   : > { %5975 = vrcp.f32 %v3322_v10 }
 0xb31   : > { %5977 = vrcp.f32 %v3328_v53  ;;  %v3325_v62 = vpop.xlane.xlu0 %3324 }
 0xb32   : > { %5979 = vrcp.f32 %v3325_v62 }
 0xb33   : > { %v3346_v22 = vpop.xlane.xlu1 %3345 }
 0xb34   : > { %5981 = vrcp.f32 %v3346_v22 }
 0xb35   : > { %v3349_v12 = vpop.xlane.xlu0 %3348 }
 0xb36   : > { %5983 = vrcp.f32 %v3349_v12 }
 0xb37   : > { %v3340_v9 = vpop.xlane.xlu1 %3339 }
 0xb3a   : > { %v5976_v63 = vpop.eup %5975 }
 0xb3b   : > { %v5978_v40 = vpop.eup %5977  ;;  %v3432_v30 = vmul.f32 %v5976_v63, %v7437_v29  ;;  %v3364_v38 = vpop.xlane.xlu0 %3363 }
 0xb3c   : > { %v5980_v33 = vpop.eup %5979  ;;  %v3434_v7 = vmul.f32 %v5978_v40, %v7413_v21 }
 0xb3d   : > { %v3433_v43 = vmul.f32 %v5980_v33, %v7441_v3 }
 0xb3e   : > { %v5982_v27 = vpop.eup %5981  ;;  %v3461_v0 = vpack.c.bf16 %v3435_v46, %v3434_v7 }
 0xb3f   : > { %v3460_v45 = vpack.c.bf16 %v3433_v43, %v3432_v30  ;;  %v3334_v60 = vpop.xlane.xlu1 %3333  ;;  %v3440_v26 = vmul.f32 %v5982_v27, %v7447_v49 }
 0xb40   : > { %v5984_v61 = vpop.eup %5983 }
 0xb41   : > { %5257 = vmatprep.mubr.msk.bf16.mxu1 %vm1236_vm2, %v3460_v45  ;;  %v3441_v13 = vmul.f32 %v5984_v61, %v7451_v58 }
 0xb42   : > { %5258 = vmatmul.mubr.msk.bf16.vlgmr.msra.gmra.mrb[72].mxu1 %vm1236_vm2, %v3461_v0 }
 0xb43   : > { %5282 = vmatpush3.bf16.msra.mxu1 %v7232_v2  ;;  %v3358_v48 = vpop.xlane.xlu0 %3357  ;;  %v3464_v29 = vpack.c.bf16 %v3441_v13, %v3440_v26 }
 0xb44   : > { %5283 = vmatprep.subr.bf16.mxu1 %v7369_v28 }
 0xb45   : > { %v3361_v21 = vpop.xlane.xlu1 %3360  ;;  %5273 = vmatprep.mubr.msk.bf16.mxu0 %vm1236_vm2, %v3464_v29 }
 0xb47   : > { %5284 = vmatpush3.bf16.msra.mxu1 %v7369_v28  ;;  %v3343_v3 = vpop.xlane.xlu0 %3342 }
 0xb48   : > { %5285 = vmatprep.subr.bf16.mxu1 %v7533_v16  ;;  %5985 = vrcp.f32 %v3343_v3 }
 0xb49   : > { %v3376_v18 = vpop.xlane.xlu1 %3375  ;;  %5987 = vrcp.f32 %v3334_v60 }
 0xb4a   : > { %5989 = vrcp.f32 %v3340_v9 }
 0xb4b   : > { %5286 = vmatpush3.bf16.msra.mxu1 %v7533_v16  ;;  %v3367_v49 = vpop.xlane.xlu0 %3366 }
 0xb4d   : > { %v3370_v58 = vpop.xlane.xlu1 %3369 }
 0xb4f   : > { %v3337_v2 = vpop.xlane.xlu0 %3336 }
 0xb50   : > { %5991 = vrcp.f32 %v3337_v2 }
 0xb51   : > { %5993 = vrcp.f32 %v3352_v32  ;;  %v3388_v39 = vpop.xlane.xlu1 %3387 }
 0xb52   : > { %5995 = vrcp.f32 %v3355_v17  ;;  %v5986_v53 = vpop.eup %5985 }
 0xb53   : > { %5997 = vrcp.f32 %v3358_v48  ;;  %v3379_v1 = vpop.xlane.xlu0 %3378  ;;  %v5988_v16 = vpop.eup %5987  ;;  %v3439_v12 = vmul.f32 %v5986_v53, %v7478_v51 }
 0xb54   : > { %5999 = vrcp.f32 %v3361_v21  ;;  %v5990_v10 = vpop.eup %5989  ;;  %v3436_v34 = vmul.f32 %v5988_v16, %v7469_v6 }
 0xb55   : > { %6001 = vrcp.f32 %v3379_v1  ;;  %v3382_v28 = vpop.xlane.xlu1 %3381  ;;  %v3438_v33 = vmul.f32 %v5990_v10, %v7456_v44  ;;  %v5737_v10 = vld [vmem:[%s7956_s11] sm:$0xff]  }
 0xb56   : > { %6003 = vrcp.f32 %v3370_v58 }
 0xb57   : > { %6005 = vrcp.f32 %v3376_v18  ;;  %v3373_v24 = vpop.xlane.xlu0 %3372  ;;  %v3463_v43 = vpack.c.bf16 %v3439_v12, %v3438_v33 }
 0xb58   : > { %6007 = vrcp.f32 %v3373_v24 }
 0xb59   : > { %v3762_v62 = vpop.permute.xlu1 %3761  ;;  %6009 = vrcp.f32 %v3364_v38 }
 0xb5a   : > { %v5992_v22 = vpop.eup %5991  ;;  %5287 = vmatprep.subr.bf16.mxu1 %v3762_v62  ;;  %6011 = vrcp.f32 %v3367_v49 }
 0xb5b   : > { %v5994_v32 = vpop.eup %5993  ;;  %5288 = vmatpush3.bf16.msra.mxu1 %v3762_v62  ;;  %v3391_v17 = vpop.xlane.xlu0 %3390  ;;  %v3437_v63 = vmul.f32 %v5992_v22, %v7501_v41 }
 0xb5c   : > { %v5996_v40 = vpop.eup %5995  ;;  %6013 = vrcp.f32 %v3391_v17  ;;  %v3442_v26 = vmul.f32 %v5994_v32, %v7428_v42 }
 0xb5d   : > { %v5998_v46 = vpop.eup %5997  ;;  %v3462_v9 = vpack.c.bf16 %v3437_v63, %v3436_v34  ;;  %6015 = vrcp.f32 %v3382_v28  ;;  %v3443_v38 = vmul.f32 %v5996_v40, %v7432_v37 }
 0xb5e   : > { %v6000_v30 = vpop.eup %5999  ;;  %6017 = vrcp.f32 %v3388_v39  ;;  %v3444_v21 = vmul.f32 %v5998_v46, %v7475_v47 }
 0xb5f   : > { %v6002_v27 = vpop.eup %6001  ;;  %5261 = vmatprep.mubr.msk.bf16.mxu1 %vm1236_vm2, %v3462_v9  ;;  %v3385_v51 = vpop.xlane.xlu0 %3384  ;;  %v3445_v60 = vmul.f32 %v6000_v30, %v7482_v57  ;;  %v3465_v3 = vpack.c.bf16 %v3443_v38, %v3442_v26 }
 0xb60   : > { %v6004_v7 = vpop.eup %6003  ;;  %6019 = vrcp.f32 %v3385_v51  ;;  %5262 = vmatmul.mubr.msk.bf16.gmra.mrb[76].mxu1 %vm1236_vm2, %v3463_v43  ;;  %v3451_v44 = vmul.f32 %v6002_v27, %v7509_v31  ;;  %v5738_v43 = vld [vmem:[%s7956_s11 + $0x8] sm:$0xff]  }
 0xb61   : > { %v6006_v6 = vpop.eup %6005  ;;  %v3448_v61 = vmul.f32 %v6004_v7, %v7496_v11  ;;  %v3466_v11 = vpack.c.bf16 %v3445_v60, %v3444_v21 }
 0xb62   : > { %v6008_v41 = vpop.eup %6007  ;;  %v3450_v13 = vmul.f32 %v6006_v6, %v7487_v19 }
 0xb63   : > { %v3669_v45 = vpop.permute.xlu0 %3668  ;;  %v3449_v0 = vmul.f32 %v6008_v41, %v7517_v54  ;;  %v6010_v48 = vpop.eup %6009 }
 0xb64   : > { %5271 = vmatprep.subr.bf16.mxu0 %v3669_v45  ;;  %v6012_v37 = vpop.eup %6011  ;;  %v3469_v31 = vpack.c.bf16 %v3451_v44, %v3450_v13  ;;  %v3446_v2 = vmul.f32 %v6010_v48, %v7463_v15 }
 0xb65   : > { %5272 = vmatpush3.bf16.msra.mxu0 %v3669_v45  ;;  %v3468_v29 = vpack.c.bf16 %v3449_v0, %v3448_v61  ;;  %v3447_v19 = vmul.f32 %v6012_v37, %v7492_v23 }
 0xb66   : > { %v6014_v18 = vpop.eup %6013  ;;  %5297 = vmatprep.subr.bf16.mxu0 %v5737_v10 }
 0xb67   : > { %5289 = vmatprep.mubr.msk.bf16.mxu1 %vm1236_vm2, %v3468_v29  ;;  %v6016_v54 = vpop.eup %6015  ;;  %v3455_v47 = vmul.f32 %v6014_v18, %v7523_v5  ;;  %v3467_v28 = vpack.c.bf16 %v3447_v19, %v3446_v2 }
 0xb68   : > { %5274 = vmatmul.mubr.msk.bf16.vlgmr.msra.gmra.mrb[64].mxu0 %vm1236_vm2, %v3465_v3  ;;  %5290 = vmatmul.mubr.msk.bf16.vlgmr.msra.gmra.mrb[80].mxu1 %vm1236_vm2, %v3469_v31  ;;  %v6018_v42 = vpop.eup %6017  ;;  %v3452_v49 = vmul.f32 %v6016_v54, %v7513_v25 }
 0xb69   : > { %5277 = vmatprep.mubr.msk.bf16.mxu0 %vm1236_vm2, %v3466_v11  ;;  %v3454_v39 = vmul.f32 %v6018_v42, %v7505_v52  ;;  %5298 = vmatpush3.bf16.msra.mxu0 %v5737_v10 }
 0xb6a   : > { %v6020_v57 = vpop.eup %6019  ;;  %5299 = vmatprep.subr.bf16.mxu0 %v5738_v43 }
 0xb6b   : > { %v3453_v58 = vmul.f32 %v6020_v57, %v7527_v14  ;;  %v3471_v53 = vpack.c.bf16 %v3455_v47, %v3454_v39 }
 0xb6d   : > { %v3470_v1 = vpack.c.bf16 %v3453_v58, %v3452_v49  ;;  %5300 = vmatpush3.bf16.msra.mxu0 %v5738_v43 }
 0xb6f   : > { %5293 = vmatprep.mubr.msk.bf16.mxu1 %vm1236_vm2, %v3470_v1 }
 0xb70   : > { %5278 = vmatmul.mubr.msk.bf16.gmra.mrb[68].mxu0 %vm1236_vm2, %v3467_v28  ;;  %5294 = vmatmul.mubr.msk.bf16.gmra.mrb[84].mxu1 %vm1236_vm2, %v3471_v53 }
 0xbd4   : > { %v7593_v23 = vpop.f32.mrb[56].mxu0 }
 0xbd5   : > { %v7595_v5 = vpop.f32.mrb[57].mxu0 }
 0xbd6   : > { %v7597_v25 = vpop.f32.mrb[58].mxu0 }
 0xbd7   : > { %v7599_v14 = vpop.f32.mrb[59].mxu0 }
 0xbdc   : > { %v7601_v15 = vpop.f32.mrb[60].mxu0 }
 0xbdd   : > { %v7603_v52 = vpop.f32.mrb[61].mxu0 }
 0xbde   : > { %v7605_v24 = vpop.f32.mrb[62].mxu0 }
 0xbdf   : > { %v7607_v16 = vpop.f32.mrb[63].mxu0 }
 0xc15   : > { %v5259_v62 = vpop.f32.mrb[72].mxu1 }
 0xc16   : > { %v3627_v22 = vpop.f32.mrb[73].mxu1 }
 0xc17   : > { %v5260_v12 = vpop.f32.mrb[74].mxu1 }
 0xc18   : > { %v5665_v32 = vpack.i.bf16 %v5260_v12, %v5259_v62  ;;  %v3630_v17 = vpop.f32.mrb[75].mxu1 }
 0xc19   : > { %v5675_v34 = vpack.i.bf16 %v3630_v17, %v3627_v22 }
 0xc1a   : > { %5666 = vrot.lane.b32.xlu1 %v5665_v32, %s7999_s22 }
 0xc1b   : > { %5676 = vrot.lane.b32.xlu0 %v5675_v34, %s7999_s22 }
 0xc33   : > { %v5263_v63 = vpop.f32.mrb[76].mxu1 }
 0xc34   : > { %v3643_v40 = vpop.f32.mrb[77].mxu1 }
 0xc35   : > { %v5264_v33 = vpop.f32.mrb[78].mxu1 }
 0xc36   : > { %v5685_v46 = vpack.i.bf16 %v5264_v33, %v5263_v63  ;;  %v3646_v9 = vpop.f32.mrb[79].mxu1 }
 0xc37   : > { %v5690_v30 = vpack.i.bf16 %v3646_v9, %v3643_v40 }
 0xc3b   : > { %v5275_v27 = vpop.f32.mrb[64].mxu0  ;;  %v5291_v51 = vpop.f32.mrb[80].mxu1 }
 0xc3c   : > { %v3720_v7 = vpop.f32.mrb[65].mxu0  ;;  %v3813_v6 = vpop.f32.mrb[81].mxu1 }
 0xc3d   : > { %v5276_v41 = vpop.f32.mrb[66].mxu0  ;;  %v5292_v38 = vpop.f32.mrb[82].mxu1 }
 0xc3e   : > { %v5670_v44 = vpack.i.bf16 %v5276_v41, %v5275_v27  ;;  %v5695_v45 = vpack.i.bf16 %v5292_v38, %v5291_v51  ;;  %v3723_v61 = vpop.f32.mrb[67].mxu0  ;;  %v3816_v0 = vpop.f32.mrb[83].mxu1 }
 0xc3f   : > { %v5680_v60 = vpack.i.bf16 %v3723_v61, %v3720_v7  ;;  %v5700_v26 = vpack.i.bf16 %v3816_v0, %v3813_v6 }
 0xc40   : > { %5671 = vrot.lane.b32.xlu1 %v5670_v44, %s8000_s27 }
 0xc41   : > { %5681 = vrot.lane.b32.xlu0 %v5680_v60, %s8000_s27 }
 0xc43   : > { %v5279_v13 = vpop.f32.mrb[68].mxu0  ;;  %v5295_v48 = vpop.f32.mrb[84].mxu1 }
 0xc44   : > { %v3829_v29 = vpop.f32.mrb[85].mxu1  ;;  %5686 = vrot.lane.b32.xlu1 %v5685_v46, %s7999_s22  ;;  %v3736_v21 = vpop.f32.mrb[69].mxu0 }
 0xc45   : > { %v5296_v37 = vpop.f32.mrb[86].mxu1  ;;  %5691 = vrot.lane.b32.xlu0 %v5690_v30, %s7999_s22  ;;  %v5280_v3 = vpop.f32.mrb[70].mxu0 }
 0xc46   : > { %v5720_v31 = vpack.i.bf16 %v5296_v37, %v5295_v48  ;;  %v5710_v18 = vpack.i.bf16 %v5280_v3, %v5279_v13  ;;  %v3739_v11 = vpop.f32.mrb[71].mxu0  ;;  %v3832_v54 = vpop.f32.mrb[87].mxu1 }
 0xc47   : > { %v5705_v42 = vpack.i.bf16 %v3739_v11, %v3736_v21  ;;  %v5715_v57 = vpack.i.bf16 %v3832_v54, %v3829_v29 }
 0xc48   : > { %5696 = vrot.lane.b32.xlu1 %v5695_v45, %s8001_s30 }
 0xc49   : > { %5701 = vrot.lane.b32.xlu0 %v5700_v26, %s8001_s30 }
 0xc4c   : > { %5711 = vrot.lane.b32.xlu1 %v5710_v18, %s8000_s27 }
 0xc4d   : > { %5706 = vrot.lane.b32.xlu0 %v5705_v42, %s8000_s27  ;;  %s7893_s27 = scalar_lea.hbm %s8003_s26, %s4816_s29 }
 0xc50   : > { %5721 = vrot.lane.b32.xlu1 %v5720_v31, %s8001_s30 }
 0xc51   : > { %5716 = vrot.lane.b32.xlu0 %v5715_v57, %s8001_s30  ;;  %s6054_s30 = scalar_lea.vmem %s7897_s19, 1024 }
 0xc52   : > { %p6055_p11 = scmp.ne.s32.totalorder %s7897_s19, %s6054_s30  ;;  %p6062_p1 = scmp.lt.s32.totalorder %s6060_s24, %s6054_s30 }
 0xc54   : > { %p6056_p12 = pnand %p6055_p11, %p6261_p5  ;;  %p6063_p2 = por %p6062_p1, %p6061_p0 }
 0xc56   : > { %p6057_p13 = pneg %p6056_p12 }
 0xc58   : > { %p6064_p3 = pnand %p6063_p2, %p6057_p13 }
 0xc8c   : > { %v5667_v19 = vpop.permute.xlu1 %5666 }
 0xc8d   : > { %v5677_v47 = vpop.permute.xlu0 %5676  ;;  %v5669_v2 = vunpack.i.h.bf16 %v5667_v19  ;;  %v5668_v39 = vunpack.i.l.bf16 %v5667_v19 }
 0xc8e   : > { %v5679_v1 = vunpack.i.h.bf16 %v5677_v47  ;;  %v5678_v53 = vunpack.i.l.bf16 %v5677_v47 }
 0xc8f   : > { %v3943_v17 = vsel %vm843_vm1, %v7597_v25, %v5669_v2  ;;  %v3942_v34 = vsel %vm843_vm1, %v7593_v23, %v5668_v39 }
 0xc90   : > { %v3941_v63 = vsel %vm843_vm1, %v7599_v14, %v5679_v1  ;;  %v3940_v33 = vsel %vm843_vm1, %v7595_v5, %v5678_v53 }
 0xcb2   : > { %v5672_v49 = vpop.permute.xlu1 %5671 }
 0xcb3   : > { %v5682_v58 = vpop.permute.xlu0 %5681  ;;  %v5674_v10 = vunpack.i.h.bf16 %v5672_v49  ;;  %v5673_v22 = vunpack.i.l.bf16 %v5672_v49 }
 0xcb4   : > { %v5683_v12 = vunpack.i.l.bf16 %v5682_v58  ;;  %v5684_v32 = vunpack.i.h.bf16 %v5682_v58 }
 0xcb5   : > { %v3951_v46 = vsel %vm2065_vm3, %v3943_v17, %v5674_v10  ;;  %v3950_v27 = vsel %vm2065_vm3, %v3942_v34, %v5673_v22  ;;  %v4788_v10 = vld [vmem:[%s7957_s12] ss:$0 sm:$0xff] }
 0xcb6   : > { %v5687_v28 = vpop.permute.xlu1 %5686  ;;  %v3948_v51 = vsel %vm2065_vm3, %v3940_v33, %v5683_v12  ;;  %v3949_v23 = vsel %vm2065_vm3, %v3941_v63, %v5684_v32 }
 0xcb7   : > { %v5692_v62 = vpop.permute.xlu0 %5691  ;;  %v5689_v6 = vunpack.i.h.bf16 %v5687_v28  ;;  %v5688_v38 = vunpack.i.l.bf16 %v5687_v28 }
 0xcb8   : > { %v5694_v0 = vunpack.i.h.bf16 %v5692_v62  ;;  %v5693_v60 = vunpack.i.l.bf16 %v5692_v62 }
 0xcb9   : > { %v3947_v3 = vsel %vm843_vm1, %v7605_v24, %v5689_v6  ;;  %v3946_v31 = vsel %vm843_vm1, %v7601_v15, %v5688_v38 }
 0xcba   : > { %v5697_v40 = vpop.permute.xlu1 %5696  ;;  %v3945_v11 = vsel %vm843_vm1, %v7607_v16, %v5694_v0  ;;  %v3944_v54 = vsel %vm843_vm1, %v7603_v52, %v5693_v60 }
 0xcbb   : > { %v5699_v9 = vunpack.i.h.bf16 %v5697_v40  ;;  %v5698_v30 = vunpack.i.l.bf16 %v5697_v40  ;;  %v5702_v43 = vpop.permute.xlu0 %5701 }
 0xcbc   : > { %v5704_v25 = vunpack.i.h.bf16 %v5702_v43  ;;  %v5703_v7 = vunpack.i.l.bf16 %v5702_v43 }
 0xcbd   : > { %v3958_v14 = vsel %vm2074_vm4, %v3950_v27, %v5698_v30  ;;  %v3959_v41 = vsel %vm2074_vm4, %v3951_v46, %v5699_v9 }
 0xcbe   : > { %v3965_v5 = vpack.c.bf16 %v3959_v41, %v3958_v14  ;;  %v3956_v44 = vsel %vm2074_vm4, %v3948_v51, %v5703_v7  ;;  %v3957_v45 = vsel %vm2074_vm4, %v3949_v23, %v5704_v25  ;;  %v5712_v61 = vpop.permute.xlu1 %5711 }
 0xcbf   : > { %v3964_v26 = vpack.c.bf16 %v3957_v45, %v3956_v44  ;;  %v5707_v13 = vpop.permute.xlu0 %5706  ;;  %v5714_v48 = vunpack.i.h.bf16 %v5712_v61  ;;  %v5713_v29 = vunpack.i.l.bf16 %v5712_v61 }
 0xcc0   : > { %v5709_v21 = vunpack.i.h.bf16 %v5707_v13  ;;  %v5708_v37 = vunpack.i.l.bf16 %v5707_v13 }
 0xcc1   : > { %5301 = vmatprep.mubr.msk.bf16.mxu0 %vm652_vm0, %v3964_v26  ;;  %v3955_v47 = vsel %vm2065_vm3, %v3947_v3, %v5714_v48  ;;  %v3954_v49 = vsel %vm2065_vm3, %v3946_v31, %v5713_v29 }
 0xcc2   : > { %v5722_v18 = vpop.permute.xlu1 %5721  ;;  %5302 = vmatmul.mubr.msk.bf16.vlgmr.msra.gmra.mrb[72].mxu0 %vm652_vm0, %v3965_v5  ;;  %v3952_v15 = vsel %vm2065_vm3, %v3944_v54, %v5708_v37  ;;  %v3953_v2 = vsel %vm2065_vm3, %v3945_v11, %v5709_v21 }
 0xcc3   : > { %v5724_v42 = vunpack.i.h.bf16 %v5722_v18  ;;  %v5723_v57 = vunpack.i.l.bf16 %v5722_v18  ;;  %v5717_v19 = vpop.permute.xlu0 %5716 }
 0xcc4   : > { %v5719_v24 = vunpack.i.h.bf16 %v5717_v19  ;;  %v5718_v58 = vunpack.i.l.bf16 %v5717_v19 }
 0xcc5   : > { %v3962_v39 = vsel %vm2074_vm4, %v3954_v49, %v5723_v57  ;;  %v3963_v16 = vsel %vm2074_vm4, %v3955_v47, %v5724_v42 }
 0xcc6   : > { %v3967_v1 = vpack.c.bf16 %v3963_v16, %v3962_v39  ;;  %v3960_v52 = vsel %vm2074_vm4, %v3952_v15, %v5718_v58  ;;  %v3961_v28 = vsel %vm2074_vm4, %v3953_v2, %v5719_v24 }
 0xcc7   : > { %v3966_v53 = vpack.c.bf16 %v3961_v28, %v3960_v52 }
 0xcc9   : > { %5305 = vmatprep.mubr.msk.bf16.mxu0 %vm652_vm0, %v3966_v53 }
 0xcca   : > { %5306 = vmatmul.mubr.msk.bf16.gmra.mrb[76].mxu0 %vm652_vm0, %v3967_v1 }
 0xd95   : > { %v5303_v62 = vpop.f32.mrb[72].mxu0 }
 0xd96   : > { %v4032_v22 = vpop.f32.mrb[73].mxu0  ;;  %v4041_v12 = vadd.f32 %v5303_v62, %v4788_v10 }
 0xd97   : > { %v4033_v32 = vadd.f32 %v4788_v10, %v4032_v22  ;;  %v5304_v17 = vpop.f32.mrb[74].mxu0 }
 0xd98   : > { %v4035_v34 = vpop.f32.mrb[75].mxu0  ;;  %v4044_v33 = vadd.f32 %v5304_v17, %v4788_v10  ;;  %v4065_v46 = vadd.f32 %v4041_v12, %v7079_v35 }
 0xd99   : > { %v4063_v63 = vadd.f32 %v4033_v32, %v7071_v20  ;;  %v4036_v40 = vadd.f32 %v4788_v10, %v4035_v34 }
 0xd9a   : > { %v4066_v51 = vadd.f32 %v4044_v33, %v7081_v55  ;;  %v4077_v20 = vsel %vm652_vm0, %v4065_v46, 0.0 }
 0xd9b   : > { %v4064_v9 = vadd.f32 %v4036_v40, %v7073_v50  ;;  %v4071_v30 = vsel %vm652_vm0, %v4063_v63, 0.0 }
 0xd9c   : > { %4072 = vadd.xlane.f32.xlu0 %v4071_v30  ;;  %v4080_v41 = vsel %vm652_vm0, %v4066_v51, 0.0  ;;  %v5741_v30 = vld [vmem:[%s7960_s15] sm:$0xff]  }
 0xd9d   : > { %v5307_v43 = vpop.f32.mrb[76].mxu0  ;;  %v4074_v27 = vsel %vm652_vm0, %v4064_v9, 0.0  ;;  %5321 = vmatprep.subr.bf16.mxu0 %v5741_v30 }
 0xd9e   : > { %v4048_v25 = vpop.f32.mrb[77].mxu0  ;;  %4075 = vadd.xlane.f32.xlu1 %v4074_v27  ;;  %v4057_v7 = vadd.f32 %v5307_v43, %v4788_v10  ;;  %v5742_v43 = vld [vmem:[%s7960_s15 + $0x8] sm:$0xff]   ;;  %5322 = vmatpush3.bf16.msra.mxu0 %v5741_v30  ;;  %v5743_v27 = vld [vmem:[%s7960_s15 + $0x10] sm:$0xff]  }
 0xd9f   : > { %v4049_v23 = vadd.f32 %v4788_v10, %v4048_v25  ;;  %v5308_v6 = vpop.f32.mrb[78].mxu0  ;;  %5323 = vmatprep.subr.bf16.mxu0 %v5742_v43  ;;  %v5745_v25 = vld [vmem:[%s7960_s15 + $0x20] sm:$0xff]  }
 0xda0   : > { %v4051_v14 = vpop.f32.mrb[79].mxu0  ;;  %4078 = vadd.xlane.f32.xlu0 %v4077_v20  ;;  %v4069_v38 = vadd.f32 %v4057_v7, %v7097_v56  ;;  %v4060_v5 = vadd.f32 %v5308_v6, %v4788_v10  ;;  %v5746_v7 = vld [vmem:[%s7960_s15 + $0x28] sm:$0xff]  }
 0xda1   : > { %v4067_v35 = vadd.f32 %v4049_v23, %v7089_v59  ;;  %v4052_v50 = vadd.f32 %v4788_v10, %v4051_v14 }
 0xda2   : > { %v4070_v45 = vadd.f32 %v4060_v5, %v7099_v8  ;;  %v4089_v61 = vsel %vm652_vm0, %v4069_v38, 0.0  ;;  %5324 = vmatpush3.bf16.msra.mxu0 %v5742_v43 }
 0xda3   : > { %v4068_v44 = vadd.f32 %v4052_v50, %v7091_v4  ;;  %v4083_v55 = vsel %vm652_vm0, %v4067_v35, 0.0  ;;  %5325 = vmatprep.subr.bf16.mxu0 %v5743_v27 }
 0xda4   : > { %4084 = vadd.xlane.f32.xlu1 %v4083_v55  ;;  %4081 = vadd.xlane.f32.xlu0 %v4080_v41  ;;  %v4092_v59 = vsel %vm652_vm0, %v4070_v45, 0.0 }
 0xda5   : > { %v4086_v0 = vsel %vm652_vm0, %v4068_v44, 0.0 }
 0xda6   : > { %5326 = vmatpush3.bf16.msra.mxu0 %v5743_v27 }
 0xda8   : > { %4090 = vadd.xlane.f32.xlu1 %v4089_v61  ;;  %4087 = vadd.xlane.f32.xlu0 %v4086_v0  ;;  %v4177_v0 = vsub.s32 2, %v7061_v36 }
 0xdac   : > { %4093 = vadd.xlane.f32.xlu0 %v4092_v59 }
 0xe29   : > { %v4073_v60 = vpop.xlane.xlu0 %4072 }
 0xe2a   : > { %v4095_v56 = vmul.f32 0.03125, %v4073_v60 }
 0xe2b   : > { %v4076_v26 = vpop.xlane.xlu1 %4075 }
 0xe2c   : > { %v7682_v13 = vsub.f32 %v4063_v63, %v4095_v56  ;;  %v4096_v4 = vmul.f32 0.03125, %v4076_v26 }
 0xe2d   : > { %v4079_v48 = vpop.xlane.xlu0 %4078 }
 0xe2e   : > { %v7684_v29 = vsub.f32 %v4064_v9, %v4096_v4  ;;  %v4097_v21 = vmul.f32 0.03125, %v4079_v48  ;;  %v4111_v8 = vmul.f32 %v7682_v13, %v7682_v13  ;;  %v5740_v9 = vld [vmem:[%s7958_s13 + $0x8] sm:$0xff]  }
 0xe30   : > { %v7688_v37 = vsub.f32 %v4065_v46, %v4097_v21  ;;  %v4119_v3 = vsel %vm652_vm0, %v4111_v8, 0.0  ;;  %v4112_v31 = vmul.f32 %v7684_v29, %v7684_v29  ;;  %v5739_v46 = vld [vmem:[%s7958_s13] sm:$0xff]  }
 0xe31   : > { %v4085_v18 = vpop.xlane.xlu1 %4084  ;;  %4120 = vadd.xlane.f32.xlu1 %v4119_v3  ;;  %v4082_v11 = vpop.xlane.xlu0 %4081  ;;  %5309 = vmatprep.subr.bf16.mxu1 %v5739_v46  ;;  %v7750_v21 = vld [vmem:[%s7962_s17] sm:$0x3f]  ;;  %v4189_v3 = vsub.s32 3, %v7061_v36 }
 0xe32   : > { %v4099_v54 = vmul.f32 0.03125, %v4085_v18  ;;  %v4098_v42 = vmul.f32 0.03125, %v4082_v11  ;;  %v4122_v57 = vsel %vm652_vm0, %v4112_v31, 0.0  ;;  %v4113_v19 = vmul.f32 %v7688_v37, %v7688_v37  ;;  %5310 = vmatpush3.bf16.msra.mxu1 %v5739_v46 }
 0xe33   : > { %4123 = vadd.xlane.f32.xlu0 %v4122_v57  ;;  %5311 = vmatprep.subr.bf16.mxu1 %v5740_v9  ;;  %v4178_v8 = vrot.slane %v7750_v21, %v4177_v0 }
 0xe34   : > { %v7696_v47 = vsub.f32 %v4067_v35, %v4099_v54  ;;  %v7698_v49 = vsub.f32 %v4066_v51, %v4098_v42  ;;  %v4125_v24 = vsel %vm652_vm0, %v4113_v19, 0.0  ;;  %v5744_v51 = vld [vmem:[%s7960_s15 + $0x18] sm:$0xff]  }
 0xe35   : > { %v4091_v58 = vpop.xlane.xlu1 %4090  ;;  %4126 = vadd.xlane.f32.xlu1 %v4125_v24  ;;  %v4088_v15 = vpop.xlane.xlu0 %4087  ;;  %5327 = vmatprep.subr.bf16.mxu0 %v5744_v51 }
 0xe36   : > { %v4101_v2 = vmul.f32 0.03125, %v4091_v58  ;;  %v4100_v39 = vmul.f32 0.03125, %v4088_v15  ;;  %v4115_v16 = vmul.f32 %v7696_v47, %v7696_v47  ;;  %v4114_v1 = vmul.f32 %v7698_v49, %v7698_v49  ;;  %5312 = vmatpush3.bf16.msra.mxu1 %v5740_v9  ;;  %5328 = vmatpush3.bf16.msra.mxu0 %v5744_v51 }
 0xe37   : > { %5329 = vmatprep.subr.bf16.mxu0 %v5745_v25  ;;  %v4190_v58 = vrot.slane %v7750_v21, %v4189_v3 }
 0xe38   : > { %v7705_v52 = vsub.f32 %v4069_v38, %v4101_v2  ;;  %v7707_v28 = vsub.f32 %v4068_v44, %v4100_v39  ;;  %v4131_v53 = vsel %vm652_vm0, %v4115_v16, 0.0  ;;  %v4128_v10 = vsel %vm652_vm0, %v4114_v1, 0.0 }
 0xe39   : > { %4132 = vadd.xlane.f32.xlu1 %v4131_v53  ;;  %4129 = vadd.xlane.f32.xlu0 %v4128_v10  ;;  %v4094_v62 = vpop.xlane.xlu0 %4093 }
 0xe3a   : > { %v4102_v22 = vmul.f32 0.03125, %v4094_v62  ;;  %v4117_v12 = vmul.f32 %v7705_v52, %v7705_v52  ;;  %v4116_v32 = vmul.f32 %v7707_v28, %v7707_v28  ;;  %5330 = vmatpush3.bf16.msra.mxu0 %v5745_v25 }
 0xe3b   : > { %5331 = vmatprep.subr.bf16.mxu0 %v5746_v7 }
 0xe3c   : > { %v7715_v17 = vsub.f32 %v4070_v45, %v4102_v22  ;;  %v4137_v34 = vsel %vm652_vm0, %v4117_v12, 0.0  ;;  %v4134_v63 = vsel %vm652_vm0, %v4116_v32, 0.0 }
 0xe3d   : > { %4138 = vadd.xlane.f32.xlu1 %v4137_v34  ;;  %4135 = vadd.xlane.f32.xlu0 %v4134_v63 }
 0xe3e   : > { %v4118_v40 = vmul.f32 %v7715_v17, %v7715_v17  ;;  %5332 = vmatpush3.bf16.msra.mxu0 %v5746_v7 }
 0xe40   : > { %v4140_v33 = vsel %vm652_vm0, %v4118_v40, 0.0 }
 0xe41   : > { %4141 = vadd.xlane.f32.xlu0 %v4140_v33 }
 0xebe   : > { %v4121_v23 = vpop.xlane.xlu1 %4120 }
 0xebf   : > { %v4143_v6 = vmul.f32 0.03125, %v4121_v23 }
 0xec0   : > { %v4124_v20 = vpop.xlane.xlu0 %4123 }
 0xec1   : > { %v4151_v14 = vadd.f32 1e-06, %v4143_v6  ;;  %v4144_v35 = vmul.f32 0.03125, %v4124_v20  ;;  %v5747_v20 = vld [vmem:[%s7960_s15 + $0x30] sm:$0xff]  }
 0xec2   : > { %v4127_v50 = vpop.xlane.xlu1 %4126  ;;  %5333 = vmatprep.subr.bf16.mxu0 %v5747_v20 }
 0xec3   : > { %6021 = vrsqrt.f32 %v4151_v14  ;;  %v4152_v41 = vadd.f32 1e-06, %v4144_v35  ;;  %v4145_v38 = vmul.f32 0.03125, %v4127_v50  ;;  %5334 = vmatpush3.bf16.msra.mxu0 %v5747_v20  ;;  %v5748_v14 = vld [vmem:[%s7960_s15 + $0x38] sm:$0xff]   ;;  %v4795_v35 = vld [vmem:[%s7959_s14] ss:$0 sm:$0xff] }
 0xec4   : > { %5335 = vmatprep.subr.bf16.mxu0 %v5748_v14 }
 0xec5   : > { %6023 = vrsqrt.f32 %v4152_v41  ;;  %v4153_v5 = vadd.f32 1e-06, %v4145_v38 }
 0xec6   : > { %v4133_v44 = vpop.xlane.xlu1 %4132  ;;  %v4130_v55 = vpop.xlane.xlu0 %4129 }
 0xec7   : > { %6025 = vrsqrt.f32 %v4153_v5  ;;  %v4147_v45 = vmul.f32 0.03125, %v4133_v44  ;;  %v4146_v61 = vmul.f32 0.03125, %v4130_v55  ;;  %5336 = vmatpush3.bf16.msra.mxu0 %v5748_v14 }
 0xec9   : > { %v4155_v59 = vadd.f32 1e-06, %v4147_v45  ;;  %v4154_v60 = vadd.f32 1e-06, %v4146_v61 }
 0xeca   : > { %v4139_v56 = vpop.xlane.xlu1 %4138  ;;  %v4136_v26 = vpop.xlane.xlu0 %4135 }
 0xecb   : > { %6027 = vrsqrt.f32 %v4155_v59  ;;  %v4149_v4 = vmul.f32 0.03125, %v4139_v56  ;;  %v4148_v48 = vmul.f32 0.03125, %v4136_v26 }
 0xecc   : > { %6029 = vrsqrt.f32 %v4154_v60 }
 0xecd   : > { %v6022_v31 = vpop.eup %6021  ;;  %v4157_v18 = vadd.f32 1e-06, %v4149_v4  ;;  %v4156_v11 = vadd.f32 1e-06, %v4148_v48 }
 0xece   : > { %v4167_v54 = vmul.f32 %v6022_v31, %v7682_v13  ;;  %v4142_v42 = vpop.xlane.xlu0 %4141 }
 0xecf   : > { %v6024_v57 = vpop.eup %6023  ;;  %6031 = vrsqrt.f32 %v4157_v18  ;;  %v4150_v19 = vmul.f32 0.03125, %v4142_v42 }
 0xed0   : > { %v4168_v24 = vmul.f32 %v6024_v57, %v7684_v29  ;;  %6033 = vrsqrt.f32 %v4156_v11  ;;  %v4179_v15 = vmul.f32 %v4178_v8, %v4167_v54 }
 0xed1   : > { %v6026_v2 = vpop.eup %6025  ;;  %v4158_v39 = vadd.f32 1e-06, %v4150_v19 }
 0xed2   : > { %v4180_v16 = vmul.f32 %v4178_v8, %v4168_v24  ;;  %v4169_v1 = vmul.f32 %v6026_v2, %v7688_v37  ;;  %v7758_v53 = vadd.f32 %v4190_v58, %v4179_v15 }
 0xed3   : > { %6035 = vrsqrt.f32 %v4158_v39  ;;  %v4802_v39 = vld [vmem:[%s7961_s16] ss:$0 sm:$0xff] }
 0xed4   : > { %v7760_v10 = vadd.f32 %v4190_v58, %v4180_v16  ;;  %v4181_v29 = vmul.f32 %v4178_v8, %v4169_v1 }
 0xed5   : > { %v6028_v13 = vpop.eup %6027 }
 0xed6   : > { %v6030_v62 = vpop.eup %6029  ;;  %v4203_v22 = vpack.c.bf16 %v7760_v10, %v7758_v53  ;;  %v4171_v12 = vmul.f32 %v6028_v13, %v7696_v47  ;;  %v7768_v33 = vadd.f32 %v4190_v58, %v4181_v29 }
 0xed7   : > { %v4170_v32 = vmul.f32 %v6030_v62, %v7698_v49 }
 0xed8   : > { %5313 = vmatprep.mubr.msk.bf16.mxu1 %vm652_vm0, %v4203_v22  ;;  %v4183_v30 = vmul.f32 %v4178_v8, %v4171_v12 }
 0xed9   : > { %v6032_v34 = vpop.eup %6031  ;;  %v4182_v63 = vmul.f32 %v4178_v8, %v4170_v32 }
 0xeda   : > { %v6034_v37 = vpop.eup %6033  ;;  %v4173_v40 = vmul.f32 %v6032_v34, %v7705_v52  ;;  %v7777_v25 = vadd.f32 %v4190_v58, %v4183_v30 }
 0xedb   : > { %v7770_v46 = vadd.f32 %v4190_v58, %v4182_v63  ;;  %v4172_v9 = vmul.f32 %v6034_v37, %v7707_v28 }
 0xedc   : > { %v4185_v51 = vmul.f32 %v4178_v8, %v4173_v40 }
 0xedd   : > { %v6036_v43 = vpop.eup %6035  ;;  %v4204_v47 = vpack.c.bf16 %v7770_v46, %v7768_v33  ;;  %v4184_v27 = vmul.f32 %v4178_v8, %v4172_v9 }
 0xede   : > { %v4174_v49 = vmul.f32 %v6036_v43, %v7715_v17  ;;  %v7783_v28 = vadd.f32 %v4190_v58, %v4185_v51 }
 0xedf   : > { %5314 = vmatmul.mubr.msk.bf16.vlgmr.msra.gmra.mrb[88].mxu1 %vm652_vm0, %v4204_v47  ;;  %v7779_v52 = vadd.f32 %v4190_v58, %v4184_v27 }
 0xee0   : > { %v4186_v7 = vmul.f32 %v4178_v8, %v4174_v49 }
 0xee1   : > { %v4205_v23 = vpack.c.bf16 %v7779_v52, %v7777_v25 }
 0xee2   : > { %v7785_v6 = vadd.f32 %v4190_v58, %v4186_v7 }
 0xee3   : > { %5317 = vmatprep.mubr.msk.bf16.mxu1 %vm652_vm0, %v4205_v23 }
 0xee4   : > { %v4206_v17 = vpack.c.bf16 %v7785_v6, %v7783_v28 }
 0xee7   : > { %5318 = vmatmul.mubr.msk.bf16.gmra.mrb[92].mxu1 %vm652_vm0, %v4206_v17 }
 0xfb2   : > { %v5315_v50 = vpop.f32.mrb[88].mxu1 }
 0xfb3   : > { %v4281_v41 = vadd.f32 %v5315_v50, %v4795_v35  ;;  %v4272_v38 = vpop.f32.mrb[89].mxu1 }
 0xfb4   : > { %v4273_v5 = vadd.f32 %v4795_v35, %v4272_v38  ;;  %v5316_v44 = vpop.f32.mrb[90].mxu1 }
 0xfb5   : > { %v4284_v55 = vadd.f32 %v5316_v44, %v4795_v35  ;;  %v4275_v45 = vpop.f32.mrb[91].mxu1  ;;  %v4305_v0 = vmax.f32 %v4281_v41, 0.0 }
 0xfb6   : > { %v4276_v61 = vadd.f32 %v4795_v35, %v4275_v45  ;;  %v4303_v60 = vmax.f32 %v4273_v5, 0.0 }
 0xfb7   : > { %v4306_v59 = vmax.f32 %v4284_v55, 0.0 }
 0xfb8   : > { %v4304_v56 = vmax.f32 %v4276_v61, 0.0 }
 0xfb9   : > { %v4328_v26 = vpack.c.bf16 %v4306_v59, %v4305_v0 }
 0xfba   : > { %v4327_v4 = vpack.c.bf16 %v4304_v56, %v4303_v60  ;;  %v5319_v48 = vpop.f32.mrb[92].mxu1 }
 0xfbb   : > { %v4297_v8 = vadd.f32 %v5319_v48, %v4795_v35  ;;  %v4288_v3 = vpop.f32.mrb[93].mxu1 }
 0xfbc   : > { %v4289_v31 = vadd.f32 %v4795_v35, %v4288_v3  ;;  %v5320_v18 = vpop.f32.mrb[94].mxu1  ;;  %5337 = vmatprep.mubr.bf16.mxu0 %v4327_v4 }
 0xfbd   : > { %v4300_v11 = vadd.f32 %v5320_v18, %v4795_v35  ;;  %v4291_v54 = vpop.f32.mrb[95].mxu1  ;;  %5338 = vmatmul.mubr.bf16.vlgmr.msra.gmra.mrb[80].mxu0 %v4328_v26  ;;  %v4309_v57 = vmax.f32 %v4297_v8, 0.0 }
 0xfbe   : > { %v4292_v42 = vadd.f32 %v4795_v35, %v4291_v54  ;;  %v4307_v24 = vmax.f32 %v4289_v31, 0.0 }
 0xfbf   : > { %v4310_v19 = vmax.f32 %v4300_v11, 0.0 }
 0xfc0   : > { %v4308_v58 = vmax.f32 %v4292_v42, 0.0 }
 0xfc1   : > { %v4330_v15 = vpack.c.bf16 %v4310_v19, %v4309_v57 }
 0xfc2   : > { %v4329_v2 = vpack.c.bf16 %v4308_v58, %v4307_v24 }
 0xfc4   : > { %5341 = vmatprep.mubr.bf16.mxu0 %v4329_v2 }
 0xfc5   : > { %5342 = vmatmul.mubr.bf16.gmra.mrb[84].mxu0 %v4330_v15 }
0x1090   : > { %v5339_v16 = vpop.f32.mrb[80].mxu0 }
0x1091   : > { %v4429_v1 = vadd.f32 %v5339_v16, %v4802_v39  ;;  %v4420_v13 = vpop.f32.mrb[81].mxu0 }
0x1092   : > { %v4421_v62 = vadd.f32 %v4802_v39, %v4420_v13  ;;  %v5340_v22 = vpop.f32.mrb[82].mxu0 }
0x1093   : > { %v4453_v29 = vadd.f32 %v4429_v1, %v7768_v33  ;;  %v4432_v12 = vadd.f32 %v5340_v22, %v4802_v39  ;;  %v4423_v32 = vpop.f32.mrb[83].mxu0 }
0x1094   : > { %v4424_v34 = vadd.f32 %v4802_v39, %v4423_v32  ;;  %v4451_v63 = vadd.f32 %v4421_v62, %v7758_v53 }
0x1095   : > { %v4454_v37 = vadd.f32 %v4432_v12, %v7770_v46  ;;  %v4465_v40 = vsel %vm652_vm0, %v4453_v29, 0.0 }
0x1096   : > { %4466 = vadd.xlane.f32.xlu1 %v4465_v40  ;;  %v4452_v9 = vadd.f32 %v4424_v34, %v7760_v10  ;;  %v4459_v27 = vsel %vm652_vm0, %v4451_v63, 0.0 }
0x1097   : > { %v4468_v30 = vsel %vm652_vm0, %v4454_v37, 0.0 }
0x1098   : > { %4469 = vadd.xlane.f32.xlu0 %v4468_v30  ;;  %v5343_v43 = vpop.f32.mrb[84].mxu0  ;;  %v4462_v53 = vsel %vm652_vm0, %v4452_v9, 0.0 }
0x1099   : > { %v4436_v47 = vpop.f32.mrb[85].mxu0  ;;  %v4445_v33 = vadd.f32 %v5343_v43, %v4802_v39 }
0x109a   : > { %v4437_v49 = vadd.f32 %v4802_v39, %v4436_v47  ;;  %4460 = vadd.xlane.f32.xlu1 %v4459_v27  ;;  %v5344_v51 = vpop.f32.mrb[86].mxu0 }
0x109b   : > { %v4439_v7 = vpop.f32.mrb[87].mxu0  ;;  %v4448_v23 = vadd.f32 %v5344_v51, %v4802_v39  ;;  %v4457_v10 = vadd.f32 %v4445_v33, %v7783_v28 }
0x109c   : > { %v4455_v46 = vadd.f32 %v4437_v49, %v7777_v25  ;;  %v4440_v17 = vadd.f32 %v4802_v39, %v4439_v7  ;;  %4463 = vadd.xlane.f32.xlu0 %v4462_v53 }
0x109d   : > { %v4458_v35 = vadd.f32 %v4448_v23, %v7785_v6  ;;  %v4477_v41 = vsel %vm652_vm0, %v4457_v10, 0.0  ;;  %v4565_v23 = vsub.s32 4, %v7061_v36 }
0x109e   : > { %v4456_v20 = vadd.f32 %v4440_v17, %v7779_v52  ;;  %v4471_v14 = vsel %vm652_vm0, %v4455_v46, 0.0 }
0x109f   : > { %4472 = vadd.xlane.f32.xlu1 %v4471_v14  ;;  %v4480_v25 = vsel %vm652_vm0, %v4458_v35, 0.0 }
0x10a0   : > { %v4474_v50 = vsel %vm652_vm0, %v4456_v20, 0.0 }
0x10a1   : > { %4475 = vadd.xlane.f32.xlu0 %v4474_v50 }
0x10a3   : > { %4478 = vadd.xlane.f32.xlu1 %v4477_v41  ;;  %v4566_v41 = vrot.slane %v7750_v21, %v4565_v23 }
0x10a5   : > { %4481 = vadd.xlane.f32.xlu0 %v4480_v25 }
0x1123   : > { %v4467_v38 = vpop.xlane.xlu1 %4466 }
0x1124   : > { %v4485_v5 = vmul.f32 0.03125, %v4467_v38 }
0x1125   : > { %v4470_v44 = vpop.xlane.xlu0 %4469 }
0x1126   : > { %v7819_v28 = vsub.f32 %v4453_v29, %v4485_v5  ;;  %v4486_v52 = vmul.f32 0.03125, %v4470_v44 }
0x1127   : > { %v4461_v55 = vpop.xlane.xlu1 %4460 }
0x1128   : > { %v7821_v45 = vsub.f32 %v4454_v37, %v4486_v52  ;;  %v4483_v61 = vmul.f32 0.03125, %v4461_v55  ;;  %v4501_v6 = vmul.f32 %v7819_v28, %v7819_v28 }
0x1129   : > { %v4464_v0 = vpop.xlane.xlu0 %4463 }
0x112a   : > { %v7825_v59 = vsub.f32 %v4451_v63, %v4483_v61  ;;  %v4484_v60 = vmul.f32 0.03125, %v4464_v0  ;;  %v4513_v56 = vsel %vm652_vm0, %v4501_v6, 0.0  ;;  %v4502_v26 = vmul.f32 %v7821_v45, %v7821_v45 }
0x112b   : > { %4514 = vadd.xlane.f32.xlu1 %v4513_v56 }
0x112c   : > { %v7830_v4 = vsub.f32 %v4452_v9, %v4484_v60  ;;  %v4473_v48 = vpop.xlane.xlu1 %4472  ;;  %v4516_v8 = vsel %vm652_vm0, %v4502_v26, 0.0  ;;  %v4499_v3 = vmul.f32 %v7825_v59, %v7825_v59 }
0x112d   : > { %v4487_v31 = vmul.f32 0.03125, %v4473_v48  ;;  %4517 = vadd.xlane.f32.xlu0 %v4516_v8 }
0x112e   : > { %v4476_v18 = vpop.xlane.xlu0 %4475  ;;  %v4507_v11 = vsel %vm652_vm0, %v4499_v3, 0.0  ;;  %v4500_v54 = vmul.f32 %v7830_v4, %v7830_v4 }
0x112f   : > { %v7838_v42 = vsub.f32 %v4455_v46, %v4487_v31  ;;  %v4488_v57 = vmul.f32 0.03125, %v4476_v18  ;;  %4508 = vadd.xlane.f32.xlu1 %v4507_v11 }
0x1130   : > { %v4479_v19 = vpop.xlane.xlu1 %4478  ;;  %v4510_v24 = vsel %vm652_vm0, %v4500_v54, 0.0 }
0x1131   : > { %v7841_v58 = vsub.f32 %v4456_v20, %v4488_v57  ;;  %v4489_v15 = vmul.f32 0.03125, %v4479_v19  ;;  %4511 = vadd.xlane.f32.xlu0 %v4510_v24  ;;  %v4503_v2 = vmul.f32 %v7838_v42, %v7838_v42 }
0x1132   : > { %v4482_v39 = vpop.xlane.xlu0 %4481 }
0x1133   : > { %v7845_v16 = vsub.f32 %v4457_v10, %v4489_v15  ;;  %v4490_v1 = vmul.f32 0.03125, %v4482_v39  ;;  %v4519_v13 = vsel %vm652_vm0, %v4503_v2, 0.0  ;;  %v4504_v62 = vmul.f32 %v7841_v58, %v7841_v58 }
0x1134   : > { %4520 = vadd.xlane.f32.xlu1 %v4519_v13  ;;  %v4577_v10 = vsub.s32 5, %v7061_v36 }
0x1135   : > { %v7850_v22 = vsub.f32 %v4458_v35, %v4490_v1  ;;  %v4522_v29 = vsel %vm652_vm0, %v4504_v62, 0.0  ;;  %v4505_v12 = vmul.f32 %v7845_v16, %v7845_v16 }
0x1136   : > { %4523 = vadd.xlane.f32.xlu0 %v4522_v29  ;;  %v4578_v44 = vrot.slane %v7750_v21, %v4577_v10 }
0x1137   : > { %v4525_v32 = vsel %vm652_vm0, %v4505_v12, 0.0  ;;  %v4506_v34 = vmul.f32 %v7850_v22, %v7850_v22 }
0x1138   : > { %4526 = vadd.xlane.f32.xlu1 %v4525_v32 }
0x1139   : > { %v4528_v63 = vsel %vm652_vm0, %v4506_v34, 0.0 }
0x113a   : > { %4529 = vadd.xlane.f32.xlu0 %v4528_v63 }
0x11b8   : > { %v4515_v37 = vpop.xlane.xlu1 %4514 }
0x11b9   : > { %v4533_v40 = vmul.f32 0.03125, %v4515_v37 }
0x11ba   : > { %v4518_v9 = vpop.xlane.xlu0 %4517 }
0x11bb   : > { %v4541_v30 = vadd.f32 1e-06, %v4533_v40  ;;  %v4534_v43 = vmul.f32 0.03125, %v4518_v9 }
0x11bc   : > { %v4509_v47 = vpop.xlane.xlu1 %4508 }
0x11bd   : > { %6037 = vrsqrt.f32 %v4541_v30  ;;  %v4542_v27 = vadd.f32 1e-06, %v4534_v43  ;;  %v4531_v33 = vmul.f32 0.03125, %v4509_v47 }
0x11be   : > { %v4512_v49 = vpop.xlane.xlu0 %4511 }
0x11bf   : > { %6039 = vrsqrt.f32 %v4542_v27  ;;  %v4539_v51 = vadd.f32 1e-06, %v4531_v33  ;;  %v4532_v7 = vmul.f32 0.03125, %v4512_v49 }
0x11c1   : > { %6041 = vrsqrt.f32 %v4539_v51  ;;  %v4540_v53 = vadd.f32 1e-06, %v4532_v7  ;;  %v4521_v46 = vpop.xlane.xlu1 %4520 }
0x11c2   : > { %v4535_v17 = vmul.f32 0.03125, %v4521_v46 }
0x11c3   : > { %6043 = vrsqrt.f32 %v4540_v53  ;;  %v4524_v20 = vpop.xlane.xlu0 %4523 }
0x11c4   : > { %v4543_v14 = vadd.f32 1e-06, %v4535_v17  ;;  %v4536_v35 = vmul.f32 0.03125, %v4524_v20 }
0x11c5   : > { %v4527_v50 = vpop.xlane.xlu1 %4526 }
0x11c6   : > { %6045 = vrsqrt.f32 %v4543_v14  ;;  %v4544_v25 = vadd.f32 1e-06, %v4536_v35  ;;  %v4537_v38 = vmul.f32 0.03125, %v4527_v50 }
0x11c7   : > { %v6038_v5 = vpop.eup %6037  ;;  %v4530_v52 = vpop.xlane.xlu0 %4529 }
0x11c8   : > { %v4557_v55 = vmul.f32 %v6038_v5, %v7819_v28  ;;  %6047 = vrsqrt.f32 %v4544_v25  ;;  %v4545_v36 = vadd.f32 1e-06, %v4537_v38  ;;  %v4538_v61 = vmul.f32 0.03125, %v4530_v52 }
0x11c9   : > { %v6040_v6 = vpop.eup %6039 }
0x11ca   : > { %v4569_v0 = vmul.f32 %v4566_v41, %v4557_v55  ;;  %v4558_v60 = vmul.f32 %v6040_v6, %v7821_v45  ;;  %6049 = vrsqrt.f32 %v4545_v36  ;;  %v4546_v56 = vadd.f32 1e-06, %v4538_v61 }
0x11cb   : > { %v6042_v26 = vpop.eup %6041 }
0x11cc   : > { %v4581_v48 = vadd.f32 %v4578_v44, %v4569_v0  ;;  %v4570_v8 = vmul.f32 %v4566_v41, %v4558_v60  ;;  %v4555_v3 = vmul.f32 %v6042_v26, %v7825_v59  ;;  %6051 = vrsqrt.f32 %v4546_v56 }
0x11cd   : > { %v6044_v21 = vpop.eup %6043 }
0x11ce   : > { %4589 = vst.msk [vmem:[%s7869_s25 + $0x10] sm:$0xff] %vm652_vm0, %v4581_v48  ;;  %v4582_v28 = vadd.f32 %v4578_v44, %v4570_v8  ;;  %v4567_v31 = vmul.f32 %v4566_v41, %v4555_v3  ;;  %v4556_v45 = vmul.f32 %v6044_v21, %v7830_v4 }
0x11d0   : > { %v6046_v18 = vpop.eup %6045  ;;  %4590 = vst.msk [vmem:[%s7869_s25 + $0x18] sm:$0xff] %vm652_vm0, %v4582_v28  ;;  %v4579_v11 = vadd.f32 %v4578_v44, %v4567_v31  ;;  %v4568_v59 = vmul.f32 %v4566_v41, %v4556_v45 }
0x11d1   : > { %v4559_v54 = vmul.f32 %v6046_v18, %v7838_v42 }
0x11d2   : > { %v6048_v57 = vpop.eup %6047  ;;  %4587 = vst.msk [vmem:[%s7869_s25] sm:$0xff] %vm652_vm0, %v4579_v11  ;;  %v4580_v19 = vadd.f32 %v4578_v44, %v4568_v59 }
0x11d3   : > { %v4571_v24 = vmul.f32 %v4566_v41, %v4559_v54  ;;  %v4560_v15 = vmul.f32 %v6048_v57, %v7841_v58 }
0x11d4   : > { %v6050_v2 = vpop.eup %6049  ;;  %4588 = vst.msk [vmem:[%s7869_s25 + $0x8] sm:$0xff] %vm652_vm0, %v4580_v19 }
0x11d5   : > { %v4583_v4 = vadd.f32 %v4578_v44, %v4571_v24  ;;  %v4572_v39 = vmul.f32 %v4566_v41, %v4560_v15  ;;  %v4561_v1 = vmul.f32 %v6050_v2, %v7845_v16 }
0x11d6   : > { %v6052_v42 = vpop.eup %6051 }
0x11d7   : > { %4591 = vst.msk [vmem:[%s7869_s25 + $0x20] sm:$0xff] %vm652_vm0, %v4583_v4  ;;  %v4584_v13 = vadd.f32 %v4578_v44, %v4572_v39  ;;  %v4573_v62 = vmul.f32 %v4566_v41, %v4561_v1  ;;  %v4562_v29 = vmul.f32 %v6052_v42, %v7850_v22 }
0x11d9   : > { %4592 = vst.msk [vmem:[%s7869_s25 + $0x28] sm:$0xff] %vm652_vm0, %v4584_v13  ;;  %v4585_v58 = vadd.f32 %v4578_v44, %v4573_v62  ;;  %v4574_v12 = vmul.f32 %v4566_v41, %v4562_v29 }
0x11db   : > { %4593 = vst.msk [vmem:[%s7869_s25 + $0x30] sm:$0xff] %vm652_vm0, %v4585_v58  ;;  %v4586_v16 = vadd.f32 %v4578_v44, %v4574_v12 }
0x11dd   : > { %4594 = vst.msk [vmem:[%s7869_s25 + $0x38] sm:$0xff] %vm652_vm0, %v4586_v16 }
0x11de   : > { %6067 = shalt.err (!%p6064_p3)
}
0x11df   : > { %s6068_s3 = scalar_lea.hbm %s7893_s27, 1024  ;;  %s6072_s20 = scalar_lea.hbm %s8003_s26, 2048 }
0x11e0   : > { %p6069_p4 = scmp.ne.s32.totalorder %s7893_s27, %s6068_s3  ;;  %p6073_p9 = scmp.lt.u32.totalorder %s7893_s27, %s8003_s26 }
0x11e1   : > { %p6074_p10 = scmp.lt.u32.totalorder %s6072_s20, %s6068_s3  ;;  %p6076_p12 = scmp.lt.u32.totalorder %s6068_s3, %s7893_s27 }
0x11e2   : > { %p6070_p7 = pnand %p6069_p4, %p6261_p5 }
0x11e3   : > { %p6075_p11 = por %p6074_p10, %p6073_p9 }
0x11e4   : > { %p6071_p8 = pneg %p6070_p7 }
0x11e5   : > { %p6077_p13 = por %p6076_p12, %p6075_p11 }
0x11e7   : > { %p6078_p0 = pnand %p6077_p13, %p6071_p8 }
0x11e9   : > { %6081 = shalt.err (!%p6078_p0)
}
0x11ea   : > { %s6127_s30 = smov 128  }
0x11eb   : > { %5377 = dma.vmem_to_hbm [thread:$0]  (%p6261_p5), %s7897_s19, 1024, %s7893_s27, %s7903_s0, %s6127_s30, %s6127_s30, %s7999_s22  }
0x11ec PF: > { %s8004_s23 = sld [smem:[#allocation7_spill]]  ;;  %s8005_s24 = sld [smem:[#allocation5_spill]] }
0x11f2   : > { %p5383_p1 = scmp.ge.s32.totalorder %s8004_s23, 2  ;;  %s4624_s29 = sand.u32 1, %s8005_s24  }
0x11f3   : > { %s4625_s3 = scalar_lea.sflag [#allocation3], %s4624_s29 }
0x11f4   : > { %p5380_p2 = pnand %p5383_p1, %p6265_p6 }
0x11f6   : > { %6099 = dma.done.wait (!%p5380_p2), %s4625_s3, 1024  }
0x11f7   : > { %6101 = vsyncadd (!%p5380_p2), %s4625_s3, 4294966272  ;;  %s8007_s30 = sld [smem:[#allocation8_spill]]  ;;  %s8008_s20 = sld [smem:[#allocation6_spill]] }
0x11f8   : > { %s8009_s29 = sld [smem:[#allocation9_spill]]  ;;  %s8010_s27 = smov %s6108_s28 }
0x11fd   : > { %p28_p3 = scmp.ge.s32.totalorder %s8007_s30, 4   ;;  %s8011_s28 = smov %s8008_s20 }
0x11ff   :  { %30 = sbr.rel (!%p28_p3) target bundleno = 9 (0x9), region = 130 }
0x1206   :  { %4630 = vsyncpa [#allocation3], 1 }
0x1207   :  { %4632 = vsyncpa [#allocation3 + $0x1], 1 }

</bundles_post_ra>
